<compile_context>
chip_gen: v7x
topology: tpu7x:2x2x1
jax: 0.10.0
libtpu: 0.0.40
codegen_flags: <defaults>
</compile_context>

<pallas_src>
import jax
import jax.numpy as jnp
from jax.experimental import pallas as pl
from jax.experimental.pallas import tpu as pltpu

H1_PAD = 2048   # 2000 -> 2048 (lane-aligned)
H2_PAD = 512    # 500  -> 512
H3_PAD = 512    # 500  -> 512
OUT_PAD = 128   # input_dim (64) -> 128 for lane-dense stores


def decoder_kernel(x_ref, w1_ref, b1_ref, w2_ref, b2_ref,
                   w3_ref, b3_ref, w4_ref, b4_ref, o_ref):
    # x_ref / weights are bf16; all dots accumulate in f32 on the MXU;
    # bias add + ReLU stay f32 on the VPU.
    h1 = jnp.dot(x_ref[...], w1_ref[...], preferred_element_type=jnp.float32)
    h1 = jnp.maximum(h1 + b1_ref[...], 0.0)

    h2 = jnp.dot(h1.astype(jnp.bfloat16), w2_ref[...],
                 preferred_element_type=jnp.float32)
    h2 = jnp.maximum(h2 + b2_ref[...], 0.0)

    h3 = jnp.dot(h2.astype(jnp.bfloat16), w3_ref[...],
                 preferred_element_type=jnp.float32)
    h3 = jnp.maximum(h3 + b3_ref[...], 0.0)

    out = jnp.dot(h3.astype(jnp.bfloat16), w4_ref[...],
                  preferred_element_type=jnp.float32)
    o_ref[...] = (out + b4_ref[...]).astype(o_ref.dtype)


def decoder_forward(x, params, input_dim):
    (w1, b1), (w2, b2), (w3, b3), (w4, b4) = params
    B, _ = x.shape

    # Cast activations to bf16 once, outside the kernel.
    x_bf = x.astype(jnp.bfloat16)

    # Single invocation, no grid: every operand is a whole-array VMEM block.
    vmem = pl.BlockSpec(memory_space=pltpu.MemorySpace.VMEM)

    out_padded = pl.pallas_call(
        decoder_kernel,
        out_shape=jax.ShapeDtypeStruct((B, OUT_PAD), jnp.float32),
        in_specs=[vmem] * 9,
        out_specs=vmem,
    )(x_bf, w1, b1, w2, b2, w3, b3, w4, b4)
    return out_padded[:, :input_dim]


def init_linear(key, fan_in, fan_out, in_pad, out_pad):
    # Deterministic init (Kaiming-uniform-like scaling, like nn.Linear),
    # zero-padded to the lane-aligned shapes. Weights in bf16, biases f32.
    kw, kb = jax.random.split(key)
    bound = 1.0 / jnp.sqrt(float(fan_in))
    w = jax.random.uniform(kw, (fan_in, fan_out), jnp.float32, -bound, bound)
    b = jax.random.uniform(kb, (fan_out,), jnp.float32, -bound, bound)
    w_pad = jnp.zeros((in_pad, out_pad), jnp.float32).at[:fan_in, :fan_out].set(w)
    b_pad = jnp.zeros((1, out_pad), jnp.float32).at[0, :fan_out].set(b)
    return w_pad.astype(jnp.bfloat16), b_pad


def make_decoder_params(key, input_dim, feature_dim):
    dims = [(feature_dim, 2000, feature_dim, H1_PAD),
            (2000, 500, H1_PAD, H2_PAD),
            (500, 500, H2_PAD, H3_PAD),
            (500, input_dim, H3_PAD, OUT_PAD)]
    keys = jax.random.split(key, len(dims))
    return [init_linear(k, fi, fo, ip, op)
            for k, (fi, fo, ip, op) in zip(keys, dims)]


def decoder_reference(x, params, input_dim):
    # Mirrors the kernel math: bf16 dot inputs, f32 accumulation, f32 bias/ReLU.
    h = x
    for i, (w, b) in enumerate(params):
        h = jnp.dot(h.astype(jnp.bfloat16), w,
                    preferred_element_type=jnp.float32) + b
        if i < len(params) - 1:
            h = jnp.maximum(h, 0.0)
    return h[:, :input_dim]


if __name__ == "__main__":
    key = jax.random.PRNGKey(0)
    k_params, k_x = jax.random.split(key)

    batch = 8
    feature_dim = 32
    input_dim = 64

    params = make_decoder_params(k_params, input_dim, feature_dim)
    x = jax.random.normal(k_x, (batch, feature_dim), jnp.float32)

    out = jax.block_until_ready(decoder_forward(x, params, input_dim))
    ref = decoder_reference(x, params, input_dim)

    assert out.shape == (batch, input_dim), out.shape
    assert jnp.allclose(out, ref, atol=1e-2, rtol=1e-2), \
        float(jnp.max(jnp.abs(out - ref)))

    print("KERNEL_OK")
</pallas_src>

<mosaic_0001>
module attributes {stable_mosaic.version = 11 : i64} {
  func.func @decoder_kernel(%arg0: memref<8x32xbf16, #tpu.memory_space<vmem>>, %arg1: memref<32x2048xbf16, #tpu.memory_space<vmem>>, %arg2: memref<1x2048xf32, #tpu.memory_space<vmem>>, %arg3: memref<2048x512xbf16, #tpu.memory_space<vmem>>, %arg4: memref<1x512xf32, #tpu.memory_space<vmem>>, %arg5: memref<512x512xbf16, #tpu.memory_space<vmem>>, %arg6: memref<1x512xf32, #tpu.memory_space<vmem>>, %arg7: memref<512x128xbf16, #tpu.memory_space<vmem>>, %arg8: memref<1x128xf32, #tpu.memory_space<vmem>>, %arg9: memref<8x128xf32, #tpu.memory_space<vmem>>) attributes {dimension_semantics = [], scalar_prefetch = 0 : i64, scratch_operands = 0 : i64, tpu.core_type = #tpu.core_type<tc>} {
    %c0 = arith.constant 0 : index
    %c0_0 = arith.constant 0 : index
    %0 = vector.load %arg0[%c0, %c0_0] : memref<8x32xbf16, #tpu.memory_space<vmem>>, vector<8x32xbf16>
    %c0_1 = arith.constant 0 : index
    %c0_2 = arith.constant 0 : index
    %1 = vector.load %arg1[%c0_1, %c0_2] : memref<32x2048xbf16, #tpu.memory_space<vmem>>, vector<32x2048xbf16>
    %cst = arith.constant dense<0.000000e+00> : vector<8x2048xf32>
    %2 = tpu.matmul %0, %1, %cst {dimension_numbers = #tpu.dot_dimension_numbers<[1], [0], [0], [1], [0, 0, 1, 1], [], []>} : vector<8x32xbf16>, vector<32x2048xbf16>, vector<8x2048xf32> -> vector<8x2048xf32>
    %c0_3 = arith.constant 0 : index
    %c0_4 = arith.constant 0 : index
    %3 = vector.load %arg2[%c0_3, %c0_4] : memref<1x2048xf32, #tpu.memory_space<vmem>>, vector<1x2048xf32>
    %4 = vector.broadcast %3 : vector<1x2048xf32> to vector<8x2048xf32>
    %5 = arith.addf %2, %4 : vector<8x2048xf32>
    %cst_5 = arith.constant 0.000000e+00 : f32
    %6 = vector.broadcast %cst_5 : f32 to vector<8x2048xf32>
    %7 = arith.maximumf %5, %6 : vector<8x2048xf32>
    %8 = arith.truncf %7 : vector<8x2048xf32> to vector<8x2048xbf16>
    %c0_6 = arith.constant 0 : index
    %c0_7 = arith.constant 0 : index
    %9 = vector.load %arg3[%c0_6, %c0_7] : memref<2048x512xbf16, #tpu.memory_space<vmem>>, vector<2048x512xbf16>
    %cst_8 = arith.constant dense<0.000000e+00> : vector<8x512xf32>
    %10 = tpu.matmul %8, %9, %cst_8 {dimension_numbers = #tpu.dot_dimension_numbers<[1], [0], [0], [1], [0, 0, 1, 1], [], []>} : vector<8x2048xbf16>, vector<2048x512xbf16>, vector<8x512xf32> -> vector<8x512xf32>
    %c0_9 = arith.constant 0 : index
    %c0_10 = arith.constant 0 : index
    %11 = vector.load %arg4[%c0_9, %c0_10] : memref<1x512xf32, #tpu.memory_space<vmem>>, vector<1x512xf32>
    %12 = vector.broadcast %11 : vector<1x512xf32> to vector<8x512xf32>
    %13 = arith.addf %10, %12 : vector<8x512xf32>
    %cst_11 = arith.constant 0.000000e+00 : f32
    %14 = vector.broadcast %cst_11 : f32 to vector<8x512xf32>
    %15 = arith.maximumf %13, %14 : vector<8x512xf32>
    %16 = arith.truncf %15 : vector<8x512xf32> to vector<8x512xbf16>
    %c0_12 = arith.constant 0 : index
    %c0_13 = arith.constant 0 : index
    %17 = vector.load %arg5[%c0_12, %c0_13] : memref<512x512xbf16, #tpu.memory_space<vmem>>, vector<512x512xbf16>
    %cst_14 = arith.constant dense<0.000000e+00> : vector<8x512xf32>
    %18 = tpu.matmul %16, %17, %cst_14 {dimension_numbers = #tpu.dot_dimension_numbers<[1], [0], [0], [1], [0, 0, 1, 1], [], []>} : vector<8x512xbf16>, vector<512x512xbf16>, vector<8x512xf32> -> vector<8x512xf32>
    %c0_15 = arith.constant 0 : index
    %c0_16 = arith.constant 0 : index
    %19 = vector.load %arg6[%c0_15, %c0_16] : memref<1x512xf32, #tpu.memory_space<vmem>>, vector<1x512xf32>
    %20 = vector.broadcast %19 : vector<1x512xf32> to vector<8x512xf32>
    %21 = arith.addf %18, %20 : vector<8x512xf32>
    %cst_17 = arith.constant 0.000000e+00 : f32
    %22 = vector.broadcast %cst_17 : f32 to vector<8x512xf32>
    %23 = arith.maximumf %21, %22 : vector<8x512xf32>
    %24 = arith.truncf %23 : vector<8x512xf32> to vector<8x512xbf16>
    %c0_18 = arith.constant 0 : index
    %c0_19 = arith.constant 0 : index
    %25 = vector.load %arg7[%c0_18, %c0_19] : memref<512x128xbf16, #tpu.memory_space<vmem>>, vector<512x128xbf16>
    %cst_20 = arith.constant dense<0.000000e+00> : vector<8x128xf32>
    %26 = tpu.matmul %24, %25, %cst_20 {dimension_numbers = #tpu.dot_dimension_numbers<[1], [0], [0], [1], [0, 0, 1, 1], [], []>} : vector<8x512xbf16>, vector<512x128xbf16>, vector<8x128xf32> -> vector<8x128xf32>
    %c0_21 = arith.constant 0 : index
    %c0_22 = arith.constant 0 : index
    %27 = vector.load %arg8[%c0_21, %c0_22] : memref<1x128xf32, #tpu.memory_space<vmem>>, vector<1x128xf32>
    %28 = vector.broadcast %27 : vector<1x128xf32> to vector<8x128xf32>
    %29 = arith.addf %26, %28 : vector<8x128xf32>
    %c0_23 = arith.constant 0 : index
    %c0_24 = arith.constant 0 : index
    %30 = vector.load %arg9[%c0_23, %c0_24] : memref<8x128xf32, #tpu.memory_space<vmem>>, vector<8x128xf32>
    tpu.vector_store %arg9[%c0_23, %c0_24], %29 {strides = array<i32>} : memref<8x128xf32, #tpu.memory_space<vmem>>, vector<8x128xf32>,
    return
  }
}

</mosaic_0001>

<bundles_post_ra>
// kernel: tpu_custom_call.1
= control target key start
LH: loop header
LB: loop body
LE: loop exit
PB: predicated region body
PF: predicated region fallthrough
CT: control target
= control target key end

     0   :  { %14 = vsyncpa [#allocation3], 0  ;;  %s8285_s0 = inlined_call_operand.hbm [shape: bf16[8,32], index: 0, kind: input, shape index: {}]   ;;  %s8286_s1 = inlined_call_operand.hbm [shape: bf16[32,2048], index: 1, kind: input, shape index: {}]   ;;  %s8287_s2 = inlined_call_operand.hbm [shape: f32[1,2048], index: 2, kind: input, shape index: {}]   ;;  %s8288_s3 = inlined_call_operand.hbm [shape: bf16[2048,512], index: 3, kind: input, shape index: {}]   ;;  %s8289_s4 = inlined_call_operand.hbm [shape: f32[1,512], index: 4, kind: input, shape index: {}]   ;;  %s8290_s5 = inlined_call_operand.hbm [shape: bf16[512,512], index: 5, kind: input, shape index: {}]   ;;  %s8291_s6 = inlined_call_operand.hbm [shape: f32[1,512], index: 6, kind: input, shape index: {}]   ;;  %s8292_s7 = inlined_call_operand.hbm [shape: bf16[512,128], index: 7, kind: input, shape index: {}]   ;;  %s8293_s8 = inlined_call_operand.hbm [shape: f32[1,128], index: 8, kind: input, shape index: {}]   ;;  %s8294_s9 = inlined_call_operand.hbm [shape: f32[8,128], index: 9, kind: output, shape index: {}]  }
   0x1   :  { %15 = vsyncpa [#allocation6], 0 }
   0x2   :  { %16 = vsyncpa [#allocation9], 0 }
   0x3   :  { %17 = vsyncpa [#allocation12], 0 }
   0x4   :  { %18 = vsyncpa [#allocation15], 0 }
   0x5   :  { %19 = vsyncpa [#allocation4], 0  ;;  %s7941_s30 = smov [#allocation5]   ;;  %s7709_s13 = scalar_lea.hbm %s8286_s1, 4096 }
   0x6   :  { %s35_s10 = sshll.u32 %s7941_s30, 4  ;;  %p7710_p0 = scmp.ne.s32.totalorder %s8286_s1, %s7709_s13  ;;  %s36_s10 = int_to_ptr.vmem [resolvable:$true] %s35_s10 }
   0x7   :  { %p7713_p1 = scmp.lt.u32.totalorder %s7709_s13, %s8286_s1 }
   0x9   :  { %p7715_p2 = pnand %p7713_p1, %p7710_p0 }
   0xb   :  { %7718 = shalt.err (!%p7715_p2)
}
   0xc   :  { %s7719_s18 = scalar_lea.vmem %s36_s10, 4096  ;;  %p7724_p4 = scmp.lt.s32.totalorder %s36_s10, %s36_s10 }
   0xd   :  { %p7720_p3 = scmp.ne.s32.totalorder %s36_s10, %s7719_s18  ;;  %p7725_p5 = scmp.lt.s32.totalorder %s7719_s18, %s7719_s18 }
   0xf   :  { %p7726_p6 = por %p7725_p5, %p7724_p4 }
  0x11   :  { %p7727_p7 = pnand %p7726_p6, %p7720_p3 }
  0x13   :  { %7730 = shalt.err (!%p7727_p7)
}
  0x14   :  { %s7942_s19 = smov 1024   ;;  %s7943_s20 = smov 64  }
  0x15   :  { %41 = dma.hbm_to_vmem [thread:$0]  %s8286_s1, 4096, %s36_s10, [#allocation6], %s7942_s19, %s7942_s19, %s7943_s20  }
  0x16   :  { %s7944_s23 = smov [#allocation8]   ;;  %s7731_s27 = scalar_lea.hbm %s8288_s3, 65536 }
  0x17   :  { %s57_s24 = sshll.u32 %s7944_s23, 4  ;;  %p7732_p8 = scmp.ne.s32.totalorder %s8288_s3, %s7731_s27  ;;  %s58_s24 = int_to_ptr.vmem [resolvable:$true] %s57_s24 }
  0x18   :  { %p7735_p9 = scmp.lt.u32.totalorder %s7731_s27, %s8288_s3 }
  0x1a   :  { %p7737_p10 = pnand %p7735_p9, %p7732_p8 }
  0x1c   :  { %7740 = shalt.err (!%p7737_p10)
}
  0x1d   :  { %s7741_s12 = scalar_lea.vmem %s58_s24, 65536  ;;  %p7746_p12 = scmp.lt.s32.totalorder %s58_s24, %s58_s24 }
  0x1e   :  { %p7742_p11 = scmp.ne.s32.totalorder %s58_s24, %s7741_s12  ;;  %p7747_p13 = scmp.lt.s32.totalorder %s7741_s12, %s7741_s12 }
  0x20   :  { %p7748_p0 = por %p7747_p13, %p7746_p12 }
  0x22   :  { %p7749_p1 = pnand %p7748_p0, %p7742_p11 }
  0x24   :  { %7752 = shalt.err (!%p7749_p1)
}
  0x25   :  { %s7945_s1 = smov 256   ;;  %s7946_s10 = smov 16  }
  0x26   :  { %63 = dma.hbm_to_vmem [thread:$0]  %s8288_s3, 65536, %s58_s24, [#allocation9], %s7945_s1, %s7945_s1, %s7946_s10  }
  0x27   :  { %s7947_s15 = smov [#allocation11]   ;;  %s7948_s17 = smov [#allocation14]  }
  0x28   :  { %s79_s16 = sshll.u32 %s7947_s15, 4  ;;  %s101_s18 = sshll.u32 %s7948_s17, 4  ;;  %s80_s16 = int_to_ptr.vmem [resolvable:$true] %s79_s16  ;;  %s8032_s18 = int_to_ptr.vmem [resolvable:$true] %s101_s18 }
  0x29   :  { %s7753_s22 = scalar_lea.hbm %s8290_s5, 16384 }
  0x2a   :  { %p7754_p2 = scmp.ne.s32.totalorder %s8290_s5, %s7753_s22  ;;  %p7757_p3 = scmp.lt.u32.totalorder %s7753_s22, %s8290_s5 }
  0x2c   :  { %p7759_p4 = pnand %p7757_p3, %p7754_p2 }
  0x2e   :  { %7762 = shalt.err (!%p7759_p4)
}
  0x2f   :  { %s7763_s3 = scalar_lea.vmem %s80_s16, 16384  ;;  %p7768_p6 = scmp.lt.s32.totalorder %s80_s16, %s80_s16 }
  0x30   :  { %p7764_p5 = scmp.ne.s32.totalorder %s80_s16, %s7763_s3  ;;  %p7769_p7 = scmp.lt.s32.totalorder %s7763_s3, %s7763_s3 }
  0x32   :  { %p7770_p8 = por %p7769_p7, %p7768_p6 }
  0x34   :  { %p7771_p9 = pnand %p7770_p8, %p7764_p5 }
  0x36   :  { %7774 = shalt.err (!%p7771_p9)
}
  0x37   :  { %85 = dma.hbm_to_vmem [thread:$0]  %s8290_s5, 16384, %s80_s16, [#allocation12], %s7945_s1, %s7945_s1, %s7946_s10  }
  0x38   :  { %s7775_s11 = scalar_lea.hbm %s8292_s7, 4096 }
  0x39   :  { %p7776_p10 = scmp.ne.s32.totalorder %s8292_s7, %s7775_s11  ;;  %p7779_p11 = scmp.lt.u32.totalorder %s7775_s11, %s8292_s7 }
  0x3b   :  { %p7781_p12 = pnand %p7779_p11, %p7776_p10 }
  0x3d   :  { %7784 = shalt.err (!%p7781_p12)
}
  0x3e   :  { %s7785_s17 = scalar_lea.vmem %s8032_s18, 4096  ;;  %p7790_p0 = scmp.lt.s32.totalorder %s8032_s18, %s8032_s18 }
  0x3f   :  { %p7786_p13 = scmp.ne.s32.totalorder %s8032_s18, %s7785_s17  ;;  %p7791_p1 = scmp.lt.s32.totalorder %s7785_s17, %s7785_s17 }
  0x41   :  { %p7792_p2 = por %p7791_p1, %p7790_p0 }
  0x43   :  { %p7793_p3 = pnand %p7792_p2, %p7786_p13 }
  0x45   :  { %7796 = shalt.err (!%p7793_p3)
}
  0x46   :  { %s7949_s5 = smov 4   ;;  %s7950_s16 = smov [#allocation2]  }
  0x47   :  { %107 = dma.hbm_to_vmem [thread:$0]  %s8292_s7, 4096, %s8032_s18, [#allocation15], %s7943_s20, %s7943_s20, %s7949_s5  }
  0x48   :  { %s26_s19 = sshll.u32 %s7950_s16, 4  ;;  %s7951_s21 = smov [#allocation7]   ;;  %s27_s19 = int_to_ptr.vmem [resolvable:$true] %s26_s19 }
  0x49   :  { %s48_s22 = sshll.u32 %s7951_s21, 4  ;;  %s7797_s26 = scalar_lea.hbm %s8285_s0, 64  ;;  %s49_s22 = int_to_ptr.vmem [resolvable:$true] %s48_s22 }
  0x4a   :  { %p7798_p4 = scmp.ne.s32.totalorder %s8285_s0, %s7797_s26  ;;  %p7801_p5 = scmp.lt.u32.totalorder %s7797_s26, %s8285_s0 }
  0x4c   :  { %p7803_p6 = pnand %p7801_p5, %p7798_p4 }
  0x4e   :  { %7806 = shalt.err (!%p7803_p6)
}
  0x4f   :  { %s7807_s7 = scalar_lea.vmem %s27_s19, 64  ;;  %p7812_p8 = scmp.lt.s32.totalorder %s27_s19, %s27_s19 }
  0x50   :  { %p7808_p7 = scmp.ne.s32.totalorder %s27_s19, %s7807_s7  ;;  %p7813_p9 = scmp.lt.s32.totalorder %s7807_s7, %s7807_s7 }
  0x52   :  { %p7814_p10 = por %p7813_p9, %p7812_p8 }
  0x54   :  { %p7815_p11 = pnand %p7814_p10, %p7808_p7 }
  0x56   :  { %7818 = shalt.err (!%p7815_p11)
}
  0x57   :  { %29 = dma.hbm_to_vmem [thread:$0]  %s8285_s0, 64, %s27_s19, [#allocation3]  }
  0x58   :  { %s7819_s11 = scalar_lea.hbm %s8287_s2, 256 }
  0x59   :  { %p7820_p12 = scmp.ne.s32.totalorder %s8287_s2, %s7819_s11  ;;  %p7823_p13 = scmp.lt.u32.totalorder %s7819_s11, %s8287_s2 }
  0x5b   :  { %p7825_p0 = pnand %p7823_p13, %p7820_p12 }
  0x5d   :  { %7828 = shalt.err (!%p7825_p0)
}
  0x5e   :  { %s7829_s17 = scalar_lea.vmem %s49_s22, 256  ;;  %p7834_p2 = scmp.lt.s32.totalorder %s49_s22, %s49_s22 }
  0x5f   :  { %p7830_p1 = scmp.ne.s32.totalorder %s49_s22, %s7829_s17  ;;  %p7835_p3 = scmp.lt.s32.totalorder %s7829_s17, %s7829_s17 }
  0x61   :  { %p7836_p4 = por %p7835_p3, %p7834_p2 }
  0x63   :  { %p7837_p5 = pnand %p7836_p4, %p7830_p1 }
  0x65   :  { %7840 = shalt.err (!%p7837_p5)
}
  0x66   :  { %51 = dma.hbm_to_vmem [thread:$0]  %s8287_s2, 256, %s49_s22, [#allocation6]  }
  0x67   :  { %s7952_s1 = smov [#allocation10]   ;;  %s7953_s16 = smov [#allocation13]  }
  0x68   :  { %s70_s10 = sshll.u32 %s7952_s1, 4  ;;  %s92_s19 = sshll.u32 %s7953_s16, 4  ;;  %s71_s10 = int_to_ptr.vmem [resolvable:$true] %s70_s10  ;;  %s93_s19 = int_to_ptr.vmem [resolvable:$true] %s92_s19 }
  0x69   :  { %s7841_s25 = scalar_lea.hbm %s8289_s4, 64 }
  0x6a   :  { %p7842_p6 = scmp.ne.s32.totalorder %s8289_s4, %s7841_s25  ;;  %p7845_p7 = scmp.lt.u32.totalorder %s7841_s25, %s8289_s4 }
  0x6c   :  { %p7847_p8 = pnand %p7845_p7, %p7842_p6 }
  0x6e   :  { %7850 = shalt.err (!%p7847_p8)
}
  0x6f   :  { %s7851_s2 = scalar_lea.vmem %s71_s10, 64  ;;  %p7856_p10 = scmp.lt.s32.totalorder %s71_s10, %s71_s10 }
  0x70   :  { %p7852_p9 = scmp.ne.s32.totalorder %s71_s10, %s7851_s2  ;;  %p7857_p11 = scmp.lt.s32.totalorder %s7851_s2, %s7851_s2 }
  0x72   :  { %p7858_p12 = por %p7857_p11, %p7856_p10 }
  0x74   :  { %p7859_p13 = pnand %p7858_p12, %p7852_p9 }
  0x76   :  { %7862 = shalt.err (!%p7859_p13)
}
  0x77   :  { %73 = dma.hbm_to_vmem [thread:$0]  %s8289_s4, 64, %s71_s10, [#allocation9]  }
  0x78   :  { %s7863_s18 = scalar_lea.hbm %s8291_s6, 64 }
  0x79   :  { %p7864_p0 = scmp.ne.s32.totalorder %s8291_s6, %s7863_s18  ;;  %p7867_p1 = scmp.lt.u32.totalorder %s7863_s18, %s8291_s6 }
  0x7b   :  { %p7869_p2 = pnand %p7867_p1, %p7864_p0 }
  0x7d   :  { %7872 = shalt.err (!%p7869_p2)
}
  0x7e   :  { %s7873_s13 = scalar_lea.vmem %s93_s19, 64  ;;  %p7878_p4 = scmp.lt.s32.totalorder %s93_s19, %s93_s19 }
  0x7f   :  { %p7874_p3 = scmp.ne.s32.totalorder %s93_s19, %s7873_s13  ;;  %p7879_p5 = scmp.lt.s32.totalorder %s7873_s13, %s7873_s13 }
  0x81   :  { %p7880_p6 = por %p7879_p5, %p7878_p4 }
  0x83   :  { %p7881_p7 = pnand %p7880_p6, %p7874_p3 }
  0x85   :  { %7884 = shalt.err (!%p7881_p7)
}
  0x86   :  { %95 = dma.hbm_to_vmem [thread:$0]  %s8291_s6, 64, %s93_s19, [#allocation12]  }
  0x87   :  { %s7954_s15 = smov [#allocation16]   ;;  %s7885_s1 = scalar_lea.hbm %s8293_s8, 16 }
  0x88   :  { %s114_s17 = sshll.u32 %s7954_s15, 4  ;;  %p7886_p8 = scmp.ne.s32.totalorder %s8293_s8, %s7885_s1  ;;  %s115_s17 = int_to_ptr.vmem [resolvable:$true] %s114_s17 }
  0x89   :  { %p7889_p9 = scmp.lt.u32.totalorder %s7885_s1, %s8293_s8 }
  0x8b   :  { %p7891_p10 = pnand %p7889_p9, %p7886_p8 }
  0x8d   :  { %7894 = shalt.err (!%p7891_p10)
}
  0x8e   :  { %s7895_s25 = scalar_lea.vmem %s115_s17, 16  ;;  %s7899_s6 = scalar_lea.vmem %s115_s17, 32 }
  0x8f   :  { %p7896_p11 = scmp.ne.s32.totalorder %s115_s17, %s7895_s25  ;;  %p7900_p12 = scmp.lt.s32.totalorder %s115_s17, %s115_s17 }
  0x90   :  { %p7901_p13 = scmp.lt.s32.totalorder %s7899_s6, %s7895_s25 }
  0x92   :  { %p7902_p0 = por %p7901_p13, %p7900_p12 }
  0x94   :  { %p7903_p1 = pnand %p7902_p0, %p7896_p11 }
  0x96   :  { %7906 = shalt.err (!%p7903_p1)
}
  0x97   :  { %117 = dma.hbm_to_vmem [thread:$0]  %s8293_s8, 16, %s115_s17, [#allocation15]  }
  0x98   :  { %7929 = dma.done.wait [#allocation3], 64  }
  0x99   :  { %7930 = vsyncadd [#allocation3], 4294967232 }
  0x9a   :  { %7931 = dma.done.wait [#allocation6], 4352  }
  0x9b   :  { %7932 = vsyncadd [#allocation6], 4294962944 }
  0x9c   :  { %7933 = dma.done.wait [#allocation9], 65600  }
  0x9d   :  { %7934 = vsyncadd [#allocation9], 4294901696 }
  0x9e   :  { %7935 = dma.done.wait [#allocation12], 16448  }
  0x9f   :  { %7936 = vsyncadd [#allocation12], 4294950848 }
  0xa0   :  { %7937 = dma.done.wait [#allocation15], 4112  }
  0xa1   :  { %7938 = vsyncadd [#allocation15], 4294963184  ;;  %v7955_v0 = vmov 0   ;;  %v147_v1 = vld [vmem:[#allocation5] sm:$0xff]  ;;  %v148_v7 = vld [vmem:[#allocation5 + $0x8] sm:$0xff]  ;;  %vm423_vm0 = vcmask 261120  }
  0xa2   :  { %459 = vmatprep.mubr.bf16.mxu0 %v7955_v0  ;;  %500 = vmatprep.mubr.bf16.mxu1 %v7955_v0  ;;  %v155_v2 = vld [vmem:[#allocation5 + $0x40] sm:$0xff]  ;;  %v156_v9 = vld [vmem:[#allocation5 + $0x48] sm:$0xff]  ;;  %v149_v15 = vld [vmem:[#allocation5 + $0x10] sm:$0xff]  ;;  %s7956_s8 = smov [#allocation17]  }
  0xa3   :  { %v163_v3 = vld [vmem:[#allocation5 + $0x80] sm:$0xff]  ;;  %v5871_v4 = vcombine.high %v147_v1, %v155_v2  ;;  %v5870_v5 = vcombine.low %v147_v1, %v155_v2  ;;  %v164_v10 = vld [vmem:[#allocation5 + $0x88] sm:$0xff]  ;;  %v5873_v12 = vcombine.high %v148_v7, %v156_v9  ;;  %v5872_v13 = vcombine.low %v148_v7, %v156_v9  ;;  %v157_v16 = vld [vmem:[#allocation5 + $0x50] sm:$0xff]  ;;  %s5857_s27 = sshll.u32 %s7956_s8, 4  ;;  %s5858_s27 = int_to_ptr.vmem [resolvable:$true] %s5857_s27 }
  0xa4   :  { %v171_v6 = vld [vmem:[#allocation5 + $0xc0] sm:$0xff]  ;;  %v172_v11 = vld [vmem:[#allocation5 + $0xc8] sm:$0xff]  ;;  %v150_v18 = vld [vmem:[#allocation5 + $0x18] sm:$0xff]  ;;  %v5875_v20 = vcombine.high %v149_v15, %v157_v16  ;;  %v5874_v26 = vcombine.low %v149_v15, %v157_v16  ;;  %s7907_s3 = scalar_lea.vmem %s5858_s27, 128  ;;  %p7912_p3 = scmp.lt.s32.totalorder %s5858_s27, %s5858_s27 }
  0xa5   :  { %v5887_v8 = vcombine.high %v163_v3, %v171_v6  ;;  %427 = vmatprep.subr.bf16.mxu0 %v5871_v4  ;;  %v5889_v14 = vcombine.high %v164_v10, %v172_v11  ;;  %v5886_v17 = vcombine.low %v163_v3, %v171_v6  ;;  %v158_v19 = vld [vmem:[#allocation5 + $0x58] sm:$0xff]  ;;  %468 = vmatprep.subr.bf16.mxu1 %v5873_v12  ;;  %v165_v22 = vld [vmem:[#allocation5 + $0x90] sm:$0xff]  ;;  %v151_v31 = vld [vmem:[#allocation5 + $0x20] sm:$0xff]  ;;  %p7908_p2 = scmp.ne.s32.totalorder %s5858_s27, %s7907_s3  ;;  %p7913_p4 = scmp.lt.s32.totalorder %s7907_s3, %s7907_s3 }
  0xa6   :  { %428 = vmatpush1.bf16.msra.mxu0 %v5870_v5  ;;  %469 = vmatpush1.bf16.msra.mxu1 %v5872_v13  ;;  %v5888_v21 = vcombine.low %v164_v10, %v172_v11  ;;  %v173_v23 = vld [vmem:[#allocation5 + $0xd0] sm:$0xff]  ;;  %v5877_v24 = vcombine.high %v150_v18, %v158_v19  ;;  %v8127_v25 = vld [vmem:[#allocation2] sm:$0xf]  ;;  %v5876_v30 = vcombine.low %v150_v18, %v158_v19  ;;  %v159_v32 = vld [vmem:[#allocation5 + $0x60] sm:$0xff] }
  0xa7   :  { %429 = vmatprep.subr.bf16.mxu0 %v5887_v8  ;;  %470 = vmatprep.subr.bf16.mxu1 %v5889_v14  ;;  %v166_v27 = vld [vmem:[#allocation5 + $0x98] sm:$0xff]  ;;  %v5891_v29 = vcombine.high %v165_v22, %v173_v23  ;;  %v152_v34 = vld [vmem:[#allocation5 + $0x28] sm:$0xff]  ;;  %v5890_v35 = vcombine.low %v165_v22, %v173_v23  ;;  %v5879_v37 = vcombine.high %v151_v31, %v159_v32  ;;  %v167_v39 = vld [vmem:[#allocation5 + $0xa0] sm:$0xff]  ;;  %p7914_p5 = por %p7913_p4, %p7912_p3 }
  0xa8   :  { %v174_v28 = vld [vmem:[#allocation5 + $0xd8] sm:$0xff]  ;;  %v160_v36 = vld [vmem:[#allocation5 + $0x68] sm:$0xff]  ;;  %v175_v40 = vld [vmem:[#allocation5 + $0xe0] sm:$0xff]  ;;  %v5878_v43 = vcombine.low %v151_v31, %v159_v32 }
  0xa9   :  { %v5893_v33 = vcombine.high %v166_v27, %v174_v28  ;;  %v5892_v38 = vcombine.low %v166_v27, %v174_v28  ;;  %v5881_v41 = vcombine.high %v152_v34, %v160_v36  ;;  %v168_v42 = vld [vmem:[#allocation5 + $0xa8] sm:$0xff]  ;;  %v5895_v45 = vcombine.high %v167_v39, %v175_v40  ;;  %v153_v47 = vld [vmem:[#allocation5 + $0x30] sm:$0xff]  ;;  %v154_v50 = vld [vmem:[#allocation5 + $0x38] sm:$0xff]  ;;  %p7915_p6 = pnand %p7914_p5, %p7908_p2 }
  0xaa   :  { %430 = vmatpush1.bf16.msra.mxu0 %v5886_v17  ;;  %471 = vmatpush1.bf16.msra.mxu1 %v5888_v21  ;;  %v176_v44 = vld [vmem:[#allocation5 + $0xe8] sm:$0xff]  ;;  %v5880_v46 = vcombine.low %v152_v34, %v160_v36  ;;  %v161_v48 = vld [vmem:[#allocation5 + $0x70] sm:$0xff]  ;;  %v5894_v51 = vcombine.low %v167_v39, %v175_v40  ;;  %v162_v52 = vld [vmem:[#allocation5 + $0x78] sm:$0xff] }
  0xab   :  { %509 = vmatprep.subr.bf16.mxu0 %v5875_v20  ;;  %550 = vmatprep.subr.bf16.mxu1 %v5877_v24  ;;  %v5897_v49 = vcombine.high %v168_v42, %v176_v44  ;;  %v5883_v53 = vcombine.high %v153_v47, %v161_v48  ;;  %v5896_v54 = vcombine.low %v168_v42, %v176_v44  ;;  %v169_v55 = vld [vmem:[#allocation5 + $0xb0] sm:$0xff]  ;;  %v170_v58 = vld [vmem:[#allocation5 + $0xb8] sm:$0xff] }
  0xac   :  { %v177_v56 = vld [vmem:[#allocation5 + $0xf0] sm:$0xff]  ;;  %v5885_v57 = vcombine.high %v154_v50, %v162_v52  ;;  %v5882_v59 = vcombine.low %v153_v47, %v161_v48  ;;  %v178_v60 = vld [vmem:[#allocation5 + $0xf8] sm:$0xff]  ;;  %v5884_v62 = vcombine.low %v154_v50, %v162_v52 }
  0xad   :  { %5902 = vmatmul.mubr.msk.bf16.vlgmr.msra.gmra.mrb[0].mxu0 %vm423_vm0, %v8127_v25  ;;  %5903 = vmatmul.mubr.msk.bf16.vlgmr.msra.gmra.mrb[0].mxu1 %vm423_vm0, %v8127_v25  ;;  %v5899_v61 = vcombine.high %v169_v55, %v177_v56  ;;  %v5901_v63 = vcombine.high %v170_v58, %v178_v60  ;;  %v5898_v1 = vcombine.low %v169_v55, %v177_v56  ;;  %v6717_v2 = vld [vmem:[#allocation8 + $0x4] ss:$16 sps:$4 sm:$0xff]   ;;  %v6720_v4 = vld [vmem:[#allocation8 + $0xc] ss:$16 sps:$4 sm:$0xff]   ;;  %v6715_v5 = vld [vmem:[#allocation8] ss:$16 sps:$4 sm:$0xff]  }
  0xae   :  { %510 = vmatpush1.bf16.msra.mxu0 %v5874_v26  ;;  %541 = vmatprep.mubr.bf16.mxu0 %v7955_v0  ;;  %v5900_v3 = vcombine.low %v170_v58, %v178_v60  ;;  %v6723_v6 = vld [vmem:[#allocation8 + $0x24] ss:$16 sps:$4 sm:$0xff]   ;;  %v6718_v7 = vld [vmem:[#allocation8 + $0x8] ss:$16 sps:$4 sm:$0xff]   ;;  %v6726_v8 = vld [vmem:[#allocation8 + $0x2c] ss:$16 sps:$4 sm:$0xff]  }
  0xaf   :  { %511 = vmatprep.subr.bf16.mxu0 %v5891_v29  ;;  %551 = vmatpush1.bf16.msra.mxu1 %v5876_v30  ;;  %v6721_v9 = vld [vmem:[#allocation8 + $0x20] ss:$16 sps:$4 sm:$0xff]   ;;  %v6724_v10 = vld [vmem:[#allocation8 + $0x28] ss:$16 sps:$4 sm:$0xff]   ;;  %v6732_v11 = vld [vmem:[#allocation8 + $0x4c] ss:$16 sps:$4 sm:$0xff]  }
  0xb0   :  { %582 = vmatprep.mubr.bf16.mxu1 %v7955_v0  ;;  %552 = vmatprep.subr.bf16.mxu1 %v5893_v33  ;;  %v6727_v12 = vld [vmem:[#allocation8 + $0x40] ss:$16 sps:$4 sm:$0xff]   ;;  %v6735_v13 = vld [vmem:[#allocation8 + $0x64] ss:$16 sps:$4 sm:$0xff]   ;;  %v6730_v14 = vld [vmem:[#allocation8 + $0x48] ss:$16 sps:$4 sm:$0xff]  }
  0xb1   :  { %v6738_v15 = vld [vmem:[#allocation8 + $0x6c] ss:$16 sps:$4 sm:$0xff]   ;;  %v6733_v16 = vld [vmem:[#allocation8 + $0x60] ss:$16 sps:$4 sm:$0xff]   ;;  %v6741_v17 = vld [vmem:[#allocation8 + $0x84] ss:$16 sps:$4 sm:$0xff]  }
  0xb2   :  { %512 = vmatpush1.bf16.msra.mxu0 %v5890_v35  ;;  %v6736_v18 = vld [vmem:[#allocation8 + $0x68] ss:$16 sps:$4 sm:$0xff]   ;;  %v6739_v19 = vld [vmem:[#allocation8 + $0x80] ss:$16 sps:$4 sm:$0xff]   ;;  %v6744_v20 = vld [vmem:[#allocation8 + $0x8c] ss:$16 sps:$4 sm:$0xff]  }
  0xb3   :  { %591 = vmatprep.subr.bf16.mxu0 %v5879_v37  ;;  %553 = vmatpush1.bf16.msra.mxu1 %v5892_v38  ;;  %v6742_v21 = vld [vmem:[#allocation8 + $0x88] ss:$16 sps:$4 sm:$0xff]   ;;  %v6747_v22 = vld [vmem:[#allocation8 + $0xa4] ss:$16 sps:$4 sm:$0xff]   ;;  %v6750_v23 = vld [vmem:[#allocation8 + $0xac] ss:$16 sps:$4 sm:$0xff]  }
  0xb4   :  { %632 = vmatprep.subr.bf16.mxu1 %v5881_v41  ;;  %v6745_v24 = vld [vmem:[#allocation8 + $0xa0] ss:$16 sps:$4 sm:$0xff]   ;;  %v6748_v26 = vld [vmem:[#allocation8 + $0xa8] ss:$16 sps:$4 sm:$0xff]   ;;  %v6756_v27 = vld [vmem:[#allocation8 + $0xcc] ss:$16 sps:$4 sm:$0xff]  }
  0xb5   :  { %5904 = vmatmul.mubr.msk.bf16.vlgmr.msra.gmra.mrb[4].mxu0 %vm423_vm0, %v8127_v25  ;;  %v6751_v28 = vld [vmem:[#allocation8 + $0xc0] ss:$16 sps:$4 sm:$0xff]   ;;  %v6759_v29 = vld [vmem:[#allocation8 + $0xe4] ss:$16 sps:$4 sm:$0xff]   ;;  %v6754_v30 = vld [vmem:[#allocation8 + $0xc8] ss:$16 sps:$4 sm:$0xff]  }
  0xb6   :  { %592 = vmatpush1.bf16.msra.mxu0 %v5878_v43  ;;  %623 = vmatprep.mubr.bf16.mxu0 %v7955_v0  ;;  %v6762_v31 = vld [vmem:[#allocation8 + $0xec] ss:$16 sps:$4 sm:$0xff]   ;;  %v6757_v32 = vld [vmem:[#allocation8 + $0xe0] ss:$16 sps:$4 sm:$0xff]   ;;  %v6765_v33 = vld [vmem:[#allocation8 + $0x104] ss:$16 sps:$4 sm:$0xff]  }
  0xb7   :  { %5905 = vmatmul.mubr.msk.bf16.vlgmr.msra.gmra.mrb[4].mxu1 %vm423_vm0, %v8127_v25  ;;  %593 = vmatprep.subr.bf16.mxu0 %v5895_v45  ;;  %v6760_v34 = vld [vmem:[#allocation8 + $0xe8] ss:$16 sps:$4 sm:$0xff]   ;;  %v6768_v35 = vld [vmem:[#allocation8 + $0x10c] ss:$16 sps:$4 sm:$0xff]   ;;  %v6763_v36 = vld [vmem:[#allocation8 + $0x100] ss:$16 sps:$4 sm:$0xff]  }
  0xb8   :  { %633 = vmatpush1.bf16.msra.mxu1 %v5880_v46  ;;  %664 = vmatprep.mubr.bf16.mxu1 %v7955_v0  ;;  %v6771_v37 = vld [vmem:[#allocation8 + $0x124] ss:$16 sps:$4 sm:$0xff]   ;;  %v6766_v38 = vld [vmem:[#allocation8 + $0x108] ss:$16 sps:$4 sm:$0xff]   ;;  %v6774_v39 = vld [vmem:[#allocation8 + $0x12c] ss:$16 sps:$4 sm:$0xff]  }
  0xb9   :  { %634 = vmatprep.subr.bf16.mxu1 %v5897_v49  ;;  %v6769_v40 = vld [vmem:[#allocation8 + $0x120] ss:$16 sps:$4 sm:$0xff]   ;;  %v6777_v41 = vld [vmem:[#allocation8 + $0x144] ss:$16 sps:$4 sm:$0xff]   ;;  %v6772_v42 = vld [vmem:[#allocation8 + $0x128] ss:$16 sps:$4 sm:$0xff]  }
  0xba   :  { %594 = vmatpush1.bf16.msra.mxu0 %v5894_v51  ;;  %v6780_v43 = vld [vmem:[#allocation8 + $0x14c] ss:$16 sps:$4 sm:$0xff]   ;;  %v6775_v44 = vld [vmem:[#allocation8 + $0x140] ss:$16 sps:$4 sm:$0xff]   ;;  %v6783_v45 = vld [vmem:[#allocation8 + $0x164] ss:$16 sps:$4 sm:$0xff]  }
  0xbb   :  { %673 = vmatprep.subr.bf16.mxu0 %v5883_v53  ;;  %v6778_v46 = vld [vmem:[#allocation8 + $0x148] ss:$16 sps:$4 sm:$0xff]   ;;  %v6786_v47 = vld [vmem:[#allocation8 + $0x16c] ss:$16 sps:$4 sm:$0xff]   ;;  %v6781_v48 = vld [vmem:[#allocation8 + $0x160] ss:$16 sps:$4 sm:$0xff]  }
  0xbc   :  { %635 = vmatpush1.bf16.msra.mxu1 %v5896_v54  ;;  %v6789_v49 = vld [vmem:[#allocation8 + $0x184] ss:$16 sps:$4 sm:$0xff]   ;;  %v6784_v50 = vld [vmem:[#allocation8 + $0x168] ss:$16 sps:$4 sm:$0xff]   ;;  %v6792_v51 = vld [vmem:[#allocation8 + $0x18c] ss:$16 sps:$4 sm:$0xff]  }
  0xbd   :  { %5906 = vmatmul.mubr.msk.bf16.vlgmr.msra.gmra.mrb[8].mxu0 %vm423_vm0, %v8127_v25  ;;  %714 = vmatprep.subr.bf16.mxu1 %v5885_v57  ;;  %v6787_v52 = vld [vmem:[#allocation8 + $0x180] ss:$16 sps:$4 sm:$0xff]   ;;  %v6795_v53 = vld [vmem:[#allocation8 + $0x1a4] ss:$16 sps:$4 sm:$0xff]   ;;  %v6790_v54 = vld [vmem:[#allocation8 + $0x188] ss:$16 sps:$4 sm:$0xff]  }
  0xbe   :  { %674 = vmatpush1.bf16.msra.mxu0 %v5882_v59  ;;  %705 = vmatprep.mubr.bf16.mxu0 %v7955_v0  ;;  %v6798_v55 = vld [vmem:[#allocation8 + $0x1ac] ss:$16 sps:$4 sm:$0xff]   ;;  %v6793_v56 = vld [vmem:[#allocation8 + $0x1a0] ss:$16 sps:$4 sm:$0xff]   ;;  %v6796_v57 = vld [vmem:[#allocation8 + $0x1a8] ss:$16 sps:$4 sm:$0xff]  }
  0xbf   :  { %5907 = vmatmul.mubr.msk.bf16.vlgmr.msra.gmra.mrb[8].mxu1 %vm423_vm0, %v8127_v25  ;;  %675 = vmatprep.subr.bf16.mxu0 %v5899_v61  ;;  %v6801_v58 = vld [vmem:[#allocation8 + $0x1c4] ss:$16 sps:$4 sm:$0xff]   ;;  %v6804_v59 = vld [vmem:[#allocation8 + $0x1cc] ss:$16 sps:$4 sm:$0xff]   ;;  %v6799_v60 = vld [vmem:[#allocation8 + $0x1c0] ss:$16 sps:$4 sm:$0xff]  }
  0xc0   :  { %715 = vmatpush1.bf16.msra.mxu1 %v5884_v62  ;;  %746 = vmatprep.mubr.bf16.mxu1 %v7955_v0  ;;  %v6729_v0 = vld [vmem:[#allocation8 + $0x44] ss:$16 sps:$4 sm:$0xff]   ;;  %v6802_v61 = vld [vmem:[#allocation8 + $0x1c8] ss:$16 sps:$4 sm:$0xff]  }
  0xc1   :  { %716 = vmatprep.subr.bf16.mxu1 %v5901_v63  ;;  %v6807_v62 = vld [vmem:[#allocation8 + $0x1e4] ss:$16 sps:$4 sm:$0xff]   ;;  %v6810_v63 = vld [vmem:[#allocation8 + $0x1ec] ss:$16 sps:$4 sm:$0xff]  }
  0xc2   :  { %676 = vmatpush1.bf16.msra.mxu0 %v5898_v1  ;;  %v6805_v1 = vld [vmem:[#allocation8 + $0x1e0] ss:$16 sps:$4 sm:$0xff]  }
  0xc3   :  { %3881 = vmatprep.subr.bf16.mxu0 %v6717_v2  ;;  %v6808_v2 = vld [vmem:[#allocation8 + $0x1e8] ss:$16 sps:$4 sm:$0xff]  }
  0xc4   :  { %717 = vmatpush1.bf16.msra.mxu1 %v5900_v3  ;;  %v6813_v3 = vld [vmem:[#allocation8 + $0x204] ss:$16 sps:$4 sm:$0xff]  }
  0xc5   :  { %5908 = vmatmul.mubr.msk.bf16.vlgmr.msra.gmra.mrb[12].mxu0 %vm423_vm0, %v8127_v25  ;;  %4209 = vmatprep.subr.bf16.mxu1 %v6720_v4  ;;  %v6816_v4 = vld [vmem:[#allocation8 + $0x20c] ss:$16 sps:$4 sm:$0xff]  }
  0xc6   :  { %3882 = vmatpush1.bf16.msra.mxu0 %v6715_v5  ;;  %v183_v5 = vlaneseq }
  0xc7   :  { %5909 = vmatmul.mubr.msk.bf16.vlgmr.msra.gmra.mrb[12].mxu1 %vm423_vm0, %v8127_v25  ;;  %3883 = vmatprep.subr.bf16.mxu0 %v6723_v6  ;;  %v6753_v25 = vld [vmem:[#allocation8 + $0xc4] ss:$16 sps:$4 sm:$0xff]  }
  0xc8   :  { %4210 = vmatpush1.bf16.msra.mxu1 %v6718_v7  ;;  %v8151_v6 = vshrl.u32 %v183_v5, 7  ;;  %v6849_v5 = vld [vmem:[#allocation8 + $0x2c4] ss:$16 sps:$4 sm:$0xff]  }
  0xc9   :  { %4211 = vmatprep.subr.bf16.mxu1 %v6726_v8  ;;  %v8156_v8 = vld [vmem:[#allocation7] sm:$0xff] }
  0xca   :  { %3884 = vmatpush1.bf16.msra.mxu0 %v6721_v9  ;;  %v8154_v7 = vsub.s32 0, %v8151_v6  ;;  %v8159_v9 = vsub.s32 1, %v8151_v6 }
  0xcb   :  { %3885 = vmatprep.subr.bf16.mxu0 %v6729_v0  ;;  %v8162_v0 = vsub.s32 3, %v8151_v6 }
  0xcc   :  { %4212 = vmatpush1.bf16.msra.mxu1 %v6724_v10  ;;  %v186_v10 = vrot.slane %v8156_v8, %v8154_v7 }
  0xcd   :  { %4213 = vmatprep.subr.bf16.mxu1 %v6732_v11  ;;  %v190_v11 = vrot.slane %v8156_v8, %v8159_v9 }
  0xce   :  { %3886 = vmatpush1.bf16.msra.mxu0 %v6727_v12 }
  0xcf   :  { %3887 = vmatprep.subr.bf16.mxu0 %v6735_v13  ;;  %v198_v13 = vrot.slane %v8156_v8, %v8162_v0 }
  0xd0   :  { %4214 = vmatpush1.bf16.msra.mxu1 %v6730_v14 }
  0xd1   :  { %4215 = vmatprep.subr.bf16.mxu1 %v6738_v15 }
  0xd2   :  { %3888 = vmatpush1.bf16.msra.mxu0 %v6733_v16 }
  0xd3   :  { %3889 = vmatprep.subr.bf16.mxu0 %v6741_v17 }
  0xd4   :  { %4216 = vmatpush1.bf16.msra.mxu1 %v6736_v18 }
  0xd5   :  { %4217 = vmatprep.subr.bf16.mxu1 %v6744_v20 }
  0xd6   :  { %3890 = vmatpush1.bf16.msra.mxu0 %v6739_v19 }
  0xd7   :  { %3891 = vmatprep.subr.bf16.mxu0 %v6747_v22 }
  0xd8   :  { %4218 = vmatpush1.bf16.msra.mxu1 %v6742_v21 }
  0xd9   :  { %4219 = vmatprep.subr.bf16.mxu1 %v6750_v23  ;;  %v6811_v23 = vld [vmem:[#allocation8 + $0x200] ss:$16 sps:$4 sm:$0xff]  }
  0xda   :  { %3892 = vmatpush1.bf16.msra.mxu0 %v6745_v24  ;;  %v6814_v24 = vld [vmem:[#allocation8 + $0x208] ss:$16 sps:$4 sm:$0xff]  }
  0xdb   :  { %3893 = vmatprep.subr.bf16.mxu0 %v6753_v25 }
  0xdc   :  { %4220 = vmatpush1.bf16.msra.mxu1 %v6748_v26 }
  0xdd   :  { %4221 = vmatprep.subr.bf16.mxu1 %v6756_v27 }
  0xde   :  { %3894 = vmatpush1.bf16.msra.mxu0 %v6751_v28 }
  0xdf   :  { %3895 = vmatprep.subr.bf16.mxu0 %v6759_v29 }
  0xe0   :  { %4222 = vmatpush1.bf16.msra.mxu1 %v6754_v30 }
  0xe1   :  { %4223 = vmatprep.subr.bf16.mxu1 %v6762_v31  ;;  %v6819_v31 = vld [vmem:[#allocation8 + $0x224] ss:$16 sps:$4 sm:$0xff]  }
  0xe2   :  { %3896 = vmatpush1.bf16.msra.mxu0 %v6757_v32  ;;  %v6822_v32 = vld [vmem:[#allocation8 + $0x22c] ss:$16 sps:$4 sm:$0xff]  }
  0xe3   :  { %3897 = vmatprep.subr.bf16.mxu0 %v6765_v33 }
  0xe4   :  { %4224 = vmatpush1.bf16.msra.mxu1 %v6760_v34 }
  0xe5   :  { %4225 = vmatprep.subr.bf16.mxu1 %v6768_v35 }
  0xe6   :  { %3898 = vmatpush1.bf16.msra.mxu0 %v6763_v36  ;;  %v6817_v36 = vld [vmem:[#allocation8 + $0x220] ss:$16 sps:$4 sm:$0xff]  }
  0xe7   :  { %3899 = vmatprep.subr.bf16.mxu0 %v6771_v37  ;;  %v6820_v37 = vld [vmem:[#allocation8 + $0x228] ss:$16 sps:$4 sm:$0xff]  }
  0xe8   :  { %4226 = vmatpush1.bf16.msra.mxu1 %v6766_v38 }
  0xe9   :  { %4227 = vmatprep.subr.bf16.mxu1 %v6774_v39  ;;  %v6825_v39 = vld [vmem:[#allocation8 + $0x244] ss:$16 sps:$4 sm:$0xff]  }
  0xea   :  { %3900 = vmatpush1.bf16.msra.mxu0 %v6769_v40  ;;  %v6828_v40 = vld [vmem:[#allocation8 + $0x24c] ss:$16 sps:$4 sm:$0xff]  }
  0xeb   :  { %3901 = vmatprep.subr.bf16.mxu0 %v6777_v41 }
  0xec   :  { %4228 = vmatpush1.bf16.msra.mxu1 %v6772_v42  ;;  %v6823_v42 = vld [vmem:[#allocation8 + $0x240] ss:$16 sps:$4 sm:$0xff]  }
  0xed   :  { %4229 = vmatprep.subr.bf16.mxu1 %v6780_v43  ;;  %v6826_v43 = vld [vmem:[#allocation8 + $0x248] ss:$16 sps:$4 sm:$0xff]  }
  0xee   :  { %3902 = vmatpush1.bf16.msra.mxu0 %v6775_v44  ;;  %v6831_v44 = vld [vmem:[#allocation8 + $0x264] ss:$16 sps:$4 sm:$0xff]  }
  0xef   :  { %3903 = vmatprep.subr.bf16.mxu0 %v6783_v45  ;;  %v6834_v45 = vld [vmem:[#allocation8 + $0x26c] ss:$16 sps:$4 sm:$0xff]  }
  0xf0   :  { %4230 = vmatpush1.bf16.msra.mxu1 %v6778_v46 }
  0xf1   :  { %4231 = vmatprep.subr.bf16.mxu1 %v6786_v47  ;;  %v6829_v47 = vld [vmem:[#allocation8 + $0x260] ss:$16 sps:$4 sm:$0xff]  }
  0xf2   :  { %3904 = vmatpush1.bf16.msra.mxu0 %v6781_v48  ;;  %v6832_v48 = vld [vmem:[#allocation8 + $0x268] ss:$16 sps:$4 sm:$0xff]  }
  0xf3   :  { %3905 = vmatprep.subr.bf16.mxu0 %v6789_v49 }
  0xf4   :  { %4232 = vmatpush1.bf16.msra.mxu1 %v6784_v50  ;;  %v6837_v50 = vld [vmem:[#allocation8 + $0x284] ss:$16 sps:$4 sm:$0xff]  }
  0xf5   :  { %4233 = vmatprep.subr.bf16.mxu1 %v6792_v51  ;;  %v6840_v51 = vld [vmem:[#allocation8 + $0x28c] ss:$16 sps:$4 sm:$0xff]  }
  0xf6   :  { %3906 = vmatpush1.bf16.msra.mxu0 %v6787_v52 }
  0xf7   :  { %3907 = vmatprep.subr.bf16.mxu0 %v6795_v53  ;;  %v6835_v53 = vld [vmem:[#allocation8 + $0x280] ss:$16 sps:$4 sm:$0xff]  }
  0xf8   :  { %4234 = vmatpush1.bf16.msra.mxu1 %v6790_v54 }
  0xf9   :  { %4235 = vmatprep.subr.bf16.mxu1 %v6798_v55  ;;  %v201_v55 = vsub.s32 4, %v8151_v6 }
  0xfa   :  { %3908 = vmatpush1.bf16.msra.mxu0 %v6793_v56  ;;  %v6838_v56 = vld [vmem:[#allocation8 + $0x288] ss:$16 sps:$4 sm:$0xff]  }
  0xfb   :  { %3909 = vmatprep.subr.bf16.mxu0 %v6801_v58  ;;  %v6843_v58 = vld [vmem:[#allocation8 + $0x2a4] ss:$16 sps:$4 sm:$0xff]  }
  0xfc   :  { %4236 = vmatpush1.bf16.msra.mxu1 %v6796_v57  ;;  %v8181_v57 = vld [vmem:[#allocation7 + $0x8] sm:$0xff] }
  0xfd   :  { %4237 = vmatprep.subr.bf16.mxu1 %v6804_v59  ;;  %v6846_v59 = vld [vmem:[#allocation8 + $0x2ac] ss:$16 sps:$4 sm:$0xff]  }
  0xfe   :  { %3910 = vmatpush1.bf16.msra.mxu0 %v6799_v60  ;;  %v234_v60 = vrot.slane %v8181_v57, %v201_v55 }
  0xff   :  { %3911 = vmatprep.subr.bf16.mxu0 %v6807_v62 }
 0x100   :  { %4238 = vmatpush1.bf16.msra.mxu1 %v6802_v61  ;;  %v205_v61 = vsub.s32 5, %v8151_v6 }
 0x101   :  { %4239 = vmatprep.subr.bf16.mxu1 %v6810_v63 }
 0x102   :  { %3912 = vmatpush1.bf16.msra.mxu0 %v6805_v1  ;;  %v6841_v1 = vld [vmem:[#allocation8 + $0x2a0] ss:$16 sps:$4 sm:$0xff]  }
 0x103   :  { %3922 = vmatprep.subr.bf16.mxu0 %v6813_v3  ;;  %v238_v3 = vrot.slane %v8181_v57, %v205_v61 }
 0x104   :  { %4240 = vmatpush1.bf16.msra.mxu1 %v6808_v2  ;;  %v6844_v2 = vld [vmem:[#allocation8 + $0x2a8] ss:$16 sps:$4 sm:$0xff]  }
 0x105   :  { %4250 = vmatprep.subr.bf16.mxu1 %v6816_v4 }
 0x180   :  { %v461_v12 = vpop.f32.mrb[0].mxu0  ;;  %v8170_v18 = vpop.f32.mrb[0].mxu1 }
 0x181   :  { %v462_v14 = vadd.f32 %v461_v12, %v186_v10  ;;  %v463_v15 = vpop.f32.mrb[1].mxu0  ;;  %v504_v21 = vpop.f32.mrb[1].mxu1  ;;  %v6852_v10 = vld [vmem:[#allocation8 + $0x2cc] ss:$16 sps:$4 sm:$0xff]  }
 0x182   :  { %v464_v16 = vadd.f32 %v463_v15, %v190_v11  ;;  %v465_v17 = vpop.f32.mrb[2].mxu0  ;;  %v505_v25 = vadd.f32 %v504_v21, %v198_v13  ;;  %v506_v26 = vpop.f32.mrb[2].mxu1  ;;  %v6850_v15 = vld [vmem:[#allocation8 + $0x2c8] ss:$16 sps:$4 sm:$0xff]   ;;  %v6861_v21 = vld [vmem:[#allocation8 + $0x304] ss:$16 sps:$4 sm:$0xff]  }
 0x183   :  { %v755_v19 = vmax.f32 %v462_v14, 0.0  ;;  %v466_v20 = vpop.f32.mrb[3].mxu0  ;;  %v507_v27 = vpop.f32.mrb[3].mxu1  ;;  %v6847_v14 = vld [vmem:[#allocation8 + $0x2c0] ss:$16 sps:$4 sm:$0xff]  }
 0x184   :  { %v756_v22 = vmax.f32 %v464_v16, 0.0  ;;  %v758_v29 = vmax.f32 %v505_v25, 0.0  ;;  %v6855_v16 = vld [vmem:[#allocation8 + $0x2e4] ss:$16 sps:$4 sm:$0xff]   ;;  %v6858_v17 = vld [vmem:[#allocation8 + $0x2ec] ss:$16 sps:$4 sm:$0xff]  }
 0x185   :  { %v771_v30 = vpack.c.bf16 %v755_v19, %v755_v19  ;;  %v6853_v19 = vld [vmem:[#allocation8 + $0x2e0] ss:$16 sps:$4 sm:$0xff]   ;;  %v6856_v20 = vld [vmem:[#allocation8 + $0x2e8] ss:$16 sps:$4 sm:$0xff]   ;;  %v6867_v25 = vld [vmem:[#allocation8 + $0x324] ss:$16 sps:$4 sm:$0xff]  }
 0x186   :  { %v772_v28 = vpack.c.bf16 %v756_v22, %v756_v22  ;;  %v774_v33 = vpack.c.bf16 %v758_v29, %v758_v29  ;;  %v6864_v22 = vld [vmem:[#allocation8 + $0x30c] ss:$16 sps:$4 sm:$0xff]   ;;  %v6865_v27 = vld [vmem:[#allocation8 + $0x320] ss:$16 sps:$4 sm:$0xff]   ;;  %v6873_v29 = vld [vmem:[#allocation8 + $0x344] ss:$16 sps:$4 sm:$0xff]  }
 0x187   :  { %v6870_v26 = vld [vmem:[#allocation8 + $0x32c] ss:$16 sps:$4 sm:$0xff]  }
 0x188   :  { %3913 = vmatprep.mubr.bf16.mxu0 %v772_v28  ;;  %4241 = vmatprep.mubr.bf16.mxu1 %v772_v28  ;;  %v8172_v34 = vpop.f32.mrb[4].mxu0  ;;  %v6868_v28 = vld [vmem:[#allocation8 + $0x328] ss:$16 sps:$4 sm:$0xff]  }
 0x189   :  { %3914 = vmatmul.mubr.bf16.vlgmr.msra.gmra.mrb[16].mxu0 %v771_v30  ;;  %4242 = vmatmul.mubr.bf16.vlgmr.msra.gmra.mrb[16].mxu1 %v771_v30  ;;  %v8174_v35 = vpop.f32.mrb[5].mxu0  ;;  %v6876_v30 = vld [vmem:[#allocation8 + $0x34c] ss:$16 sps:$4 sm:$0xff]  }
 0x18a   :  { %3923 = vmatpush1.bf16.msra.mxu0 %v6811_v23  ;;  %4251 = vmatpush1.bf16.msra.mxu1 %v6814_v24  ;;  %v547_v38 = vpop.f32.mrb[6].mxu0  ;;  %v6859_v23 = vld [vmem:[#allocation8 + $0x300] ss:$16 sps:$4 sm:$0xff]   ;;  %v6862_v24 = vld [vmem:[#allocation8 + $0x308] ss:$16 sps:$4 sm:$0xff]  }
 0x18b   :  { %3924 = vmatprep.subr.bf16.mxu0 %v6819_v31  ;;  %4252 = vmatprep.subr.bf16.mxu1 %v6822_v32  ;;  %v548_v41 = vpop.f32.mrb[7].mxu0  ;;  %v6871_v31 = vld [vmem:[#allocation8 + $0x340] ss:$16 sps:$4 sm:$0xff]   ;;  %v6874_v32 = vld [vmem:[#allocation8 + $0x348] ss:$16 sps:$4 sm:$0xff]  }
 0x18c   :  { %3954 = vmatprep.mubr.bf16.mxu0 %v774_v33  ;;  %4282 = vmatprep.mubr.bf16.mxu1 %v774_v33  ;;  %v6879_v33 = vld [vmem:[#allocation8 + $0x364] ss:$16 sps:$4 sm:$0xff]   ;;  %v6880_v38 = vld [vmem:[#allocation8 + $0x368] ss:$16 sps:$4 sm:$0xff]   ;;  %v8195_v41 = vsub.s32 2, %v8151_v6 }
 0x18e   :  { %3925 = vmatpush1.bf16.msra.mxu0 %v6817_v36  ;;  %4253 = vmatpush1.bf16.msra.mxu1 %v6820_v37  ;;  %v6882_v36 = vld [vmem:[#allocation8 + $0x36c] ss:$16 sps:$4 sm:$0xff]   ;;  %v6877_v37 = vld [vmem:[#allocation8 + $0x360] ss:$16 sps:$4 sm:$0xff]  }
 0x18f   :  { %3926 = vmatprep.subr.bf16.mxu0 %v6825_v39  ;;  %4254 = vmatprep.subr.bf16.mxu1 %v6828_v40  ;;  %v6885_v39 = vld [vmem:[#allocation8 + $0x384] ss:$16 sps:$4 sm:$0xff]   ;;  %v6888_v40 = vld [vmem:[#allocation8 + $0x38c] ss:$16 sps:$4 sm:$0xff]  }
 0x190   :  { %v8176_v46 = vpop.f32.mrb[8].mxu0 }
 0x191   :  { %v8178_v49 = vpop.f32.mrb[9].mxu0 }
 0x192   :  { %3927 = vmatpush1.bf16.msra.mxu0 %v6823_v42  ;;  %4255 = vmatpush1.bf16.msra.mxu1 %v6826_v43  ;;  %v629_v52 = vpop.f32.mrb[10].mxu0  ;;  %v6883_v42 = vld [vmem:[#allocation8 + $0x380] ss:$16 sps:$4 sm:$0xff]   ;;  %v6886_v43 = vld [vmem:[#allocation8 + $0x388] ss:$16 sps:$4 sm:$0xff]  }
 0x193   :  { %3928 = vmatprep.subr.bf16.mxu0 %v6831_v44  ;;  %4256 = vmatprep.subr.bf16.mxu1 %v6834_v45  ;;  %v630_v54 = vpop.f32.mrb[11].mxu0  ;;  %v6891_v44 = vld [vmem:[#allocation8 + $0x3a4] ss:$16 sps:$4 sm:$0xff]   ;;  %v6894_v45 = vld [vmem:[#allocation8 + $0x3ac] ss:$16 sps:$4 sm:$0xff]  }
 0x194   :  { %v6900_v52 = vld [vmem:[#allocation8 + $0x3cc] ss:$16 sps:$4 sm:$0xff]   ;;  %v206_v54 = vrot.slane %v8156_v8, %v205_v61  ;;  %v6904_v61 = vld [vmem:[#allocation8 + $0x3e8] ss:$16 sps:$4 sm:$0xff]  }
 0x196   :  { %3929 = vmatpush1.bf16.msra.mxu0 %v6829_v47  ;;  %4257 = vmatpush1.bf16.msra.mxu1 %v6832_v48  ;;  %v194_v47 = vrot.slane %v8156_v8, %v8195_v41  ;;  %v6889_v48 = vld [vmem:[#allocation8 + $0x3a0] ss:$16 sps:$4 sm:$0xff]  }
 0x197   :  { %3930 = vmatprep.subr.bf16.mxu0 %v6837_v50  ;;  %4258 = vmatprep.subr.bf16.mxu1 %v6840_v51  ;;  %v6892_v50 = vld [vmem:[#allocation8 + $0x3a8] ss:$16 sps:$4 sm:$0xff]   ;;  %v6897_v51 = vld [vmem:[#allocation8 + $0x3c4] ss:$16 sps:$4 sm:$0xff]   ;;  %v6901_v8 = vld [vmem:[#allocation8 + $0x3e0] ss:$16 sps:$4 sm:$0xff]  }
 0x198   :  { %v707_v62 = vpop.f32.mrb[12].mxu0 }
 0x199   :  { %v8187_v63 = vadd.f32 %v707_v62, %v234_v60  ;;  %v709_v4 = vpop.f32.mrb[13].mxu0  ;;  %v6903_v62 = vld [vmem:[#allocation8 + $0x3e4] ss:$16 sps:$4 sm:$0xff]  }
 0x19a   :  { %3931 = vmatpush1.bf16.msra.mxu0 %v6835_v53  ;;  %4259 = vmatpush1.bf16.msra.mxu1 %v6838_v56  ;;  %v711_v11 = vpop.f32.mrb[14].mxu0  ;;  %v8192_v12 = vadd.f32 %v709_v4, %v238_v3  ;;  %v8199_v53 = vpop.f32.mrb[4].mxu1  ;;  %v503_v56 = vadd.f32 %v8170_v18, %v194_v47  ;;  %v546_v3 = vadd.f32 %v8174_v35, %v206_v54  ;;  %v6909_v18 = vld [vmem:[#allocation8 + $0x404] ss:$16 sps:$4 sm:$0xff]   ;;  %v6918_v35 = vld [vmem:[#allocation8 + $0x42c] ss:$16 sps:$4 sm:$0xff]  }
 0x19b   :  { %3932 = vmatprep.subr.bf16.mxu0 %v6843_v58  ;;  %4260 = vmatprep.subr.bf16.mxu1 %v6846_v59  ;;  %v712_v13 = vpop.f32.mrb[15].mxu0  ;;  %v6895_v58 = vld [vmem:[#allocation8 + $0x3c0] ss:$16 sps:$4 sm:$0xff]   ;;  %v6898_v59 = vld [vmem:[#allocation8 + $0x3c8] ss:$16 sps:$4 sm:$0xff]   ;;  %v8205_v60 = vpop.f32.mrb[5].mxu1 }
 0x19c   :  { %v6907_v11 = vld [vmem:[#allocation8 + $0x400] ss:$16 sps:$4 sm:$0xff]   ;;  %v6910_v13 = vld [vmem:[#allocation8 + $0x408] ss:$16 sps:$4 sm:$0xff]  }
 0x19d   :  { %v6937_v47 = vld [vmem:[#allocation8 + $0x4a0] ss:$16 sps:$4 sm:$0xff]  }
 0x19e   :  { %3933 = vmatpush1.bf16.msra.mxu0 %v6841_v1  ;;  %4261 = vmatpush1.bf16.msra.mxu1 %v6844_v2  ;;  %v6906_v1 = vld [vmem:[#allocation8 + $0x3ec] ss:$16 sps:$4 sm:$0xff]   ;;  %v588_v2 = vpop.f32.mrb[6].mxu1 }
 0x19f   :  { %3934 = vmatprep.subr.bf16.mxu0 %v6849_v5  ;;  %4262 = vmatprep.subr.bf16.mxu1 %v6852_v10  ;;  %v589_v4 = vpop.f32.mrb[7].mxu1  ;;  %v757_v5 = vmax.f32 %v503_v56, 0.0  ;;  %v6912_v10 = vld [vmem:[#allocation8 + $0x40c] ss:$16 sps:$4 sm:$0xff]   ;;  %v6946_v2 = vld [vmem:[#allocation8 + $0x4c8] ss:$16 sps:$4 sm:$0xff]  }
 0x1a0   :  { %v6949_v4 = vld [vmem:[#allocation8 + $0x4e0] ss:$16 sps:$4 sm:$0xff]  }
 0x1a2   :  { %3935 = vmatpush1.bf16.msra.mxu0 %v6847_v14  ;;  %4263 = vmatpush1.bf16.msra.mxu1 %v6850_v15  ;;  %v760_v14 = vmax.f32 %v546_v3, 0.0  ;;  %v773_v15 = vpack.c.bf16 %v757_v5, %v757_v5  ;;  %v6954_v3 = vld [vmem:[#allocation8 + $0x4ec] ss:$16 sps:$4 sm:$0xff]   ;;  %v6952_v5 = vld [vmem:[#allocation8 + $0x4e8] ss:$16 sps:$4 sm:$0xff]  }
 0x1a3   :  { %3936 = vmatprep.subr.bf16.mxu0 %v6855_v16  ;;  %4264 = vmatprep.subr.bf16.mxu1 %v6858_v17  ;;  %v6915_v16 = vld [vmem:[#allocation8 + $0x424] ss:$16 sps:$4 sm:$0xff]   ;;  %v6913_v17 = vld [vmem:[#allocation8 + $0x420] ss:$16 sps:$4 sm:$0xff]  }
 0x1a6   :  { %3937 = vmatpush1.bf16.msra.mxu0 %v6853_v19  ;;  %4265 = vmatpush1.bf16.msra.mxu1 %v6856_v20  ;;  %v6916_v19 = vld [vmem:[#allocation8 + $0x428] ss:$16 sps:$4 sm:$0xff]   ;;  %v776_v20 = vpack.c.bf16 %v760_v14, %v760_v14  ;;  %v6961_v14 = vld [vmem:[#allocation8 + $0x520] ss:$16 sps:$4 sm:$0xff]  }
 0x1a7   :  { %3938 = vmatprep.subr.bf16.mxu0 %v6861_v21  ;;  %4266 = vmatprep.subr.bf16.mxu1 %v6864_v22  ;;  %v6921_v21 = vld [vmem:[#allocation8 + $0x444] ss:$16 sps:$4 sm:$0xff]   ;;  %v6924_v22 = vld [vmem:[#allocation8 + $0x44c] ss:$16 sps:$4 sm:$0xff]  }
 0x1aa   :  { %3939 = vmatpush1.bf16.msra.mxu0 %v6859_v23  ;;  %4267 = vmatpush1.bf16.msra.mxu1 %v6862_v24  ;;  %v6919_v23 = vld [vmem:[#allocation8 + $0x440] ss:$16 sps:$4 sm:$0xff]   ;;  %v6922_v24 = vld [vmem:[#allocation8 + $0x448] ss:$16 sps:$4 sm:$0xff]  }
 0x1ab   :  { %3940 = vmatprep.subr.bf16.mxu0 %v6867_v25  ;;  %4268 = vmatprep.subr.bf16.mxu1 %v6870_v26  ;;  %v6927_v25 = vld [vmem:[#allocation8 + $0x464] ss:$16 sps:$4 sm:$0xff]   ;;  %v6930_v26 = vld [vmem:[#allocation8 + $0x46c] ss:$16 sps:$4 sm:$0xff]  }
 0x1ae   :  { %3941 = vmatpush1.bf16.msra.mxu0 %v6865_v27  ;;  %4269 = vmatpush1.bf16.msra.mxu1 %v6868_v28  ;;  %v8208_v27 = vpop.f32.mrb[8].mxu1  ;;  %v6925_v28 = vld [vmem:[#allocation8 + $0x460] ss:$16 sps:$4 sm:$0xff]  }
 0x1af   :  { %3942 = vmatprep.subr.bf16.mxu0 %v6873_v29  ;;  %4270 = vmatprep.subr.bf16.mxu1 %v6876_v30  ;;  %v6928_v29 = vld [vmem:[#allocation8 + $0x468] ss:$16 sps:$4 sm:$0xff]   ;;  %v8210_v30 = vpop.f32.mrb[9].mxu1 }
 0x1b2   :  { %3943 = vmatpush1.bf16.msra.mxu0 %v6871_v31  ;;  %4271 = vmatpush1.bf16.msra.mxu1 %v6874_v32  ;;  %v670_v31 = vpop.f32.mrb[10].mxu1 }
 0x1b3   :  { %3944 = vmatprep.subr.bf16.mxu0 %v6879_v33  ;;  %4272 = vmatprep.subr.bf16.mxu1 %v6882_v36  ;;  %v671_v32 = vpop.f32.mrb[11].mxu1  ;;  %v6933_v33 = vld [vmem:[#allocation8 + $0x484] ss:$16 sps:$4 sm:$0xff]   ;;  %v6936_v36 = vld [vmem:[#allocation8 + $0x48c] ss:$16 sps:$4 sm:$0xff]  }
 0x1b4   :  { %v6990_v31 = vld [vmem:[#allocation8 + $0x5ac] ss:$16 sps:$4 sm:$0xff]   ;;  %v6985_v32 = vld [vmem:[#allocation8 + $0x5a0] ss:$16 sps:$4 sm:$0xff]  }
 0x1b6   :  { %3945 = vmatpush1.bf16.msra.mxu0 %v6877_v37  ;;  %4273 = vmatpush1.bf16.msra.mxu1 %v6880_v38  ;;  %v6931_v37 = vld [vmem:[#allocation8 + $0x480] ss:$16 sps:$4 sm:$0xff]   ;;  %v6934_v38 = vld [vmem:[#allocation8 + $0x488] ss:$16 sps:$4 sm:$0xff]  }
 0x1b7   :  { %3946 = vmatprep.subr.bf16.mxu0 %v6885_v39  ;;  %4274 = vmatprep.subr.bf16.mxu1 %v6888_v40  ;;  %v209_v39 = vsub.s32 6, %v8151_v6  ;;  %v213_v40 = vsub.s32 7, %v8151_v6  ;;  %v7087_v6 = vld [vmem:[#allocation8 + $0x7c0] ss:$16 sps:$4 sm:$0xff]  }
 0x1ba   :  { %3947 = vmatpush1.bf16.msra.mxu0 %v6883_v42  ;;  %4275 = vmatpush1.bf16.msra.mxu1 %v6886_v43  ;;  %v6939_v42 = vld [vmem:[#allocation8 + $0x4a4] ss:$16 sps:$4 sm:$0xff]   ;;  %v6942_v43 = vld [vmem:[#allocation8 + $0x4ac] ss:$16 sps:$4 sm:$0xff]  }
 0x1bb   :  { %3948 = vmatprep.subr.bf16.mxu0 %v6891_v44  ;;  %4276 = vmatprep.subr.bf16.mxu1 %v6894_v45  ;;  %v242_v44 = vrot.slane %v8181_v57, %v209_v39  ;;  %v748_v45 = vpop.f32.mrb[12].mxu1 }
 0x1be   :  { %3949 = vmatpush1.bf16.msra.mxu0 %v6889_v48  ;;  %4277 = vmatpush1.bf16.msra.mxu1 %v6892_v50  ;;  %v6940_v48 = vld [vmem:[#allocation8 + $0x4a8] ss:$16 sps:$4 sm:$0xff]   ;;  %v246_v50 = vrot.slane %v8181_v57, %v213_v40  ;;  %v6951_v57 = vld [vmem:[#allocation8 + $0x4e4] ss:$16 sps:$4 sm:$0xff]  }
 0x1bf   :  { %3950 = vmatprep.subr.bf16.mxu0 %v6897_v51  ;;  %4278 = vmatprep.subr.bf16.mxu1 %v6900_v52  ;;  %v750_v51 = vpop.f32.mrb[13].mxu1  ;;  %v8220_v52 = vadd.f32 %v748_v45, %v242_v44  ;;  %v6991_v44 = vld [vmem:[#allocation8 + $0x5c0] ss:$16 sps:$4 sm:$0xff]   ;;  %v6994_v45 = vld [vmem:[#allocation8 + $0x5c8] ss:$16 sps:$4 sm:$0xff]  }
 0x1c0   :  { %v752_v54 = vpop.f32.mrb[14].mxu1  ;;  %v8222_v56 = vadd.f32 %v750_v51, %v246_v50  ;;  %v6997_v51 = vld [vmem:[#allocation8 + $0x5e0] ss:$16 sps:$4 sm:$0xff]  }
 0x1c1   :  { %v7000_v54 = vld [vmem:[#allocation8 + $0x5e8] ss:$16 sps:$4 sm:$0xff]  }
 0x1c2   :  { %3951 = vmatpush1.bf16.msra.mxu0 %v6895_v58  ;;  %4279 = vmatpush1.bf16.msra.mxu1 %v6898_v59  ;;  %v753_v58 = vpop.f32.mrb[15].mxu1  ;;  %v6945_v59 = vld [vmem:[#allocation8 + $0x4c4] ss:$16 sps:$4 sm:$0xff]  }
 0x1c3   :  { %3952 = vmatprep.subr.bf16.mxu0 %v6903_v62  ;;  %4280 = vmatprep.subr.bf16.mxu1 %v6906_v1  ;;  %v6948_v62 = vld [vmem:[#allocation8 + $0x4cc] ss:$16 sps:$4 sm:$0xff]   ;;  %v6943_v1 = vld [vmem:[#allocation8 + $0x4c0] ss:$16 sps:$4 sm:$0xff]  }
 0x1c6   :  { %3953 = vmatpush1.bf16.msra.mxu0 %v6901_v8  ;;  %4281 = vmatpush1.bf16.msra.mxu1 %v6904_v61  ;;  %v6957_v8 = vld [vmem:[#allocation8 + $0x504] ss:$16 sps:$4 sm:$0xff]   ;;  %v6960_v61 = vld [vmem:[#allocation8 + $0x50c] ss:$16 sps:$4 sm:$0xff]  }
 0x1c7   :  { %3963 = vmatprep.subr.bf16.mxu0 %v6909_v18  ;;  %4291 = vmatprep.subr.bf16.mxu1 %v6912_v10  ;;  %v6955_v18 = vld [vmem:[#allocation8 + $0x500] ss:$16 sps:$4 sm:$0xff]   ;;  %v6958_v10 = vld [vmem:[#allocation8 + $0x508] ss:$16 sps:$4 sm:$0xff]  }
 0x1c9   :  { %3955 = vmatmul.mubr.bf16.vlgmr.msra.gmra.mrb[16].mxu0 %v773_v15  ;;  %4283 = vmatmul.mubr.bf16.vlgmr.msra.gmra.mrb[16].mxu1 %v773_v15  ;;  %v6964_v15 = vld [vmem:[#allocation8 + $0x528] ss:$16 sps:$4 sm:$0xff]  }
 0x1ca   :  { %3964 = vmatpush1.bf16.msra.mxu0 %v6907_v11  ;;  %4292 = vmatpush1.bf16.msra.mxu1 %v6910_v13  ;;  %v6963_v11 = vld [vmem:[#allocation8 + $0x524] ss:$16 sps:$4 sm:$0xff]   ;;  %v6966_v13 = vld [vmem:[#allocation8 + $0x52c] ss:$16 sps:$4 sm:$0xff]  }
 0x1cb   :  { %3965 = vmatprep.subr.bf16.mxu0 %v6915_v16  ;;  %4293 = vmatprep.subr.bf16.mxu1 %v6918_v35  ;;  %v6969_v16 = vld [vmem:[#allocation8 + $0x544] ss:$16 sps:$4 sm:$0xff]   ;;  %v6972_v35 = vld [vmem:[#allocation8 + $0x54c] ss:$16 sps:$4 sm:$0xff]  }
 0x1cc   :  { %3995 = vmatprep.mubr.bf16.mxu0 %v776_v20  ;;  %4323 = vmatprep.mubr.bf16.mxu1 %v776_v20  ;;  %v6975_v20 = vld [vmem:[#allocation8 + $0x564] ss:$16 sps:$4 sm:$0xff]  }
 0x1ce   :  { %3966 = vmatpush1.bf16.msra.mxu0 %v6913_v17  ;;  %4294 = vmatpush1.bf16.msra.mxu1 %v6916_v19  ;;  %v6967_v17 = vld [vmem:[#allocation8 + $0x540] ss:$16 sps:$4 sm:$0xff]   ;;  %v6970_v19 = vld [vmem:[#allocation8 + $0x548] ss:$16 sps:$4 sm:$0xff]  }
 0x1cf   :  { %3967 = vmatprep.subr.bf16.mxu0 %v6921_v21  ;;  %4295 = vmatprep.subr.bf16.mxu1 %v6924_v22  ;;  %v6978_v21 = vld [vmem:[#allocation8 + $0x56c] ss:$16 sps:$4 sm:$0xff]   ;;  %v6973_v22 = vld [vmem:[#allocation8 + $0x560] ss:$16 sps:$4 sm:$0xff]  }
 0x1d2   :  { %3968 = vmatpush1.bf16.msra.mxu0 %v6919_v23  ;;  %4296 = vmatpush1.bf16.msra.mxu1 %v6922_v24  ;;  %v6976_v23 = vld [vmem:[#allocation8 + $0x568] ss:$16 sps:$4 sm:$0xff]   ;;  %v6981_v24 = vld [vmem:[#allocation8 + $0x584] ss:$16 sps:$4 sm:$0xff]  }
 0x1d3   :  { %3969 = vmatprep.subr.bf16.mxu0 %v6927_v25  ;;  %4297 = vmatprep.subr.bf16.mxu1 %v6930_v26  ;;  %v6984_v25 = vld [vmem:[#allocation8 + $0x58c] ss:$16 sps:$4 sm:$0xff]   ;;  %v6979_v26 = vld [vmem:[#allocation8 + $0x580] ss:$16 sps:$4 sm:$0xff]  }
 0x1d6   :  { %3970 = vmatpush1.bf16.msra.mxu0 %v6925_v28  ;;  %4298 = vmatpush1.bf16.msra.mxu1 %v6928_v29  ;;  %v6982_v28 = vld [vmem:[#allocation8 + $0x588] ss:$16 sps:$4 sm:$0xff]   ;;  %v6987_v29 = vld [vmem:[#allocation8 + $0x5a4] ss:$16 sps:$4 sm:$0xff]  }
 0x1d7   :  { %3971 = vmatprep.subr.bf16.mxu0 %v6933_v33  ;;  %4299 = vmatprep.subr.bf16.mxu1 %v6936_v36  ;;  %v6988_v33 = vld [vmem:[#allocation8 + $0x5a8] ss:$16 sps:$4 sm:$0xff]   ;;  %v8224_v36 = vld [vmem:[#allocation7] sm:$0xff] }
 0x1da   :  { %3972 = vmatpush1.bf16.msra.mxu0 %v6931_v37  ;;  %4300 = vmatpush1.bf16.msra.mxu1 %v6934_v38  ;;  %v202_v37 = vrot.slane %v8224_v36, %v201_v55  ;;  %v6993_v38 = vld [vmem:[#allocation8 + $0x5c4] ss:$16 sps:$4 sm:$0xff]   ;;  %v7002_v55 = vld [vmem:[#allocation8 + $0x5ec] ss:$16 sps:$4 sm:$0xff]  }
 0x1db   :  { %3973 = vmatprep.subr.bf16.mxu0 %v6939_v42  ;;  %4301 = vmatprep.subr.bf16.mxu1 %v6942_v43  ;;  %v6996_v42 = vld [vmem:[#allocation8 + $0x5cc] ss:$16 sps:$4 sm:$0xff]  }
 0x1dc   :  { %v544_v43 = vadd.f32 %v8172_v34, %v202_v37  ;;  %v7005_v34 = vld [vmem:[#allocation8 + $0x604] ss:$16 sps:$4 sm:$0xff]  }
 0x1dd   :  { %v7053_v37 = vld [vmem:[#allocation8 + $0x704] ss:$16 sps:$4 sm:$0xff]  }
 0x1de   :  { %3974 = vmatpush1.bf16.msra.mxu0 %v6937_v47  ;;  %4302 = vmatpush1.bf16.msra.mxu1 %v6940_v48  ;;  %v214_v47 = vrot.slane %v8224_v36, %v213_v40  ;;  %v6999_v48 = vld [vmem:[#allocation8 + $0x5e4] ss:$16 sps:$4 sm:$0xff]   ;;  %v759_v50 = vmax.f32 %v544_v43, 0.0  ;;  %v7003_v40 = vld [vmem:[#allocation8 + $0x600] ss:$16 sps:$4 sm:$0xff]  }
 0x1df   :  { %3975 = vmatprep.subr.bf16.mxu0 %v6945_v59  ;;  %4303 = vmatprep.subr.bf16.mxu1 %v6948_v62  ;;  %v7008_v59 = vld [vmem:[#allocation8 + $0x60c] ss:$16 sps:$4 sm:$0xff]   ;;  %v7054_v43 = vld [vmem:[#allocation8 + $0x708] ss:$16 sps:$4 sm:$0xff]  }
 0x1e0   :  { %v587_v58 = vadd.f32 %v8205_v60, %v214_v47  ;;  %v7009_v60 = vld [vmem:[#allocation8 + $0x620] ss:$16 sps:$4 sm:$0xff]  }
 0x1e1   :  { %v7057_v47 = vld [vmem:[#allocation8 + $0x720] ss:$16 sps:$4 sm:$0xff]  }
 0x1e2   :  { %3976 = vmatpush1.bf16.msra.mxu0 %v6943_v1  ;;  %4304 = vmatpush1.bf16.msra.mxu1 %v6946_v2  ;;  %v762_v62 = vmax.f32 %v587_v58, 0.0  ;;  %v775_v1 = vpack.c.bf16 %v759_v50, %v759_v50  ;;  %v7006_v2 = vld [vmem:[#allocation8 + $0x608] ss:$16 sps:$4 sm:$0xff]   ;;  %v7068_v50 = vld [vmem:[#allocation8 + $0x74c] ss:$16 sps:$4 sm:$0xff]  }
 0x1e3   :  { %3977 = vmatprep.subr.bf16.mxu0 %v6951_v57  ;;  %4305 = vmatprep.subr.bf16.mxu1 %v6954_v3  ;;  %v7011_v57 = vld [vmem:[#allocation8 + $0x624] ss:$16 sps:$4 sm:$0xff]   ;;  %v7014_v3 = vld [vmem:[#allocation8 + $0x62c] ss:$16 sps:$4 sm:$0xff]  }
 0x1e4   :  { %v7071_v58 = vld [vmem:[#allocation8 + $0x764] ss:$16 sps:$4 sm:$0xff]  }
 0x1e6   :  { %3978 = vmatpush1.bf16.msra.mxu0 %v6949_v4  ;;  %4306 = vmatpush1.bf16.msra.mxu1 %v6952_v5  ;;  %v778_v4 = vpack.c.bf16 %v762_v62, %v762_v62  ;;  %v7012_v5 = vld [vmem:[#allocation8 + $0x628] ss:$16 sps:$4 sm:$0xff]  }
 0x1e7   :  { %3979 = vmatprep.subr.bf16.mxu0 %v6957_v8  ;;  %4307 = vmatprep.subr.bf16.mxu1 %v6960_v61  ;;  %v7017_v8 = vld [vmem:[#allocation8 + $0x644] ss:$16 sps:$4 sm:$0xff]   ;;  %v7020_v61 = vld [vmem:[#allocation8 + $0x64c] ss:$16 sps:$4 sm:$0xff]   ;;  %v7072_v62 = vld [vmem:[#allocation8 + $0x768] ss:$16 sps:$4 sm:$0xff]  }
 0x1ea   :  { %3980 = vmatpush1.bf16.msra.mxu0 %v6955_v18  ;;  %4308 = vmatpush1.bf16.msra.mxu1 %v6958_v10  ;;  %v7015_v18 = vld [vmem:[#allocation8 + $0x640] ss:$16 sps:$4 sm:$0xff]   ;;  %v7018_v10 = vld [vmem:[#allocation8 + $0x648] ss:$16 sps:$4 sm:$0xff]  }
 0x1eb   :  { %3981 = vmatprep.subr.bf16.mxu0 %v6963_v11  ;;  %4309 = vmatprep.subr.bf16.mxu1 %v6966_v13  ;;  %v7023_v11 = vld [vmem:[#allocation8 + $0x664] ss:$16 sps:$4 sm:$0xff]   ;;  %v7026_v13 = vld [vmem:[#allocation8 + $0x66c] ss:$16 sps:$4 sm:$0xff]  }
 0x1ee   :  { %3982 = vmatpush1.bf16.msra.mxu0 %v6961_v14  ;;  %4310 = vmatpush1.bf16.msra.mxu1 %v6964_v15  ;;  %v7021_v14 = vld [vmem:[#allocation8 + $0x660] ss:$16 sps:$4 sm:$0xff]   ;;  %v7024_v15 = vld [vmem:[#allocation8 + $0x668] ss:$16 sps:$4 sm:$0xff]  }
 0x1ef   :  { %3983 = vmatprep.subr.bf16.mxu0 %v6969_v16  ;;  %4311 = vmatprep.subr.bf16.mxu1 %v6972_v35  ;;  %v7029_v16 = vld [vmem:[#allocation8 + $0x684] ss:$16 sps:$4 sm:$0xff]   ;;  %v7032_v35 = vld [vmem:[#allocation8 + $0x68c] ss:$16 sps:$4 sm:$0xff]  }
 0x1f2   :  { %3984 = vmatpush1.bf16.msra.mxu0 %v6967_v17  ;;  %4312 = vmatpush1.bf16.msra.mxu1 %v6970_v19  ;;  %v7027_v17 = vld [vmem:[#allocation8 + $0x680] ss:$16 sps:$4 sm:$0xff]   ;;  %v7030_v19 = vld [vmem:[#allocation8 + $0x688] ss:$16 sps:$4 sm:$0xff]  }
 0x1f3   :  { %3985 = vmatprep.subr.bf16.mxu0 %v6975_v20  ;;  %4313 = vmatprep.subr.bf16.mxu1 %v6978_v21  ;;  %v7035_v20 = vld [vmem:[#allocation8 + $0x6a4] ss:$16 sps:$4 sm:$0xff]   ;;  %v7038_v21 = vld [vmem:[#allocation8 + $0x6ac] ss:$16 sps:$4 sm:$0xff]  }
 0x1f6   :  { %3986 = vmatpush1.bf16.msra.mxu0 %v6973_v22  ;;  %4314 = vmatpush1.bf16.msra.mxu1 %v6976_v23  ;;  %v7033_v22 = vld [vmem:[#allocation8 + $0x6a0] ss:$16 sps:$4 sm:$0xff]   ;;  %v7036_v23 = vld [vmem:[#allocation8 + $0x6a8] ss:$16 sps:$4 sm:$0xff]  }
 0x1f7   :  { %3987 = vmatprep.subr.bf16.mxu0 %v6981_v24  ;;  %4315 = vmatprep.subr.bf16.mxu1 %v6984_v25  ;;  %v7041_v24 = vld [vmem:[#allocation8 + $0x6c4] ss:$16 sps:$4 sm:$0xff]   ;;  %v7044_v25 = vld [vmem:[#allocation8 + $0x6cc] ss:$16 sps:$4 sm:$0xff]  }
 0x1fa   :  { %3988 = vmatpush1.bf16.msra.mxu0 %v6979_v26  ;;  %4316 = vmatpush1.bf16.msra.mxu1 %v6982_v28  ;;  %v7039_v26 = vld [vmem:[#allocation8 + $0x6c0] ss:$16 sps:$4 sm:$0xff]   ;;  %v7042_v28 = vld [vmem:[#allocation8 + $0x6c8] ss:$16 sps:$4 sm:$0xff]  }
 0x1fb   :  { %3989 = vmatprep.subr.bf16.mxu0 %v6987_v29  ;;  %4317 = vmatprep.subr.bf16.mxu1 %v6990_v31  ;;  %v7047_v29 = vld [vmem:[#allocation8 + $0x6e4] ss:$16 sps:$4 sm:$0xff]   ;;  %v7050_v31 = vld [vmem:[#allocation8 + $0x6ec] ss:$16 sps:$4 sm:$0xff]  }
 0x1fe   :  { %3990 = vmatpush1.bf16.msra.mxu0 %v6985_v32  ;;  %4318 = vmatpush1.bf16.msra.mxu1 %v6988_v33  ;;  %v7045_v32 = vld [vmem:[#allocation8 + $0x6e0] ss:$16 sps:$4 sm:$0xff]   ;;  %v7048_v33 = vld [vmem:[#allocation8 + $0x6e8] ss:$16 sps:$4 sm:$0xff]  }
 0x1ff   :  { %3991 = vmatprep.subr.bf16.mxu0 %v6993_v38  ;;  %4319 = vmatprep.subr.bf16.mxu1 %v6996_v42  ;;  %v7056_v38 = vld [vmem:[#allocation8 + $0x70c] ss:$16 sps:$4 sm:$0xff]   ;;  %v7051_v42 = vld [vmem:[#allocation8 + $0x700] ss:$16 sps:$4 sm:$0xff]  }
 0x202   :  { %3992 = vmatpush1.bf16.msra.mxu0 %v6991_v44  ;;  %4320 = vmatpush1.bf16.msra.mxu1 %v6994_v45  ;;  %v7059_v44 = vld [vmem:[#allocation8 + $0x724] ss:$16 sps:$4 sm:$0xff]   ;;  %v7062_v45 = vld [vmem:[#allocation8 + $0x72c] ss:$16 sps:$4 sm:$0xff]  }
 0x203   :  { %3993 = vmatprep.subr.bf16.mxu0 %v6999_v48  ;;  %4321 = vmatprep.subr.bf16.mxu1 %v7002_v55  ;;  %v7060_v48 = vld [vmem:[#allocation8 + $0x728] ss:$16 sps:$4 sm:$0xff]   ;;  %v7065_v55 = vld [vmem:[#allocation8 + $0x744] ss:$16 sps:$4 sm:$0xff]  }
 0x206   :  { %3994 = vmatpush1.bf16.msra.mxu0 %v6997_v51  ;;  %4322 = vmatpush1.bf16.msra.mxu1 %v7000_v54  ;;  %v7063_v51 = vld [vmem:[#allocation8 + $0x740] ss:$16 sps:$4 sm:$0xff]   ;;  %v7066_v54 = vld [vmem:[#allocation8 + $0x748] ss:$16 sps:$4 sm:$0xff]  }
 0x207   :  { %4004 = vmatprep.subr.bf16.mxu0 %v7005_v34  ;;  %4332 = vmatprep.subr.bf16.mxu1 %v7008_v59  ;;  %v7074_v34 = vld [vmem:[#allocation8 + $0x76c] ss:$16 sps:$4 sm:$0xff]   ;;  %v7069_v59 = vld [vmem:[#allocation8 + $0x760] ss:$16 sps:$4 sm:$0xff]  }
 0x209   :  { %3996 = vmatmul.mubr.bf16.vlgmr.msra.gmra.mrb[16].mxu0 %v775_v1  ;;  %4324 = vmatmul.mubr.bf16.vlgmr.msra.gmra.mrb[16].mxu1 %v775_v1  ;;  %v7077_v1 = vld [vmem:[#allocation8 + $0x784] ss:$16 sps:$4 sm:$0xff]  }
 0x20a   :  { %4005 = vmatpush1.bf16.msra.mxu0 %v7003_v40  ;;  %4333 = vmatpush1.bf16.msra.mxu1 %v7006_v2  ;;  %v7080_v40 = vld [vmem:[#allocation8 + $0x78c] ss:$16 sps:$4 sm:$0xff]   ;;  %v7075_v2 = vld [vmem:[#allocation8 + $0x780] ss:$16 sps:$4 sm:$0xff]  }
 0x20b   :  { %4006 = vmatprep.subr.bf16.mxu0 %v7011_v57  ;;  %4334 = vmatprep.subr.bf16.mxu1 %v7014_v3  ;;  %v7078_v57 = vld [vmem:[#allocation8 + $0x788] ss:$16 sps:$4 sm:$0xff]   ;;  %v7083_v3 = vld [vmem:[#allocation8 + $0x7a4] ss:$16 sps:$4 sm:$0xff]  }
 0x20c   :  { %4036 = vmatprep.mubr.bf16.mxu0 %v778_v4  ;;  %4364 = vmatprep.mubr.bf16.mxu1 %v778_v4  ;;  %v7086_v4 = vld [vmem:[#allocation8 + $0x7ac] ss:$16 sps:$4 sm:$0xff]  }
 0x20e   :  { %4007 = vmatpush1.bf16.msra.mxu0 %v7009_v60  ;;  %4335 = vmatpush1.bf16.msra.mxu1 %v7012_v5  ;;  %v210_v60 = vrot.slane %v8224_v36, %v209_v39  ;;  %v7081_v5 = vld [vmem:[#allocation8 + $0x7a0] ss:$16 sps:$4 sm:$0xff]   ;;  %v7095_v39 = vld [vmem:[#allocation8 + $0x7e4] ss:$16 sps:$4 sm:$0xff]   ;;  %v7098_v36 = vld [vmem:[#allocation8 + $0x7ec] ss:$16 sps:$4 sm:$0xff]  }
 0x20f   :  { %4008 = vmatprep.subr.bf16.mxu0 %v7017_v8  ;;  %4336 = vmatprep.subr.bf16.mxu1 %v7020_v61  ;;  %v7084_v8 = vld [vmem:[#allocation8 + $0x7a8] ss:$16 sps:$4 sm:$0xff]   ;;  %v7089_v61 = vld [vmem:[#allocation8 + $0x7c4] ss:$16 sps:$4 sm:$0xff]  }
 0x212   :  { %4009 = vmatpush1.bf16.msra.mxu0 %v7015_v18  ;;  %4337 = vmatpush1.bf16.msra.mxu1 %v7018_v10  ;;  %v7092_v18 = vld [vmem:[#allocation8 + $0x7cc] ss:$16 sps:$4 sm:$0xff]  }
 0x213   :  { %4010 = vmatprep.subr.bf16.mxu0 %v7023_v11  ;;  %4338 = vmatprep.subr.bf16.mxu1 %v7026_v13  ;;  %v8237_v10 = vld [vmem:[#allocation7 + $0x8] sm:$0xff]  ;;  %v585_v13 = vadd.f32 %v8199_v53, %v210_v60  ;;  %v7147_v60 = vld [vmem:[#allocation8 + $0x900] ss:$16 sps:$4 sm:$0xff]  }
 0x214   :  { %v222_v11 = vrot.slane %v8237_v10, %v8159_v9 }
 0x216   :  { %4011 = vmatpush1.bf16.msra.mxu0 %v7021_v14  ;;  %4339 = vmatpush1.bf16.msra.mxu1 %v7024_v15  ;;  %v7090_v14 = vld [vmem:[#allocation8 + $0x7c8] ss:$16 sps:$4 sm:$0xff]   ;;  %v628_v15 = vadd.f32 %v8178_v49, %v222_v11  ;;  %v7110_v49 = vld [vmem:[#allocation8 + $0x82c] ss:$16 sps:$4 sm:$0xff]  }
 0x217   :  { %4012 = vmatprep.subr.bf16.mxu0 %v7029_v16  ;;  %4340 = vmatprep.subr.bf16.mxu1 %v7032_v35  ;;  %v761_v16 = vmax.f32 %v585_v13, 0.0  ;;  %v7093_v35 = vld [vmem:[#allocation8 + $0x7e0] ss:$16 sps:$4 sm:$0xff]   ;;  %v7156_v11 = vld [vmem:[#allocation8 + $0x928] ss:$16 sps:$4 sm:$0xff]  }
 0x218   :  { %v764_v53 = vmax.f32 %v628_v15, 0.0  ;;  %v7161_v13 = vld [vmem:[#allocation8 + $0x944] ss:$16 sps:$4 sm:$0xff]   ;;  %v7170_v15 = vld [vmem:[#allocation8 + $0x96c] ss:$16 sps:$4 sm:$0xff]  }
 0x21a   :  { %4013 = vmatpush1.bf16.msra.mxu0 %v7027_v17  ;;  %4341 = vmatpush1.bf16.msra.mxu1 %v7030_v19  ;;  %v7096_v17 = vld [vmem:[#allocation8 + $0x7e8] ss:$16 sps:$4 sm:$0xff]   ;;  %v7101_v19 = vld [vmem:[#allocation8 + $0x804] ss:$16 sps:$4 sm:$0xff]  }
 0x21b   :  { %4014 = vmatprep.subr.bf16.mxu0 %v7035_v20  ;;  %4342 = vmatprep.subr.bf16.mxu1 %v7038_v21  ;;  %v7104_v20 = vld [vmem:[#allocation8 + $0x80c] ss:$16 sps:$4 sm:$0xff]   ;;  %v777_v21 = vpack.c.bf16 %v761_v16, %v761_v16  ;;  %v7165_v16 = vld [vmem:[#allocation8 + $0x960] ss:$16 sps:$4 sm:$0xff]  }
 0x21e   :  { %4015 = vmatpush1.bf16.msra.mxu0 %v7033_v22  ;;  %4343 = vmatpush1.bf16.msra.mxu1 %v7036_v23  ;;  %v7099_v22 = vld [vmem:[#allocation8 + $0x800] ss:$16 sps:$4 sm:$0xff]   ;;  %v7102_v23 = vld [vmem:[#allocation8 + $0x808] ss:$16 sps:$4 sm:$0xff]  }
 0x21f   :  { %4016 = vmatprep.subr.bf16.mxu0 %v7041_v24  ;;  %4344 = vmatprep.subr.bf16.mxu1 %v7044_v25  ;;  %v780_v24 = vpack.c.bf16 %v764_v53, %v764_v53  ;;  %v7107_v25 = vld [vmem:[#allocation8 + $0x824] ss:$16 sps:$4 sm:$0xff]   ;;  %v7174_v53 = vld [vmem:[#allocation8 + $0x988] ss:$16 sps:$4 sm:$0xff]  }
 0x222   :  { %4017 = vmatpush1.bf16.msra.mxu0 %v7039_v26  ;;  %4345 = vmatpush1.bf16.msra.mxu1 %v7042_v28  ;;  %v7105_v26 = vld [vmem:[#allocation8 + $0x820] ss:$16 sps:$4 sm:$0xff]   ;;  %v7108_v28 = vld [vmem:[#allocation8 + $0x828] ss:$16 sps:$4 sm:$0xff]  }
 0x223   :  { %4018 = vmatprep.subr.bf16.mxu0 %v7047_v29  ;;  %4346 = vmatprep.subr.bf16.mxu1 %v7050_v31  ;;  %v7113_v29 = vld [vmem:[#allocation8 + $0x844] ss:$16 sps:$4 sm:$0xff]   ;;  %v7116_v31 = vld [vmem:[#allocation8 + $0x84c] ss:$16 sps:$4 sm:$0xff]  }
 0x226   :  { %4019 = vmatpush1.bf16.msra.mxu0 %v7045_v32  ;;  %4347 = vmatpush1.bf16.msra.mxu1 %v7048_v33  ;;  %v7111_v32 = vld [vmem:[#allocation8 + $0x840] ss:$16 sps:$4 sm:$0xff]   ;;  %v7114_v33 = vld [vmem:[#allocation8 + $0x848] ss:$16 sps:$4 sm:$0xff]  }
 0x227   :  { %4020 = vmatprep.subr.bf16.mxu0 %v7053_v37  ;;  %4348 = vmatprep.subr.bf16.mxu1 %v7056_v38  ;;  %v7119_v37 = vld [vmem:[#allocation8 + $0x864] ss:$16 sps:$4 sm:$0xff]   ;;  %v7122_v38 = vld [vmem:[#allocation8 + $0x86c] ss:$16 sps:$4 sm:$0xff]  }
 0x22a   :  { %4021 = vmatpush1.bf16.msra.mxu0 %v7051_v42  ;;  %4349 = vmatpush1.bf16.msra.mxu1 %v7054_v43  ;;  %v7117_v42 = vld [vmem:[#allocation8 + $0x860] ss:$16 sps:$4 sm:$0xff]   ;;  %v7120_v43 = vld [vmem:[#allocation8 + $0x868] ss:$16 sps:$4 sm:$0xff]  }
 0x22b   :  { %4022 = vmatprep.subr.bf16.mxu0 %v7059_v44  ;;  %4350 = vmatprep.subr.bf16.mxu1 %v7062_v45  ;;  %v7125_v44 = vld [vmem:[#allocation8 + $0x884] ss:$16 sps:$4 sm:$0xff]   ;;  %v7128_v45 = vld [vmem:[#allocation8 + $0x88c] ss:$16 sps:$4 sm:$0xff]  }
 0x22e   :  { %4023 = vmatpush1.bf16.msra.mxu0 %v7057_v47  ;;  %4351 = vmatpush1.bf16.msra.mxu1 %v7060_v48  ;;  %v7123_v47 = vld [vmem:[#allocation8 + $0x880] ss:$16 sps:$4 sm:$0xff]   ;;  %v7126_v48 = vld [vmem:[#allocation8 + $0x888] ss:$16 sps:$4 sm:$0xff]  }
 0x22f   :  { %4024 = vmatprep.subr.bf16.mxu0 %v7065_v55  ;;  %4352 = vmatprep.subr.bf16.mxu1 %v7068_v50  ;;  %v7131_v55 = vld [vmem:[#allocation8 + $0x8a4] ss:$16 sps:$4 sm:$0xff]   ;;  %v7134_v50 = vld [vmem:[#allocation8 + $0x8ac] ss:$16 sps:$4 sm:$0xff]  }
 0x232   :  { %4025 = vmatpush1.bf16.msra.mxu0 %v7063_v51  ;;  %4353 = vmatpush1.bf16.msra.mxu1 %v7066_v54  ;;  %v7129_v51 = vld [vmem:[#allocation8 + $0x8a0] ss:$16 sps:$4 sm:$0xff]   ;;  %v7132_v54 = vld [vmem:[#allocation8 + $0x8a8] ss:$16 sps:$4 sm:$0xff]  }
 0x233   :  { %4026 = vmatprep.subr.bf16.mxu0 %v7071_v58  ;;  %4354 = vmatprep.subr.bf16.mxu1 %v7074_v34  ;;  %v7137_v58 = vld [vmem:[#allocation8 + $0x8c4] ss:$16 sps:$4 sm:$0xff]   ;;  %v7140_v34 = vld [vmem:[#allocation8 + $0x8cc] ss:$16 sps:$4 sm:$0xff]  }
 0x236   :  { %4027 = vmatpush1.bf16.msra.mxu0 %v7069_v59  ;;  %4355 = vmatpush1.bf16.msra.mxu1 %v7072_v62  ;;  %v7135_v59 = vld [vmem:[#allocation8 + $0x8c0] ss:$16 sps:$4 sm:$0xff]   ;;  %v7138_v62 = vld [vmem:[#allocation8 + $0x8c8] ss:$16 sps:$4 sm:$0xff]  }
 0x237   :  { %4028 = vmatprep.subr.bf16.mxu0 %v7077_v1  ;;  %4356 = vmatprep.subr.bf16.mxu1 %v7080_v40  ;;  %v7143_v1 = vld [vmem:[#allocation8 + $0x8e4] ss:$16 sps:$4 sm:$0xff]   ;;  %v7146_v40 = vld [vmem:[#allocation8 + $0x8ec] ss:$16 sps:$4 sm:$0xff]  }
 0x23a   :  { %4029 = vmatpush1.bf16.msra.mxu0 %v7075_v2  ;;  %4357 = vmatpush1.bf16.msra.mxu1 %v7078_v57  ;;  %v7141_v2 = vld [vmem:[#allocation8 + $0x8e0] ss:$16 sps:$4 sm:$0xff]   ;;  %v7144_v57 = vld [vmem:[#allocation8 + $0x8e8] ss:$16 sps:$4 sm:$0xff]  }
 0x23b   :  { %4030 = vmatprep.subr.bf16.mxu0 %v7083_v3  ;;  %4358 = vmatprep.subr.bf16.mxu1 %v7086_v4  ;;  %v7149_v3 = vld [vmem:[#allocation8 + $0x904] ss:$16 sps:$4 sm:$0xff]   ;;  %v7152_v4 = vld [vmem:[#allocation8 + $0x90c] ss:$16 sps:$4 sm:$0xff]  }
 0x23e   :  { %4031 = vmatpush1.bf16.msra.mxu0 %v7081_v5  ;;  %4359 = vmatpush1.bf16.msra.mxu1 %v7084_v8  ;;  %v7150_v5 = vld [vmem:[#allocation8 + $0x908] ss:$16 sps:$4 sm:$0xff]   ;;  %v7155_v8 = vld [vmem:[#allocation8 + $0x924] ss:$16 sps:$4 sm:$0xff]  }
 0x23f   :  { %4032 = vmatprep.subr.bf16.mxu0 %v7089_v61  ;;  %4360 = vmatprep.subr.bf16.mxu1 %v7092_v18  ;;  %v7158_v61 = vld [vmem:[#allocation8 + $0x92c] ss:$16 sps:$4 sm:$0xff]   ;;  %v7153_v18 = vld [vmem:[#allocation8 + $0x920] ss:$16 sps:$4 sm:$0xff]  }
 0x242   :  { %4033 = vmatpush1.bf16.msra.mxu0 %v7087_v6  ;;  %4361 = vmatpush1.bf16.msra.mxu1 %v7090_v14  ;;  %v7164_v6 = vld [vmem:[#allocation8 + $0x94c] ss:$16 sps:$4 sm:$0xff]   ;;  %v7159_v14 = vld [vmem:[#allocation8 + $0x940] ss:$16 sps:$4 sm:$0xff]  }
 0x243   :  { %4034 = vmatprep.subr.bf16.mxu0 %v7095_v39  ;;  %4362 = vmatprep.subr.bf16.mxu1 %v7098_v36  ;;  %v7162_v39 = vld [vmem:[#allocation8 + $0x948] ss:$16 sps:$4 sm:$0xff]   ;;  %v7167_v36 = vld [vmem:[#allocation8 + $0x964] ss:$16 sps:$4 sm:$0xff]  }
 0x246   :  { %4035 = vmatpush1.bf16.msra.mxu0 %v7093_v35  ;;  %4363 = vmatpush1.bf16.msra.mxu1 %v7096_v17  ;;  %v7168_v35 = vld [vmem:[#allocation8 + $0x968] ss:$16 sps:$4 sm:$0xff]   ;;  %v7173_v17 = vld [vmem:[#allocation8 + $0x984] ss:$16 sps:$4 sm:$0xff]  }
 0x247   :  { %4045 = vmatprep.subr.bf16.mxu0 %v7101_v19  ;;  %4373 = vmatprep.subr.bf16.mxu1 %v7104_v20  ;;  %v7176_v19 = vld [vmem:[#allocation8 + $0x98c] ss:$16 sps:$4 sm:$0xff]   ;;  %v7171_v20 = vld [vmem:[#allocation8 + $0x980] ss:$16 sps:$4 sm:$0xff]  }
 0x249   :  { %4037 = vmatmul.mubr.bf16.vlgmr.msra.gmra.mrb[16].mxu0 %v777_v21  ;;  %4365 = vmatmul.mubr.bf16.vlgmr.msra.gmra.mrb[16].mxu1 %v777_v21  ;;  %v7179_v21 = vld [vmem:[#allocation8 + $0x9a4] ss:$16 sps:$4 sm:$0xff]  }
 0x24a   :  { %4046 = vmatpush1.bf16.msra.mxu0 %v7099_v22  ;;  %4077 = vmatprep.mubr.bf16.mxu0 %v780_v24  ;;  %v7182_v22 = vld [vmem:[#allocation8 + $0x9ac] ss:$16 sps:$4 sm:$0xff]  }
 0x24b   :  { %4374 = vmatpush1.bf16.msra.mxu1 %v7102_v23  ;;  %4405 = vmatprep.mubr.bf16.mxu1 %v780_v24  ;;  %v7177_v23 = vld [vmem:[#allocation8 + $0x9a0] ss:$16 sps:$4 sm:$0xff]   ;;  %v218_v24 = vrot.slane %v8237_v10, %v8154_v7 }
 0x24c   :  { %4047 = vmatprep.subr.bf16.mxu0 %v7107_v25  ;;  %4375 = vmatprep.subr.bf16.mxu1 %v7110_v49  ;;  %v7180_v25 = vld [vmem:[#allocation8 + $0x9a8] ss:$16 sps:$4 sm:$0xff]   ;;  %v7185_v49 = vld [vmem:[#allocation8 + $0x9c4] ss:$16 sps:$4 sm:$0xff]  }
 0x24e   :  { %4048 = vmatpush1.bf16.msra.mxu0 %v7105_v26  ;;  %v7188_v26 = vld [vmem:[#allocation8 + $0x9cc] ss:$16 sps:$4 sm:$0xff]  }
 0x24f   :  { %4376 = vmatpush1.bf16.msra.mxu1 %v7108_v28  ;;  %4049 = vmatprep.subr.bf16.mxu0 %v7113_v29  ;;  %v230_v28 = vrot.slane %v8237_v10, %v8162_v0  ;;  %v7183_v29 = vld [vmem:[#allocation8 + $0x9c0] ss:$16 sps:$4 sm:$0xff]  }
 0x250   :  { %4377 = vmatprep.subr.bf16.mxu1 %v7116_v31  ;;  %v626_v31 = vadd.f32 %v8176_v46, %v218_v24  ;;  %v7195_v46 = vld [vmem:[#allocation8 + $0xa00] ss:$16 sps:$4 sm:$0xff]   ;;  %v7254_v24 = vld [vmem:[#allocation8 + $0xb2c] ss:$16 sps:$4 sm:$0xff]  }
 0x252   :  { %4050 = vmatpush1.bf16.msra.mxu0 %v7111_v32  ;;  %v7186_v32 = vld [vmem:[#allocation8 + $0x9c8] ss:$16 sps:$4 sm:$0xff]  }
 0x253   :  { %4378 = vmatpush1.bf16.msra.mxu1 %v7114_v33  ;;  %4051 = vmatprep.subr.bf16.mxu0 %v7119_v37  ;;  %v7191_v33 = vld [vmem:[#allocation8 + $0x9e4] ss:$16 sps:$4 sm:$0xff]   ;;  %v7194_v37 = vld [vmem:[#allocation8 + $0x9ec] ss:$16 sps:$4 sm:$0xff]  }
 0x254   :  { %4379 = vmatprep.subr.bf16.mxu1 %v7122_v38  ;;  %v669_v38 = vadd.f32 %v8210_v30, %v230_v28  ;;  %v7206_v30 = vld [vmem:[#allocation8 + $0xa2c] ss:$16 sps:$4 sm:$0xff]  }
 0x255   :  { %v7260_v28 = vld [vmem:[#allocation8 + $0xb4c] ss:$16 sps:$4 sm:$0xff]  }
 0x256   :  { %4052 = vmatpush1.bf16.msra.mxu0 %v7117_v42  ;;  %v7189_v42 = vld [vmem:[#allocation8 + $0x9e0] ss:$16 sps:$4 sm:$0xff]  }
 0x257   :  { %4380 = vmatpush1.bf16.msra.mxu1 %v7120_v43  ;;  %4053 = vmatprep.subr.bf16.mxu0 %v7125_v44  ;;  %v763_v43 = vmax.f32 %v626_v31, 0.0  ;;  %v7192_v44 = vld [vmem:[#allocation8 + $0x9e8] ss:$16 sps:$4 sm:$0xff]  }
 0x258   :  { %4381 = vmatprep.subr.bf16.mxu1 %v7128_v45  ;;  %v7197_v45 = vld [vmem:[#allocation8 + $0xa04] ss:$16 sps:$4 sm:$0xff]   ;;  %v7258_v31 = vld [vmem:[#allocation8 + $0xb48] ss:$16 sps:$4 sm:$0xff]  }
 0x25a   :  { %4054 = vmatpush1.bf16.msra.mxu0 %v7123_v47  ;;  %v7200_v47 = vld [vmem:[#allocation8 + $0xa0c] ss:$16 sps:$4 sm:$0xff]  }
 0x25b   :  { %4382 = vmatpush1.bf16.msra.mxu1 %v7126_v48  ;;  %4055 = vmatprep.subr.bf16.mxu0 %v7131_v55  ;;  %v766_v48 = vmax.f32 %v669_v38, 0.0  ;;  %v779_v55 = vpack.c.bf16 %v763_v43, %v763_v43  ;;  %v7264_v38 = vld [vmem:[#allocation8 + $0xb68] ss:$16 sps:$4 sm:$0xff]   ;;  %v7272_v43 = vld [vmem:[#allocation8 + $0xb8c] ss:$16 sps:$4 sm:$0xff]  }
 0x25c   :  { %4383 = vmatprep.subr.bf16.mxu1 %v7134_v50  ;;  %v7198_v50 = vld [vmem:[#allocation8 + $0xa08] ss:$16 sps:$4 sm:$0xff]  }
 0x25e   :  { %4056 = vmatpush1.bf16.msra.mxu0 %v7129_v51  ;;  %v7203_v51 = vld [vmem:[#allocation8 + $0xa24] ss:$16 sps:$4 sm:$0xff]  }
 0x25f   :  { %4384 = vmatpush1.bf16.msra.mxu1 %v7132_v54  ;;  %4057 = vmatprep.subr.bf16.mxu0 %v7137_v58  ;;  %v782_v54 = vpack.c.bf16 %v766_v48, %v766_v48  ;;  %v7201_v58 = vld [vmem:[#allocation8 + $0xa20] ss:$16 sps:$4 sm:$0xff]   ;;  %v7278_v48 = vld [vmem:[#allocation8 + $0xbac] ss:$16 sps:$4 sm:$0xff]  }
 0x260   :  { %4385 = vmatprep.subr.bf16.mxu1 %v7140_v34  ;;  %v7204_v34 = vld [vmem:[#allocation8 + $0xa28] ss:$16 sps:$4 sm:$0xff]  }
 0x262   :  { %4058 = vmatpush1.bf16.msra.mxu0 %v7135_v59  ;;  %v7209_v59 = vld [vmem:[#allocation8 + $0xa44] ss:$16 sps:$4 sm:$0xff]  }
 0x263   :  { %4386 = vmatpush1.bf16.msra.mxu1 %v7138_v62  ;;  %4059 = vmatprep.subr.bf16.mxu0 %v7143_v1  ;;  %v7212_v62 = vld [vmem:[#allocation8 + $0xa4c] ss:$16 sps:$4 sm:$0xff]   ;;  %v7207_v1 = vld [vmem:[#allocation8 + $0xa40] ss:$16 sps:$4 sm:$0xff]  }
 0x264   :  { %4387 = vmatprep.subr.bf16.mxu1 %v7146_v40  ;;  %v7210_v40 = vld [vmem:[#allocation8 + $0xa48] ss:$16 sps:$4 sm:$0xff]  }
 0x266   :  { %4060 = vmatpush1.bf16.msra.mxu0 %v7141_v2  ;;  %v7215_v2 = vld [vmem:[#allocation8 + $0xa64] ss:$16 sps:$4 sm:$0xff]  }
 0x267   :  { %4388 = vmatpush1.bf16.msra.mxu1 %v7144_v57  ;;  %4061 = vmatprep.subr.bf16.mxu0 %v7149_v3  ;;  %v7218_v57 = vld [vmem:[#allocation8 + $0xa6c] ss:$16 sps:$4 sm:$0xff]   ;;  %v7213_v3 = vld [vmem:[#allocation8 + $0xa60] ss:$16 sps:$4 sm:$0xff]  }
 0x268   :  { %4389 = vmatprep.subr.bf16.mxu1 %v7152_v4  ;;  %v7216_v4 = vld [vmem:[#allocation8 + $0xa68] ss:$16 sps:$4 sm:$0xff]  }
 0x26a   :  { %4062 = vmatpush1.bf16.msra.mxu0 %v7147_v60  ;;  %v7221_v60 = vld [vmem:[#allocation8 + $0xa84] ss:$16 sps:$4 sm:$0xff]  }
 0x26b   :  { %4390 = vmatpush1.bf16.msra.mxu1 %v7150_v5  ;;  %4063 = vmatprep.subr.bf16.mxu0 %v7155_v8  ;;  %v7224_v5 = vld [vmem:[#allocation8 + $0xa8c] ss:$16 sps:$4 sm:$0xff]   ;;  %v7219_v8 = vld [vmem:[#allocation8 + $0xa80] ss:$16 sps:$4 sm:$0xff]  }
 0x26c   :  { %4391 = vmatprep.subr.bf16.mxu1 %v7158_v61  ;;  %v7222_v61 = vld [vmem:[#allocation8 + $0xa88] ss:$16 sps:$4 sm:$0xff]  }
 0x26e   :  { %4064 = vmatpush1.bf16.msra.mxu0 %v7153_v18  ;;  %v7227_v18 = vld [vmem:[#allocation8 + $0xaa4] ss:$16 sps:$4 sm:$0xff]  }
 0x26f   :  { %4392 = vmatpush1.bf16.msra.mxu1 %v7156_v11  ;;  %4065 = vmatprep.subr.bf16.mxu0 %v7161_v13  ;;  %v7230_v11 = vld [vmem:[#allocation8 + $0xaac] ss:$16 sps:$4 sm:$0xff]   ;;  %v7225_v13 = vld [vmem:[#allocation8 + $0xaa0] ss:$16 sps:$4 sm:$0xff]  }
 0x270   :  { %4393 = vmatprep.subr.bf16.mxu1 %v7164_v6  ;;  %v7228_v6 = vld [vmem:[#allocation8 + $0xaa8] ss:$16 sps:$4 sm:$0xff]  }
 0x272   :  { %4066 = vmatpush1.bf16.msra.mxu0 %v7159_v14  ;;  %v7233_v14 = vld [vmem:[#allocation8 + $0xac4] ss:$16 sps:$4 sm:$0xff]  }
 0x273   :  { %4394 = vmatpush1.bf16.msra.mxu1 %v7162_v39  ;;  %4067 = vmatprep.subr.bf16.mxu0 %v7167_v36  ;;  %v7236_v39 = vld [vmem:[#allocation8 + $0xacc] ss:$16 sps:$4 sm:$0xff]   ;;  %v7231_v36 = vld [vmem:[#allocation8 + $0xac0] ss:$16 sps:$4 sm:$0xff]  }
 0x274   :  { %4395 = vmatprep.subr.bf16.mxu1 %v7170_v15  ;;  %v7234_v15 = vld [vmem:[#allocation8 + $0xac8] ss:$16 sps:$4 sm:$0xff]  }
 0x276   :  { %4068 = vmatpush1.bf16.msra.mxu0 %v7165_v16  ;;  %v7239_v16 = vld [vmem:[#allocation8 + $0xae4] ss:$16 sps:$4 sm:$0xff]  }
 0x277   :  { %4396 = vmatpush1.bf16.msra.mxu1 %v7168_v35  ;;  %4069 = vmatprep.subr.bf16.mxu0 %v7173_v17  ;;  %v7242_v35 = vld [vmem:[#allocation8 + $0xaec] ss:$16 sps:$4 sm:$0xff]   ;;  %v7237_v17 = vld [vmem:[#allocation8 + $0xae0] ss:$16 sps:$4 sm:$0xff]  }
 0x278   :  { %4397 = vmatprep.subr.bf16.mxu1 %v7176_v19  ;;  %v7240_v19 = vld [vmem:[#allocation8 + $0xae8] ss:$16 sps:$4 sm:$0xff]  }
 0x27a   :  { %4070 = vmatpush1.bf16.msra.mxu0 %v7171_v20  ;;  %v7245_v20 = vld [vmem:[#allocation8 + $0xb04] ss:$16 sps:$4 sm:$0xff]  }
 0x27b   :  { %4398 = vmatpush1.bf16.msra.mxu1 %v7174_v53  ;;  %4071 = vmatprep.subr.bf16.mxu0 %v7179_v21  ;;  %v7248_v53 = vld [vmem:[#allocation8 + $0xb0c] ss:$16 sps:$4 sm:$0xff]   ;;  %v7243_v21 = vld [vmem:[#allocation8 + $0xb00] ss:$16 sps:$4 sm:$0xff]  }
 0x27c   :  { %4399 = vmatprep.subr.bf16.mxu1 %v7182_v22  ;;  %v7246_v22 = vld [vmem:[#allocation8 + $0xb08] ss:$16 sps:$4 sm:$0xff]  }
 0x27e   :  { %4072 = vmatpush1.bf16.msra.mxu0 %v7177_v23  ;;  %v7251_v23 = vld [vmem:[#allocation8 + $0xb24] ss:$16 sps:$4 sm:$0xff]  }
 0x27f   :  { %4400 = vmatpush1.bf16.msra.mxu1 %v7180_v25  ;;  %4073 = vmatprep.subr.bf16.mxu0 %v7185_v49  ;;  %v7249_v25 = vld [vmem:[#allocation8 + $0xb20] ss:$16 sps:$4 sm:$0xff]   ;;  %v7252_v49 = vld [vmem:[#allocation8 + $0xb28] ss:$16 sps:$4 sm:$0xff]  }
 0x280   :  { %4401 = vmatprep.subr.bf16.mxu1 %v7188_v26  ;;  %v7257_v26 = vld [vmem:[#allocation8 + $0xb44] ss:$16 sps:$4 sm:$0xff]  }
 0x282   :  { %4074 = vmatpush1.bf16.msra.mxu0 %v7183_v29  ;;  %v7255_v29 = vld [vmem:[#allocation8 + $0xb40] ss:$16 sps:$4 sm:$0xff]  }
 0x283   :  { %4402 = vmatpush1.bf16.msra.mxu1 %v7186_v32  ;;  %4075 = vmatprep.subr.bf16.mxu0 %v7191_v33  ;;  %v7263_v32 = vld [vmem:[#allocation8 + $0xb64] ss:$16 sps:$4 sm:$0xff]   ;;  %v7266_v33 = vld [vmem:[#allocation8 + $0xb6c] ss:$16 sps:$4 sm:$0xff]  }
 0x284   :  { %4403 = vmatprep.subr.bf16.mxu1 %v7194_v37  ;;  %v7261_v37 = vld [vmem:[#allocation8 + $0xb60] ss:$16 sps:$4 sm:$0xff]  }
 0x286   :  { %4076 = vmatpush1.bf16.msra.mxu0 %v7189_v42  ;;  %v7269_v42 = vld [vmem:[#allocation8 + $0xb84] ss:$16 sps:$4 sm:$0xff]  }
 0x287   :  { %4404 = vmatpush1.bf16.msra.mxu1 %v7192_v44  ;;  %4086 = vmatprep.subr.bf16.mxu0 %v7197_v45  ;;  %v7267_v44 = vld [vmem:[#allocation8 + $0xb80] ss:$16 sps:$4 sm:$0xff]   ;;  %v7270_v45 = vld [vmem:[#allocation8 + $0xb88] ss:$16 sps:$4 sm:$0xff]  }
 0x288   :  { %4414 = vmatprep.subr.bf16.mxu1 %v7200_v47  ;;  %v7275_v47 = vld [vmem:[#allocation8 + $0xba4] ss:$16 sps:$4 sm:$0xff]  }
 0x289   :  { %4078 = vmatmul.mubr.bf16.vlgmr.msra.gmra.mrb[16].mxu0 %v779_v55 }
 0x28a   :  { %4406 = vmatmul.mubr.bf16.vlgmr.msra.gmra.mrb[16].mxu1 %v779_v55  ;;  %4087 = vmatpush1.bf16.msra.mxu0 %v7195_v46  ;;  %v7273_v46 = vld [vmem:[#allocation8 + $0xba0] ss:$16 sps:$4 sm:$0xff]   ;;  %v226_v55 = vrot.slane %v8237_v10, %v8195_v41  ;;  %v7288_v10 = vld [vmem:[#allocation8 + $0xbe8] ss:$16 sps:$4 sm:$0xff]  }
 0x28b   :  { %4118 = vmatprep.mubr.bf16.mxu0 %v782_v54  ;;  %4415 = vmatpush1.bf16.msra.mxu1 %v7198_v50  ;;  %v7276_v50 = vld [vmem:[#allocation8 + $0xba8] ss:$16 sps:$4 sm:$0xff]  }
 0x28c   :  { %4446 = vmatprep.mubr.bf16.mxu1 %v782_v54  ;;  %4088 = vmatprep.subr.bf16.mxu0 %v7203_v51  ;;  %v7281_v51 = vld [vmem:[#allocation8 + $0xbc4] ss:$16 sps:$4 sm:$0xff]   ;;  %v7284_v54 = vld [vmem:[#allocation8 + $0xbcc] ss:$16 sps:$4 sm:$0xff]  }
 0x28d   :  { %4416 = vmatprep.subr.bf16.mxu1 %v7206_v30  ;;  %v7279_v30 = vld [vmem:[#allocation8 + $0xbc0] ss:$16 sps:$4 sm:$0xff]  }
 0x28e   :  { %4089 = vmatpush1.bf16.msra.mxu0 %v7201_v58  ;;  %v667_v58 = vadd.f32 %v8208_v27, %v226_v55  ;;  %v7351_v55 = vld [vmem:[#allocation8 + $0xd40] ss:$16 sps:$4 sm:$0xff]  }
 0x28f   :  { %4417 = vmatpush1.bf16.msra.mxu1 %v7204_v34  ;;  %4090 = vmatprep.subr.bf16.mxu0 %v7209_v59  ;;  %v7282_v34 = vld [vmem:[#allocation8 + $0xbc8] ss:$16 sps:$4 sm:$0xff]   ;;  %v7287_v59 = vld [vmem:[#allocation8 + $0xbe4] ss:$16 sps:$4 sm:$0xff]  }
 0x290   :  { %4418 = vmatprep.subr.bf16.mxu1 %v7212_v62  ;;  %v7290_v62 = vld [vmem:[#allocation8 + $0xbec] ss:$16 sps:$4 sm:$0xff]  }
 0x292   :  { %4091 = vmatpush1.bf16.msra.mxu0 %v7207_v1  ;;  %v7285_v1 = vld [vmem:[#allocation8 + $0xbe0] ss:$16 sps:$4 sm:$0xff]  }
 0x293   :  { %4419 = vmatpush1.bf16.msra.mxu1 %v7210_v40  ;;  %4092 = vmatprep.subr.bf16.mxu0 %v7215_v2  ;;  %v765_v40 = vmax.f32 %v667_v58, 0.0  ;;  %v7293_v2 = vld [vmem:[#allocation8 + $0xc04] ss:$16 sps:$4 sm:$0xff]   ;;  %v7360_v58 = vld [vmem:[#allocation8 + $0xd68] ss:$16 sps:$4 sm:$0xff]  }
 0x294   :  { %4420 = vmatprep.subr.bf16.mxu1 %v7218_v57  ;;  %v7296_v57 = vld [vmem:[#allocation8 + $0xc0c] ss:$16 sps:$4 sm:$0xff]  }
 0x295   :  { %v781_v27 = vpack.c.bf16 %v765_v40, %v765_v40  ;;  %v7371_v40 = vld [vmem:[#allocation8 + $0xda4] ss:$16 sps:$4 sm:$0xff]  }
 0x296   :  { %4093 = vmatpush1.bf16.msra.mxu0 %v7213_v3  ;;  %v768_v3 = vmax.f32 %v8192_v12, 0.0  ;;  %v7308_v12 = vld [vmem:[#allocation8 + $0xc4c] ss:$16 sps:$4 sm:$0xff]  }
 0x297   :  { %4421 = vmatpush1.bf16.msra.mxu1 %v7216_v4  ;;  %4094 = vmatprep.subr.bf16.mxu0 %v7221_v60  ;;  %v7291_v4 = vld [vmem:[#allocation8 + $0xc00] ss:$16 sps:$4 sm:$0xff]   ;;  %v7294_v60 = vld [vmem:[#allocation8 + $0xc08] ss:$16 sps:$4 sm:$0xff]  }
 0x298   :  { %4422 = vmatprep.subr.bf16.mxu1 %v7224_v5  ;;  %v7299_v5 = vld [vmem:[#allocation8 + $0xc24] ss:$16 sps:$4 sm:$0xff]  }
 0x29a   :  { %4095 = vmatpush1.bf16.msra.mxu0 %v7219_v8  ;;  %v784_v8 = vpack.c.bf16 %v768_v3, %v768_v3  ;;  %v7377_v3 = vld [vmem:[#allocation8 + $0xdc4] ss:$16 sps:$4 sm:$0xff]  }
 0x29b   :  { %4423 = vmatpush1.bf16.msra.mxu1 %v7222_v61  ;;  %4096 = vmatprep.subr.bf16.mxu0 %v7227_v18  ;;  %v7302_v61 = vld [vmem:[#allocation8 + $0xc2c] ss:$16 sps:$4 sm:$0xff]   ;;  %v7297_v18 = vld [vmem:[#allocation8 + $0xc20] ss:$16 sps:$4 sm:$0xff]  }
 0x29c   :  { %4424 = vmatprep.subr.bf16.mxu1 %v7230_v11  ;;  %v7300_v11 = vld [vmem:[#allocation8 + $0xc28] ss:$16 sps:$4 sm:$0xff]  }
 0x29e   :  { %4097 = vmatpush1.bf16.msra.mxu0 %v7225_v13  ;;  %v7305_v13 = vld [vmem:[#allocation8 + $0xc44] ss:$16 sps:$4 sm:$0xff]  }
 0x29f   :  { %4425 = vmatpush1.bf16.msra.mxu1 %v7228_v6  ;;  %4098 = vmatprep.subr.bf16.mxu0 %v7233_v14  ;;  %v7303_v6 = vld [vmem:[#allocation8 + $0xc40] ss:$16 sps:$4 sm:$0xff]   ;;  %v7306_v14 = vld [vmem:[#allocation8 + $0xc48] ss:$16 sps:$4 sm:$0xff]  }
 0x2a0   :  { %4426 = vmatprep.subr.bf16.mxu1 %v7236_v39  ;;  %v7311_v39 = vld [vmem:[#allocation8 + $0xc64] ss:$16 sps:$4 sm:$0xff]  }
 0x2a2   :  { %4099 = vmatpush1.bf16.msra.mxu0 %v7231_v36  ;;  %v7314_v36 = vld [vmem:[#allocation8 + $0xc6c] ss:$16 sps:$4 sm:$0xff]  }
 0x2a3   :  { %4427 = vmatpush1.bf16.msra.mxu1 %v7234_v15  ;;  %4100 = vmatprep.subr.bf16.mxu0 %v7239_v16  ;;  %v7309_v15 = vld [vmem:[#allocation8 + $0xc60] ss:$16 sps:$4 sm:$0xff]   ;;  %v7312_v16 = vld [vmem:[#allocation8 + $0xc68] ss:$16 sps:$4 sm:$0xff]  }
 0x2a4   :  { %4428 = vmatprep.subr.bf16.mxu1 %v7242_v35  ;;  %v7317_v35 = vld [vmem:[#allocation8 + $0xc84] ss:$16 sps:$4 sm:$0xff]  }
 0x2a6   :  { %4101 = vmatpush1.bf16.msra.mxu0 %v7237_v17  ;;  %v7320_v17 = vld [vmem:[#allocation8 + $0xc8c] ss:$16 sps:$4 sm:$0xff]  }
 0x2a7   :  { %4429 = vmatpush1.bf16.msra.mxu1 %v7240_v19  ;;  %4102 = vmatprep.subr.bf16.mxu0 %v7245_v20  ;;  %v7315_v19 = vld [vmem:[#allocation8 + $0xc80] ss:$16 sps:$4 sm:$0xff]   ;;  %v7318_v20 = vld [vmem:[#allocation8 + $0xc88] ss:$16 sps:$4 sm:$0xff]  }
 0x2a8   :  { %4430 = vmatprep.subr.bf16.mxu1 %v7248_v53  ;;  %v7323_v53 = vld [vmem:[#allocation8 + $0xca4] ss:$16 sps:$4 sm:$0xff]  }
 0x2aa   :  { %4103 = vmatpush1.bf16.msra.mxu0 %v7243_v21  ;;  %v7326_v21 = vld [vmem:[#allocation8 + $0xcac] ss:$16 sps:$4 sm:$0xff]  }
 0x2ab   :  { %4431 = vmatpush1.bf16.msra.mxu1 %v7246_v22  ;;  %4104 = vmatprep.subr.bf16.mxu0 %v7251_v23  ;;  %v7321_v22 = vld [vmem:[#allocation8 + $0xca0] ss:$16 sps:$4 sm:$0xff]   ;;  %v7324_v23 = vld [vmem:[#allocation8 + $0xca8] ss:$16 sps:$4 sm:$0xff]  }
 0x2ac   :  { %4432 = vmatprep.subr.bf16.mxu1 %v7254_v24  ;;  %v7329_v24 = vld [vmem:[#allocation8 + $0xcc4] ss:$16 sps:$4 sm:$0xff]  }
 0x2ae   :  { %4105 = vmatpush1.bf16.msra.mxu0 %v7249_v25  ;;  %v7332_v25 = vld [vmem:[#allocation8 + $0xccc] ss:$16 sps:$4 sm:$0xff]  }
 0x2af   :  { %4433 = vmatpush1.bf16.msra.mxu1 %v7252_v49  ;;  %4106 = vmatprep.subr.bf16.mxu0 %v7257_v26  ;;  %v7327_v49 = vld [vmem:[#allocation8 + $0xcc0] ss:$16 sps:$4 sm:$0xff]   ;;  %v7330_v26 = vld [vmem:[#allocation8 + $0xcc8] ss:$16 sps:$4 sm:$0xff]  }
 0x2b0   :  { %4434 = vmatprep.subr.bf16.mxu1 %v7260_v28  ;;  %v7335_v28 = vld [vmem:[#allocation8 + $0xce4] ss:$16 sps:$4 sm:$0xff]  }
 0x2b2   :  { %4107 = vmatpush1.bf16.msra.mxu0 %v7255_v29  ;;  %v7338_v29 = vld [vmem:[#allocation8 + $0xcec] ss:$16 sps:$4 sm:$0xff]  }
 0x2b3   :  { %4435 = vmatpush1.bf16.msra.mxu1 %v7258_v31  ;;  %4108 = vmatprep.subr.bf16.mxu0 %v7263_v32  ;;  %v7333_v31 = vld [vmem:[#allocation8 + $0xce0] ss:$16 sps:$4 sm:$0xff]   ;;  %v7336_v32 = vld [vmem:[#allocation8 + $0xce8] ss:$16 sps:$4 sm:$0xff]  }
 0x2b4   :  { %4436 = vmatprep.subr.bf16.mxu1 %v7266_v33  ;;  %v7341_v33 = vld [vmem:[#allocation8 + $0xd04] ss:$16 sps:$4 sm:$0xff]  }
 0x2b6   :  { %4109 = vmatpush1.bf16.msra.mxu0 %v7261_v37  ;;  %v7344_v37 = vld [vmem:[#allocation8 + $0xd0c] ss:$16 sps:$4 sm:$0xff]  }
 0x2b7   :  { %4437 = vmatpush1.bf16.msra.mxu1 %v7264_v38  ;;  %4110 = vmatprep.subr.bf16.mxu0 %v7269_v42  ;;  %v7339_v38 = vld [vmem:[#allocation8 + $0xd00] ss:$16 sps:$4 sm:$0xff]   ;;  %v7342_v42 = vld [vmem:[#allocation8 + $0xd08] ss:$16 sps:$4 sm:$0xff]  }
 0x2b8   :  { %4438 = vmatprep.subr.bf16.mxu1 %v7272_v43  ;;  %v7347_v43 = vld [vmem:[#allocation8 + $0xd24] ss:$16 sps:$4 sm:$0xff]  }
 0x2ba   :  { %4111 = vmatpush1.bf16.msra.mxu0 %v7267_v44  ;;  %v7350_v44 = vld [vmem:[#allocation8 + $0xd2c] ss:$16 sps:$4 sm:$0xff]  }
 0x2bb   :  { %4439 = vmatpush1.bf16.msra.mxu1 %v7270_v45  ;;  %4112 = vmatprep.subr.bf16.mxu0 %v7275_v47  ;;  %v7345_v45 = vld [vmem:[#allocation8 + $0xd20] ss:$16 sps:$4 sm:$0xff]   ;;  %v7348_v47 = vld [vmem:[#allocation8 + $0xd28] ss:$16 sps:$4 sm:$0xff]  }
 0x2bc   :  { %4440 = vmatprep.subr.bf16.mxu1 %v7278_v48  ;;  %v7353_v48 = vld [vmem:[#allocation8 + $0xd44] ss:$16 sps:$4 sm:$0xff]  }
 0x2be   :  { %4113 = vmatpush1.bf16.msra.mxu0 %v7273_v46  ;;  %v7356_v46 = vld [vmem:[#allocation8 + $0xd4c] ss:$16 sps:$4 sm:$0xff]  }
 0x2bf   :  { %4441 = vmatpush1.bf16.msra.mxu1 %v7276_v50  ;;  %4114 = vmatprep.subr.bf16.mxu0 %v7281_v51  ;;  %v7354_v50 = vld [vmem:[#allocation8 + $0xd48] ss:$16 sps:$4 sm:$0xff]   ;;  %v7359_v51 = vld [vmem:[#allocation8 + $0xd64] ss:$16 sps:$4 sm:$0xff]  }
 0x2c0   :  { %4442 = vmatprep.subr.bf16.mxu1 %v7284_v54  ;;  %v7362_v54 = vld [vmem:[#allocation8 + $0xd6c] ss:$16 sps:$4 sm:$0xff]  }
 0x2c2   :  { %4115 = vmatpush1.bf16.msra.mxu0 %v7279_v30  ;;  %v7357_v30 = vld [vmem:[#allocation8 + $0xd60] ss:$16 sps:$4 sm:$0xff]  }
 0x2c3   :  { %4443 = vmatpush1.bf16.msra.mxu1 %v7282_v34  ;;  %4116 = vmatprep.subr.bf16.mxu0 %v7287_v59  ;;  %v7365_v34 = vld [vmem:[#allocation8 + $0xd84] ss:$16 sps:$4 sm:$0xff]   ;;  %v7368_v59 = vld [vmem:[#allocation8 + $0xd8c] ss:$16 sps:$4 sm:$0xff]  }
 0x2c4   :  { %4444 = vmatprep.subr.bf16.mxu1 %v7290_v62  ;;  %v7363_v62 = vld [vmem:[#allocation8 + $0xd80] ss:$16 sps:$4 sm:$0xff]  }
 0x2c6   :  { %4117 = vmatpush1.bf16.msra.mxu0 %v7285_v1  ;;  %v7366_v1 = vld [vmem:[#allocation8 + $0xd88] ss:$16 sps:$4 sm:$0xff]  }
 0x2c7   :  { %4445 = vmatpush1.bf16.msra.mxu1 %v7288_v10  ;;  %4127 = vmatprep.subr.bf16.mxu0 %v7293_v2  ;;  %v7374_v10 = vld [vmem:[#allocation8 + $0xdac] ss:$16 sps:$4 sm:$0xff]   ;;  %v7369_v2 = vld [vmem:[#allocation8 + $0xda0] ss:$16 sps:$4 sm:$0xff]  }
 0x2c8   :  { %4455 = vmatprep.subr.bf16.mxu1 %v7296_v57  ;;  %v7372_v57 = vld [vmem:[#allocation8 + $0xda8] ss:$16 sps:$4 sm:$0xff]  }
 0x2c9   :  { %4119 = vmatmul.mubr.bf16.vlgmr.msra.gmra.mrb[16].mxu0 %v781_v27 }
 0x2ca   :  { %4447 = vmatmul.mubr.bf16.vlgmr.msra.gmra.mrb[16].mxu1 %v781_v27  ;;  %4128 = vmatpush1.bf16.msra.mxu0 %v7291_v4  ;;  %v7380_v4 = vld [vmem:[#allocation8 + $0xdcc] ss:$16 sps:$4 sm:$0xff]   ;;  %v7375_v27 = vld [vmem:[#allocation8 + $0xdc0] ss:$16 sps:$4 sm:$0xff]  }
 0x2cb   :  { %4159 = vmatprep.mubr.bf16.mxu0 %v784_v8  ;;  %4456 = vmatpush1.bf16.msra.mxu1 %v7294_v60  ;;  %v7378_v60 = vld [vmem:[#allocation8 + $0xdc8] ss:$16 sps:$4 sm:$0xff]  }
 0x2cc   :  { %4487 = vmatprep.mubr.bf16.mxu1 %v784_v8  ;;  %4129 = vmatprep.subr.bf16.mxu0 %v7299_v5  ;;  %v7383_v5 = vld [vmem:[#allocation8 + $0xde4] ss:$16 sps:$4 sm:$0xff]   ;;  %v7386_v8 = vld [vmem:[#allocation8 + $0xdec] ss:$16 sps:$4 sm:$0xff]  }
 0x2cd   :  { %4457 = vmatprep.subr.bf16.mxu1 %v7302_v61  ;;  %v7381_v61 = vld [vmem:[#allocation8 + $0xde0] ss:$16 sps:$4 sm:$0xff]  }
 0x2ce   :  { %4130 = vmatpush1.bf16.msra.mxu0 %v7297_v18  ;;  %v767_v18 = vmax.f32 %v8187_v63, 0.0  ;;  %v7393_v63 = vld [vmem:[#allocation8 + $0xe20] ss:$16 sps:$4 sm:$0xff]  }
 0x2cf   :  { %4458 = vmatpush1.bf16.msra.mxu1 %v7300_v11  ;;  %4131 = vmatprep.subr.bf16.mxu0 %v7305_v13  ;;  %v7384_v11 = vld [vmem:[#allocation8 + $0xde8] ss:$16 sps:$4 sm:$0xff]   ;;  %v7389_v13 = vld [vmem:[#allocation8 + $0xe04] ss:$16 sps:$4 sm:$0xff]  }
 0x2d0   :  { %4459 = vmatprep.subr.bf16.mxu1 %v7308_v12  ;;  %v7392_v12 = vld [vmem:[#allocation8 + $0xe0c] ss:$16 sps:$4 sm:$0xff]  }
 0x2d2   :  { %4132 = vmatpush1.bf16.msra.mxu0 %v7303_v6  ;;  %v770_v6 = vmax.f32 %v8222_v56, 0.0  ;;  %v7404_v56 = vld [vmem:[#allocation8 + $0xe4c] ss:$16 sps:$4 sm:$0xff]  }
 0x2d3   :  { %4460 = vmatpush1.bf16.msra.mxu1 %v7306_v14  ;;  %4133 = vmatprep.subr.bf16.mxu0 %v7311_v39  ;;  %v7387_v14 = vld [vmem:[#allocation8 + $0xe00] ss:$16 sps:$4 sm:$0xff]   ;;  %v783_v39 = vpack.c.bf16 %v767_v18, %v767_v18 }
 0x2d4   :  { %4461 = vmatprep.subr.bf16.mxu1 %v7314_v36  ;;  %v7390_v36 = vld [vmem:[#allocation8 + $0xe08] ss:$16 sps:$4 sm:$0xff]   ;;  %v7465_v18 = vld [vmem:[#allocation8 + $0xfa0] ss:$16 sps:$4 sm:$0xff]  }
 0x2d6   :  { %4134 = vmatpush1.bf16.msra.mxu0 %v7309_v15  ;;  %v7395_v15 = vld [vmem:[#allocation8 + $0xe24] ss:$16 sps:$4 sm:$0xff]  }
 0x2d7   :  { %4462 = vmatpush1.bf16.msra.mxu1 %v7312_v16  ;;  %4135 = vmatprep.subr.bf16.mxu0 %v7317_v35  ;;  %v786_v16 = vpack.c.bf16 %v770_v6, %v770_v6  ;;  %v7398_v35 = vld [vmem:[#allocation8 + $0xe2c] ss:$16 sps:$4 sm:$0xff]   ;;  %v7471_v6 = vld [vmem:[#allocation8 + $0xfc0] ss:$16 sps:$4 sm:$0xff]  }
 0x2d8   :  { %4463 = vmatprep.subr.bf16.mxu1 %v7320_v17  ;;  %v7396_v17 = vld [vmem:[#allocation8 + $0xe28] ss:$16 sps:$4 sm:$0xff]  }
 0x2da   :  { %4136 = vmatpush1.bf16.msra.mxu0 %v7315_v19  ;;  %v7401_v19 = vld [vmem:[#allocation8 + $0xe44] ss:$16 sps:$4 sm:$0xff]  }
 0x2db   :  { %4464 = vmatpush1.bf16.msra.mxu1 %v7318_v20  ;;  %4137 = vmatprep.subr.bf16.mxu0 %v7323_v53  ;;  %v7399_v20 = vld [vmem:[#allocation8 + $0xe40] ss:$16 sps:$4 sm:$0xff]   ;;  %v7402_v53 = vld [vmem:[#allocation8 + $0xe48] ss:$16 sps:$4 sm:$0xff]  }
 0x2dc   :  { %4465 = vmatprep.subr.bf16.mxu1 %v7326_v21  ;;  %v7407_v21 = vld [vmem:[#allocation8 + $0xe64] ss:$16 sps:$4 sm:$0xff]  }
 0x2de   :  { %4138 = vmatpush1.bf16.msra.mxu0 %v7321_v22  ;;  %v7410_v22 = vld [vmem:[#allocation8 + $0xe6c] ss:$16 sps:$4 sm:$0xff]  }
 0x2df   :  { %4466 = vmatpush1.bf16.msra.mxu1 %v7324_v23  ;;  %4139 = vmatprep.subr.bf16.mxu0 %v7329_v24  ;;  %v7405_v23 = vld [vmem:[#allocation8 + $0xe60] ss:$16 sps:$4 sm:$0xff]   ;;  %v7408_v24 = vld [vmem:[#allocation8 + $0xe68] ss:$16 sps:$4 sm:$0xff]  }
 0x2e0   :  { %4467 = vmatprep.subr.bf16.mxu1 %v7332_v25  ;;  %v7413_v25 = vld [vmem:[#allocation8 + $0xe84] ss:$16 sps:$4 sm:$0xff]  }
 0x2e2   :  { %4140 = vmatpush1.bf16.msra.mxu0 %v7327_v49  ;;  %v7416_v49 = vld [vmem:[#allocation8 + $0xe8c] ss:$16 sps:$4 sm:$0xff]  }
 0x2e3   :  { %4468 = vmatpush1.bf16.msra.mxu1 %v7330_v26  ;;  %4141 = vmatprep.subr.bf16.mxu0 %v7335_v28  ;;  %v7411_v26 = vld [vmem:[#allocation8 + $0xe80] ss:$16 sps:$4 sm:$0xff]   ;;  %v7414_v28 = vld [vmem:[#allocation8 + $0xe88] ss:$16 sps:$4 sm:$0xff]  }
 0x2e4   :  { %4469 = vmatprep.subr.bf16.mxu1 %v7338_v29  ;;  %v7419_v29 = vld [vmem:[#allocation8 + $0xea4] ss:$16 sps:$4 sm:$0xff]  }
 0x2e6   :  { %4142 = vmatpush1.bf16.msra.mxu0 %v7333_v31  ;;  %v7422_v31 = vld [vmem:[#allocation8 + $0xeac] ss:$16 sps:$4 sm:$0xff]  }
 0x2e7   :  { %4470 = vmatpush1.bf16.msra.mxu1 %v7336_v32  ;;  %4143 = vmatprep.subr.bf16.mxu0 %v7341_v33  ;;  %v7417_v32 = vld [vmem:[#allocation8 + $0xea0] ss:$16 sps:$4 sm:$0xff]   ;;  %v7420_v33 = vld [vmem:[#allocation8 + $0xea8] ss:$16 sps:$4 sm:$0xff]  }
 0x2e8   :  { %4471 = vmatprep.subr.bf16.mxu1 %v7344_v37  ;;  %v7425_v37 = vld [vmem:[#allocation8 + $0xec4] ss:$16 sps:$4 sm:$0xff]  }
 0x2ea   :  { %4144 = vmatpush1.bf16.msra.mxu0 %v7339_v38  ;;  %v7428_v38 = vld [vmem:[#allocation8 + $0xecc] ss:$16 sps:$4 sm:$0xff]  }
 0x2eb   :  { %4472 = vmatpush1.bf16.msra.mxu1 %v7342_v42  ;;  %4145 = vmatprep.subr.bf16.mxu0 %v7347_v43  ;;  %v7423_v42 = vld [vmem:[#allocation8 + $0xec0] ss:$16 sps:$4 sm:$0xff]   ;;  %v7426_v43 = vld [vmem:[#allocation8 + $0xec8] ss:$16 sps:$4 sm:$0xff]  }
 0x2ec   :  { %4473 = vmatprep.subr.bf16.mxu1 %v7350_v44  ;;  %v7431_v44 = vld [vmem:[#allocation8 + $0xee4] ss:$16 sps:$4 sm:$0xff]  }
 0x2ee   :  { %4146 = vmatpush1.bf16.msra.mxu0 %v7345_v45  ;;  %v7434_v45 = vld [vmem:[#allocation8 + $0xeec] ss:$16 sps:$4 sm:$0xff]  }
 0x2ef   :  { %4474 = vmatpush1.bf16.msra.mxu1 %v7348_v47  ;;  %4147 = vmatprep.subr.bf16.mxu0 %v7353_v48  ;;  %v7429_v47 = vld [vmem:[#allocation8 + $0xee0] ss:$16 sps:$4 sm:$0xff]   ;;  %v7432_v48 = vld [vmem:[#allocation8 + $0xee8] ss:$16 sps:$4 sm:$0xff]  }
 0x2f0   :  { %4475 = vmatprep.subr.bf16.mxu1 %v7356_v46  ;;  %v7437_v46 = vld [vmem:[#allocation8 + $0xf04] ss:$16 sps:$4 sm:$0xff]  }
 0x2f2   :  { %4148 = vmatpush1.bf16.msra.mxu0 %v7351_v55  ;;  %v7440_v55 = vld [vmem:[#allocation8 + $0xf0c] ss:$16 sps:$4 sm:$0xff]  }
 0x2f3   :  { %4476 = vmatpush1.bf16.msra.mxu1 %v7354_v50  ;;  %4149 = vmatprep.subr.bf16.mxu0 %v7359_v51  ;;  %v7435_v50 = vld [vmem:[#allocation8 + $0xf00] ss:$16 sps:$4 sm:$0xff]   ;;  %v7438_v51 = vld [vmem:[#allocation8 + $0xf08] ss:$16 sps:$4 sm:$0xff]  }
 0x2f4   :  { %4477 = vmatprep.subr.bf16.mxu1 %v7362_v54  ;;  %v7443_v54 = vld [vmem:[#allocation8 + $0xf24] ss:$16 sps:$4 sm:$0xff]  }
 0x2f6   :  { %4150 = vmatpush1.bf16.msra.mxu0 %v7357_v30  ;;  %v7446_v30 = vld [vmem:[#allocation8 + $0xf2c] ss:$16 sps:$4 sm:$0xff]  }
 0x2f7   :  { %4478 = vmatpush1.bf16.msra.mxu1 %v7360_v58  ;;  %4151 = vmatprep.subr.bf16.mxu0 %v7365_v34  ;;  %v7441_v58 = vld [vmem:[#allocation8 + $0xf20] ss:$16 sps:$4 sm:$0xff]   ;;  %v7444_v34 = vld [vmem:[#allocation8 + $0xf28] ss:$16 sps:$4 sm:$0xff]  }
 0x2f8   :  { %4479 = vmatprep.subr.bf16.mxu1 %v7368_v59  ;;  %v7449_v59 = vld [vmem:[#allocation8 + $0xf44] ss:$16 sps:$4 sm:$0xff]  }
 0x2fa   :  { %4152 = vmatpush1.bf16.msra.mxu0 %v7363_v62  ;;  %v7452_v62 = vld [vmem:[#allocation8 + $0xf4c] ss:$16 sps:$4 sm:$0xff]  }
 0x2fb   :  { %4480 = vmatpush1.bf16.msra.mxu1 %v7366_v1  ;;  %4153 = vmatprep.subr.bf16.mxu0 %v7371_v40  ;;  %v7447_v1 = vld [vmem:[#allocation8 + $0xf40] ss:$16 sps:$4 sm:$0xff]   ;;  %v7450_v40 = vld [vmem:[#allocation8 + $0xf48] ss:$16 sps:$4 sm:$0xff]  }
 0x2fc   :  { %4481 = vmatprep.subr.bf16.mxu1 %v7374_v10  ;;  %v7455_v10 = vld [vmem:[#allocation8 + $0xf64] ss:$16 sps:$4 sm:$0xff]  }
 0x2fe   :  { %4154 = vmatpush1.bf16.msra.mxu0 %v7369_v2  ;;  %v7458_v2 = vld [vmem:[#allocation8 + $0xf6c] ss:$16 sps:$4 sm:$0xff]  }
 0x2ff   :  { %4482 = vmatpush1.bf16.msra.mxu1 %v7372_v57  ;;  %4155 = vmatprep.subr.bf16.mxu0 %v7377_v3  ;;  %v7453_v57 = vld [vmem:[#allocation8 + $0xf60] ss:$16 sps:$4 sm:$0xff]   ;;  %v7456_v3 = vld [vmem:[#allocation8 + $0xf68] ss:$16 sps:$4 sm:$0xff]  }
 0x300   :  { %4483 = vmatprep.subr.bf16.mxu1 %v7380_v4  ;;  %v7461_v4 = vld [vmem:[#allocation8 + $0xf84] ss:$16 sps:$4 sm:$0xff]  }
 0x302   :  { %4156 = vmatpush1.bf16.msra.mxu0 %v7375_v27  ;;  %v7464_v27 = vld [vmem:[#allocation8 + $0xf8c] ss:$16 sps:$4 sm:$0xff]  }
 0x303   :  { %4484 = vmatpush1.bf16.msra.mxu1 %v7378_v60  ;;  %4157 = vmatprep.subr.bf16.mxu0 %v7383_v5  ;;  %v7459_v60 = vld [vmem:[#allocation8 + $0xf80] ss:$16 sps:$4 sm:$0xff]   ;;  %v7462_v5 = vld [vmem:[#allocation8 + $0xf88] ss:$16 sps:$4 sm:$0xff]  }
 0x304   :  { %4485 = vmatprep.subr.bf16.mxu1 %v7386_v8  ;;  %v7467_v8 = vld [vmem:[#allocation8 + $0xfa4] ss:$16 sps:$4 sm:$0xff]  }
 0x306   :  { %4158 = vmatpush1.bf16.msra.mxu0 %v7381_v61  ;;  %v7470_v61 = vld [vmem:[#allocation8 + $0xfac] ss:$16 sps:$4 sm:$0xff]  }
 0x307   :  { %4486 = vmatpush1.bf16.msra.mxu1 %v7384_v11  ;;  %4168 = vmatprep.subr.bf16.mxu0 %v7389_v13  ;;  %v7468_v11 = vld [vmem:[#allocation8 + $0xfa8] ss:$16 sps:$4 sm:$0xff]   ;;  %v7473_v13 = vld [vmem:[#allocation8 + $0xfc4] ss:$16 sps:$4 sm:$0xff]  }
 0x308   :  { %4496 = vmatprep.subr.bf16.mxu1 %v7392_v12  ;;  %v7476_v12 = vld [vmem:[#allocation8 + $0xfcc] ss:$16 sps:$4 sm:$0xff]  }
 0x309   :  { %4160 = vmatmul.mubr.bf16.vlgmr.msra.gmra.mrb[16].mxu0 %v783_v39 }
 0x30a   :  { %4488 = vmatmul.mubr.bf16.vlgmr.msra.gmra.mrb[16].mxu1 %v783_v39  ;;  %4169 = vmatpush1.bf16.msra.mxu0 %v7387_v14  ;;  %v7474_v14 = vld [vmem:[#allocation8 + $0xfc8] ss:$16 sps:$4 sm:$0xff]   ;;  %v7479_v39 = vld [vmem:[#allocation8 + $0xfe4] ss:$16 sps:$4 sm:$0xff]  }
 0x30b   :  { %4200 = vmatprep.mubr.bf16.mxu0 %v786_v16  ;;  %4497 = vmatpush1.bf16.msra.mxu1 %v7390_v36  ;;  %v7482_v36 = vld [vmem:[#allocation8 + $0xfec] ss:$16 sps:$4 sm:$0xff]  }
 0x30c   :  { %4528 = vmatprep.mubr.bf16.mxu1 %v786_v16  ;;  %4170 = vmatprep.subr.bf16.mxu0 %v7395_v15  ;;  %v7477_v15 = vld [vmem:[#allocation8 + $0xfe0] ss:$16 sps:$4 sm:$0xff]   ;;  %v769_v16 = vmax.f32 %v8220_v52, 0.0  ;;  %v7492_v52 = vld [vmem:[#allocation11 + $0x28] ss:$16 sps:$4 sm:$0xff]  }
 0x30d   :  { %4498 = vmatprep.subr.bf16.mxu1 %v7398_v35  ;;  %v7480_v35 = vld [vmem:[#allocation8 + $0xfe8] ss:$16 sps:$4 sm:$0xff]  }
 0x30e   :  { %4171 = vmatpush1.bf16.msra.mxu0 %v7393_v63  ;;  %v7485_v63 = vld [vmem:[#allocation11 + $0x4] ss:$16 sps:$4 sm:$0xff]  }
 0x30f   :  { %4499 = vmatpush1.bf16.msra.mxu1 %v7396_v17  ;;  %4172 = vmatprep.subr.bf16.mxu0 %v7401_v19  ;;  %v7488_v17 = vld [vmem:[#allocation11 + $0xc] ss:$16 sps:$4 sm:$0xff]   ;;  %v7483_v19 = vld [vmem:[#allocation11] ss:$16 sps:$4 sm:$0xff]  }
 0x310   :  { %4500 = vmatprep.subr.bf16.mxu1 %v7404_v56  ;;  %v785_v56 = vpack.c.bf16 %v769_v16, %v769_v16  ;;  %v7572_v16 = vld [vmem:[#allocation11 + $0x1cc] ss:$16 sps:$4 sm:$0xff]  }
 0x312   :  { %4173 = vmatpush1.bf16.msra.mxu0 %v7399_v20  ;;  %v7486_v20 = vld [vmem:[#allocation11 + $0x8] ss:$16 sps:$4 sm:$0xff]  }
 0x313   :  { %4501 = vmatpush1.bf16.msra.mxu1 %v7402_v53  ;;  %4174 = vmatprep.subr.bf16.mxu0 %v7407_v21  ;;  %v7491_v53 = vld [vmem:[#allocation11 + $0x24] ss:$16 sps:$4 sm:$0xff]   ;;  %v7494_v21 = vld [vmem:[#allocation11 + $0x2c] ss:$16 sps:$4 sm:$0xff]  }
 0x314   :  { %4502 = vmatprep.subr.bf16.mxu1 %v7410_v22  ;;  %v7489_v22 = vld [vmem:[#allocation11 + $0x20] ss:$16 sps:$4 sm:$0xff]  }
 0x316   :  { %4175 = vmatpush1.bf16.msra.mxu0 %v7405_v23  ;;  %v7497_v23 = vld [vmem:[#allocation11 + $0x44] ss:$16 sps:$4 sm:$0xff]  }
 0x317   :  { %4503 = vmatpush1.bf16.msra.mxu1 %v7408_v24  ;;  %4176 = vmatprep.subr.bf16.mxu0 %v7413_v25  ;;  %v7500_v24 = vld [vmem:[#allocation11 + $0x4c] ss:$16 sps:$4 sm:$0xff]   ;;  %v7495_v25 = vld [vmem:[#allocation11 + $0x40] ss:$16 sps:$4 sm:$0xff]  }
 0x318   :  { %4504 = vmatprep.subr.bf16.mxu1 %v7416_v49  ;;  %v7498_v49 = vld [vmem:[#allocation11 + $0x48] ss:$16 sps:$4 sm:$0xff]  }
 0x31a   :  { %4177 = vmatpush1.bf16.msra.mxu0 %v7411_v26  ;;  %v7503_v26 = vld [vmem:[#allocation11 + $0x64] ss:$16 sps:$4 sm:$0xff]  }
 0x31b   :  { %4505 = vmatpush1.bf16.msra.mxu1 %v7414_v28  ;;  %4178 = vmatprep.subr.bf16.mxu0 %v7419_v29  ;;  %v7506_v28 = vld [vmem:[#allocation11 + $0x6c] ss:$16 sps:$4 sm:$0xff]   ;;  %v7501_v29 = vld [vmem:[#allocation11 + $0x60] ss:$16 sps:$4 sm:$0xff]  }
 0x31c   :  { %4506 = vmatprep.subr.bf16.mxu1 %v7422_v31  ;;  %v7504_v31 = vld [vmem:[#allocation11 + $0x68] ss:$16 sps:$4 sm:$0xff]  }
 0x31e   :  { %4179 = vmatpush1.bf16.msra.mxu0 %v7417_v32  ;;  %v7509_v32 = vld [vmem:[#allocation11 + $0x84] ss:$16 sps:$4 sm:$0xff]  }
 0x31f   :  { %4507 = vmatpush1.bf16.msra.mxu1 %v7420_v33  ;;  %4180 = vmatprep.subr.bf16.mxu0 %v7425_v37  ;;  %v7512_v33 = vld [vmem:[#allocation11 + $0x8c] ss:$16 sps:$4 sm:$0xff]   ;;  %v7507_v37 = vld [vmem:[#allocation11 + $0x80] ss:$16 sps:$4 sm:$0xff]  }
 0x320   :  { %4508 = vmatprep.subr.bf16.mxu1 %v7428_v38  ;;  %v7510_v38 = vld [vmem:[#allocation11 + $0x88] ss:$16 sps:$4 sm:$0xff]  }
 0x322   :  { %4181 = vmatpush1.bf16.msra.mxu0 %v7423_v42  ;;  %v7515_v42 = vld [vmem:[#allocation11 + $0xa4] ss:$16 sps:$4 sm:$0xff]  }
 0x323   :  { %4509 = vmatpush1.bf16.msra.mxu1 %v7426_v43  ;;  %4182 = vmatprep.subr.bf16.mxu0 %v7431_v44  ;;  %v7518_v43 = vld [vmem:[#allocation11 + $0xac] ss:$16 sps:$4 sm:$0xff]   ;;  %v7513_v44 = vld [vmem:[#allocation11 + $0xa0] ss:$16 sps:$4 sm:$0xff]  }
 0x324   :  { %4510 = vmatprep.subr.bf16.mxu1 %v7434_v45  ;;  %v7516_v45 = vld [vmem:[#allocation11 + $0xa8] ss:$16 sps:$4 sm:$0xff]  }
 0x326   :  { %4183 = vmatpush1.bf16.msra.mxu0 %v7429_v47  ;;  %v7521_v47 = vld [vmem:[#allocation11 + $0xc4] ss:$16 sps:$4 sm:$0xff]  }
 0x327   :  { %4511 = vmatpush1.bf16.msra.mxu1 %v7432_v48  ;;  %4184 = vmatprep.subr.bf16.mxu0 %v7437_v46  ;;  %v7524_v48 = vld [vmem:[#allocation11 + $0xcc] ss:$16 sps:$4 sm:$0xff]   ;;  %v7519_v46 = vld [vmem:[#allocation11 + $0xc0] ss:$16 sps:$4 sm:$0xff]  }
 0x328   :  { %4512 = vmatprep.subr.bf16.mxu1 %v7440_v55  ;;  %v7522_v55 = vld [vmem:[#allocation11 + $0xc8] ss:$16 sps:$4 sm:$0xff]  }
 0x32a   :  { %4185 = vmatpush1.bf16.msra.mxu0 %v7435_v50  ;;  %v7527_v50 = vld [vmem:[#allocation11 + $0xe4] ss:$16 sps:$4 sm:$0xff]  }
 0x32b   :  { %4513 = vmatpush1.bf16.msra.mxu1 %v7438_v51  ;;  %4186 = vmatprep.subr.bf16.mxu0 %v7443_v54  ;;  %v7530_v51 = vld [vmem:[#allocation11 + $0xec] ss:$16 sps:$4 sm:$0xff]   ;;  %v7525_v54 = vld [vmem:[#allocation11 + $0xe0] ss:$16 sps:$4 sm:$0xff]  }
 0x32c   :  { %4514 = vmatprep.subr.bf16.mxu1 %v7446_v30  ;;  %v7528_v30 = vld [vmem:[#allocation11 + $0xe8] ss:$16 sps:$4 sm:$0xff]  }
 0x32e   :  { %4187 = vmatpush1.bf16.msra.mxu0 %v7441_v58  ;;  %v7533_v58 = vld [vmem:[#allocation11 + $0x104] ss:$16 sps:$4 sm:$0xff]  }
 0x32f   :  { %4515 = vmatpush1.bf16.msra.mxu1 %v7444_v34  ;;  %4188 = vmatprep.subr.bf16.mxu0 %v7449_v59  ;;  %v7536_v34 = vld [vmem:[#allocation11 + $0x10c] ss:$16 sps:$4 sm:$0xff]   ;;  %v7531_v59 = vld [vmem:[#allocation11 + $0x100] ss:$16 sps:$4 sm:$0xff]  }
 0x330   :  { %4516 = vmatprep.subr.bf16.mxu1 %v7452_v62  ;;  %v7534_v62 = vld [vmem:[#allocation11 + $0x108] ss:$16 sps:$4 sm:$0xff]  }
 0x332   :  { %4189 = vmatpush1.bf16.msra.mxu0 %v7447_v1  ;;  %v7539_v1 = vld [vmem:[#allocation11 + $0x124] ss:$16 sps:$4 sm:$0xff]  }
 0x333   :  { %4517 = vmatpush1.bf16.msra.mxu1 %v7450_v40  ;;  %4190 = vmatprep.subr.bf16.mxu0 %v7455_v10  ;;  %v7542_v40 = vld [vmem:[#allocation11 + $0x12c] ss:$16 sps:$4 sm:$0xff]   ;;  %v7537_v10 = vld [vmem:[#allocation11 + $0x120] ss:$16 sps:$4 sm:$0xff]  }
 0x334   :  { %4518 = vmatprep.subr.bf16.mxu1 %v7458_v2  ;;  %v7540_v2 = vld [vmem:[#allocation11 + $0x128] ss:$16 sps:$4 sm:$0xff]  }
 0x336   :  { %4191 = vmatpush1.bf16.msra.mxu0 %v7453_v57  ;;  %v7545_v57 = vld [vmem:[#allocation11 + $0x144] ss:$16 sps:$4 sm:$0xff]  }
 0x337   :  { %4519 = vmatpush1.bf16.msra.mxu1 %v7456_v3  ;;  %4192 = vmatprep.subr.bf16.mxu0 %v7461_v4  ;;  %v7548_v3 = vld [vmem:[#allocation11 + $0x14c] ss:$16 sps:$4 sm:$0xff]   ;;  %v7543_v4 = vld [vmem:[#allocation11 + $0x140] ss:$16 sps:$4 sm:$0xff]  }
 0x338   :  { %4520 = vmatprep.subr.bf16.mxu1 %v7464_v27  ;;  %v7546_v27 = vld [vmem:[#allocation11 + $0x148] ss:$16 sps:$4 sm:$0xff]  }
 0x33a   :  { %4193 = vmatpush1.bf16.msra.mxu0 %v7459_v60  ;;  %v7551_v60 = vld [vmem:[#allocation11 + $0x164] ss:$16 sps:$4 sm:$0xff]  }
 0x33b   :  { %4521 = vmatpush1.bf16.msra.mxu1 %v7462_v5  ;;  %4194 = vmatprep.subr.bf16.mxu0 %v7467_v8  ;;  %v7554_v5 = vld [vmem:[#allocation11 + $0x16c] ss:$16 sps:$4 sm:$0xff]   ;;  %v7549_v8 = vld [vmem:[#allocation11 + $0x160] ss:$16 sps:$4 sm:$0xff]  }
 0x33c   :  { %4522 = vmatprep.subr.bf16.mxu1 %v7470_v61  ;;  %v7552_v61 = vld [vmem:[#allocation11 + $0x168] ss:$16 sps:$4 sm:$0xff]  }
 0x33e   :  { %4195 = vmatpush1.bf16.msra.mxu0 %v7465_v18  ;;  %v7557_v18 = vld [vmem:[#allocation11 + $0x184] ss:$16 sps:$4 sm:$0xff]  }
 0x33f   :  { %4523 = vmatpush1.bf16.msra.mxu1 %v7468_v11  ;;  %4196 = vmatprep.subr.bf16.mxu0 %v7473_v13  ;;  %v7560_v11 = vld [vmem:[#allocation11 + $0x18c] ss:$16 sps:$4 sm:$0xff]   ;;  %v7555_v13 = vld [vmem:[#allocation11 + $0x180] ss:$16 sps:$4 sm:$0xff]  }
 0x340   :  { %4524 = vmatprep.subr.bf16.mxu1 %v7476_v12  ;;  %v7558_v12 = vld [vmem:[#allocation11 + $0x188] ss:$16 sps:$4 sm:$0xff]  }
 0x342   :  { %4197 = vmatpush1.bf16.msra.mxu0 %v7471_v6  ;;  %v7563_v6 = vld [vmem:[#allocation11 + $0x1a4] ss:$16 sps:$4 sm:$0xff]  }
 0x343   :  { %4525 = vmatpush1.bf16.msra.mxu1 %v7474_v14  ;;  %4198 = vmatprep.subr.bf16.mxu0 %v7479_v39  ;;  %v7566_v14 = vld [vmem:[#allocation11 + $0x1ac] ss:$16 sps:$4 sm:$0xff]   ;;  %v7561_v39 = vld [vmem:[#allocation11 + $0x1a0] ss:$16 sps:$4 sm:$0xff]  }
 0x344   :  { %4526 = vmatprep.subr.bf16.mxu1 %v7482_v36  ;;  %v7564_v36 = vld [vmem:[#allocation11 + $0x1a8] ss:$16 sps:$4 sm:$0xff]  }
 0x346   :  { %4199 = vmatpush1.bf16.msra.mxu0 %v7477_v15  ;;  %v7569_v15 = vld [vmem:[#allocation11 + $0x1c4] ss:$16 sps:$4 sm:$0xff]  }
 0x347   :  { %4527 = vmatpush1.bf16.msra.mxu1 %v7480_v35  ;;  %5335 = vmatprep.subr.bf16.mxu0 %v7485_v63  ;;  %v7567_v35 = vld [vmem:[#allocation11 + $0x1c0] ss:$16 sps:$4 sm:$0xff]   ;;  %v7570_v63 = vld [vmem:[#allocation11 + $0x1c8] ss:$16 sps:$4 sm:$0xff]  }
 0x348   :  { %5417 = vmatprep.subr.bf16.mxu1 %v7488_v17  ;;  %v7575_v17 = vld [vmem:[#allocation11 + $0x1e4] ss:$16 sps:$4 sm:$0xff]  }
 0x349   :  { %4201 = vmatmul.mubr.bf16.vlgmr.msra.gmra.mrb[16].mxu0 %v785_v56 }
 0x34a   :  { %4529 = vmatmul.mubr.bf16.vlgmr.msra.gmra.mrb[16].mxu1 %v785_v56  ;;  %5336 = vmatpush1.bf16.msra.mxu0 %v7483_v19  ;;  %v7578_v19 = vld [vmem:[#allocation11 + $0x1ec] ss:$16 sps:$4 sm:$0xff]   ;;  %v7573_v56 = vld [vmem:[#allocation11 + $0x1e0] ss:$16 sps:$4 sm:$0xff]  }
 0x34b   :  { %5418 = vmatpush1.bf16.msra.mxu1 %v7486_v20  ;;  %5337 = vmatprep.subr.bf16.mxu0 %v7491_v53  ;;  %v7576_v20 = vld [vmem:[#allocation11 + $0x1e8] ss:$16 sps:$4 sm:$0xff]   ;;  %v7581_v53 = vld [vmem:[#allocation11 + $0x204] ss:$16 sps:$4 sm:$0xff]  }
 0x34c   :  { %5419 = vmatprep.subr.bf16.mxu1 %v7494_v21  ;;  %v7584_v21 = vld [vmem:[#allocation11 + $0x20c] ss:$16 sps:$4 sm:$0xff]  }
 0x34e   :  { %5338 = vmatpush1.bf16.msra.mxu0 %v7489_v22  ;;  %v8256_v22 = vld [vmem:[#allocation10] sm:$0xf] }
 0x34f   :  { %5420 = vmatpush1.bf16.msra.mxu1 %v7492_v52  ;;  %5339 = vmatprep.subr.bf16.mxu0 %v7497_v23  ;;  %v1304_v52 = vrot.slane %v8256_v22, %v8154_v7  ;;  %v1308_v23 = vrot.slane %v8256_v22, %v8159_v9 }
 0x350   :  { %5421 = vmatprep.subr.bf16.mxu1 %v7500_v24  ;;  %v1316_v24 = vrot.slane %v8256_v22, %v8162_v0 }
 0x352   :  { %5340 = vmatpush1.bf16.msra.mxu0 %v7495_v25 }
 0x353   :  { %5422 = vmatpush1.bf16.msra.mxu1 %v7498_v49  ;;  %5341 = vmatprep.subr.bf16.mxu0 %v7503_v26 }
 0x354   :  { %5423 = vmatprep.subr.bf16.mxu1 %v7506_v28 }
 0x356   :  { %5342 = vmatpush1.bf16.msra.mxu0 %v7501_v29 }
 0x357   :  { %5424 = vmatpush1.bf16.msra.mxu1 %v7504_v31  ;;  %5343 = vmatprep.subr.bf16.mxu0 %v7509_v32 }
 0x358   :  { %5425 = vmatprep.subr.bf16.mxu1 %v7512_v33 }
 0x35a   :  { %5344 = vmatpush1.bf16.msra.mxu0 %v7507_v37 }
 0x35b   :  { %5426 = vmatpush1.bf16.msra.mxu1 %v7510_v38  ;;  %5345 = vmatprep.subr.bf16.mxu0 %v7515_v42 }
 0x35c   :  { %5427 = vmatprep.subr.bf16.mxu1 %v7518_v43 }
 0x35e   :  { %5346 = vmatpush1.bf16.msra.mxu0 %v7513_v44 }
 0x35f   :  { %5428 = vmatpush1.bf16.msra.mxu1 %v7516_v45  ;;  %5347 = vmatprep.subr.bf16.mxu0 %v7521_v47 }
 0x360   :  { %5429 = vmatprep.subr.bf16.mxu1 %v7524_v48  ;;  %v7579_v48 = vld [vmem:[#allocation11 + $0x200] ss:$16 sps:$4 sm:$0xff]  }
 0x362   :  { %5348 = vmatpush1.bf16.msra.mxu0 %v7519_v46  ;;  %v7582_v46 = vld [vmem:[#allocation11 + $0x208] ss:$16 sps:$4 sm:$0xff]  }
 0x363   :  { %5430 = vmatpush1.bf16.msra.mxu1 %v7522_v55  ;;  %5349 = vmatprep.subr.bf16.mxu0 %v7527_v50  ;;  %v7587_v50 = vld [vmem:[#allocation11 + $0x224] ss:$16 sps:$4 sm:$0xff]  }
 0x364   :  { %5431 = vmatprep.subr.bf16.mxu1 %v7530_v51  ;;  %v7590_v51 = vld [vmem:[#allocation11 + $0x22c] ss:$16 sps:$4 sm:$0xff]  }
 0x366   :  { %5350 = vmatpush1.bf16.msra.mxu0 %v7525_v54 }
 0x367   :  { %5432 = vmatpush1.bf16.msra.mxu1 %v7528_v30  ;;  %5351 = vmatprep.subr.bf16.mxu0 %v7533_v58  ;;  %v7585_v30 = vld [vmem:[#allocation11 + $0x220] ss:$16 sps:$4 sm:$0xff]   ;;  %v7588_v58 = vld [vmem:[#allocation11 + $0x228] ss:$16 sps:$4 sm:$0xff]  }
 0x368   :  { %5433 = vmatprep.subr.bf16.mxu1 %v7536_v34  ;;  %v7593_v34 = vld [vmem:[#allocation11 + $0x244] ss:$16 sps:$4 sm:$0xff]  }
 0x36a   :  { %5352 = vmatpush1.bf16.msra.mxu0 %v7531_v59  ;;  %v7596_v59 = vld [vmem:[#allocation11 + $0x24c] ss:$16 sps:$4 sm:$0xff]  }
 0x36b   :  { %5434 = vmatpush1.bf16.msra.mxu1 %v7534_v62  ;;  %5353 = vmatprep.subr.bf16.mxu0 %v7539_v1  ;;  %v7591_v62 = vld [vmem:[#allocation11 + $0x240] ss:$16 sps:$4 sm:$0xff]   ;;  %v7594_v1 = vld [vmem:[#allocation11 + $0x248] ss:$16 sps:$4 sm:$0xff]  }
 0x36c   :  { %5435 = vmatprep.subr.bf16.mxu1 %v7542_v40  ;;  %v7599_v40 = vld [vmem:[#allocation11 + $0x264] ss:$16 sps:$4 sm:$0xff]  }
 0x36e   :  { %5354 = vmatpush1.bf16.msra.mxu0 %v7537_v10  ;;  %v7602_v10 = vld [vmem:[#allocation11 + $0x26c] ss:$16 sps:$4 sm:$0xff]  }
 0x36f   :  { %5436 = vmatpush1.bf16.msra.mxu1 %v7540_v2  ;;  %5355 = vmatprep.subr.bf16.mxu0 %v7545_v57  ;;  %v7597_v2 = vld [vmem:[#allocation11 + $0x260] ss:$16 sps:$4 sm:$0xff]   ;;  %v7600_v57 = vld [vmem:[#allocation11 + $0x268] ss:$16 sps:$4 sm:$0xff]  }
 0x370   :  { %5437 = vmatprep.subr.bf16.mxu1 %v7548_v3  ;;  %v7605_v3 = vld [vmem:[#allocation11 + $0x284] ss:$16 sps:$4 sm:$0xff]  }
 0x372   :  { %5356 = vmatpush1.bf16.msra.mxu0 %v7543_v4  ;;  %v7608_v4 = vld [vmem:[#allocation11 + $0x28c] ss:$16 sps:$4 sm:$0xff]  }
 0x373   :  { %5438 = vmatpush1.bf16.msra.mxu1 %v7546_v27  ;;  %5357 = vmatprep.subr.bf16.mxu0 %v7551_v60  ;;  %v7603_v27 = vld [vmem:[#allocation11 + $0x280] ss:$16 sps:$4 sm:$0xff]   ;;  %v7606_v60 = vld [vmem:[#allocation11 + $0x288] ss:$16 sps:$4 sm:$0xff]  }
 0x374   :  { %5439 = vmatprep.subr.bf16.mxu1 %v7554_v5  ;;  %v7611_v5 = vld [vmem:[#allocation11 + $0x2a4] ss:$16 sps:$4 sm:$0xff]  }
 0x376   :  { %5358 = vmatpush1.bf16.msra.mxu0 %v7549_v8  ;;  %v7614_v8 = vld [vmem:[#allocation11 + $0x2ac] ss:$16 sps:$4 sm:$0xff]  }
 0x377   :  { %5440 = vmatpush1.bf16.msra.mxu1 %v7552_v61  ;;  %5359 = vmatprep.subr.bf16.mxu0 %v7557_v18  ;;  %v7609_v61 = vld [vmem:[#allocation11 + $0x2a0] ss:$16 sps:$4 sm:$0xff]   ;;  %v7612_v18 = vld [vmem:[#allocation11 + $0x2a8] ss:$16 sps:$4 sm:$0xff]  }
 0x378   :  { %5441 = vmatprep.subr.bf16.mxu1 %v7560_v11  ;;  %v7617_v11 = vld [vmem:[#allocation11 + $0x2c4] ss:$16 sps:$4 sm:$0xff]  }
 0x37a   :  { %5360 = vmatpush1.bf16.msra.mxu0 %v7555_v13  ;;  %v7620_v13 = vld [vmem:[#allocation11 + $0x2cc] ss:$16 sps:$4 sm:$0xff]  }
 0x37b   :  { %5442 = vmatpush1.bf16.msra.mxu1 %v7558_v12  ;;  %5361 = vmatprep.subr.bf16.mxu0 %v7563_v6  ;;  %v7615_v12 = vld [vmem:[#allocation11 + $0x2c0] ss:$16 sps:$4 sm:$0xff]   ;;  %v7618_v6 = vld [vmem:[#allocation11 + $0x2c8] ss:$16 sps:$4 sm:$0xff]  }
 0x37c   :  { %5443 = vmatprep.subr.bf16.mxu1 %v7566_v14  ;;  %v7623_v14 = vld [vmem:[#allocation11 + $0x2e4] ss:$16 sps:$4 sm:$0xff]  }
 0x37e   :  { %5362 = vmatpush1.bf16.msra.mxu0 %v7561_v39  ;;  %v7626_v39 = vld [vmem:[#allocation11 + $0x2ec] ss:$16 sps:$4 sm:$0xff]  }
 0x37f   :  { %5444 = vmatpush1.bf16.msra.mxu1 %v7564_v36  ;;  %5363 = vmatprep.subr.bf16.mxu0 %v7569_v15  ;;  %v7621_v36 = vld [vmem:[#allocation11 + $0x2e0] ss:$16 sps:$4 sm:$0xff]   ;;  %v7624_v15 = vld [vmem:[#allocation11 + $0x2e8] ss:$16 sps:$4 sm:$0xff]  }
 0x380   :  { %5445 = vmatprep.subr.bf16.mxu1 %v7572_v16  ;;  %v7629_v16 = vld [vmem:[#allocation11 + $0x304] ss:$16 sps:$4 sm:$0xff]  }
 0x382   :  { %5364 = vmatpush1.bf16.msra.mxu0 %v7567_v35  ;;  %v7632_v35 = vld [vmem:[#allocation11 + $0x30c] ss:$16 sps:$4 sm:$0xff]  }
 0x383   :  { %5446 = vmatpush1.bf16.msra.mxu1 %v7570_v63  ;;  %5365 = vmatprep.subr.bf16.mxu0 %v7575_v17  ;;  %v7627_v63 = vld [vmem:[#allocation11 + $0x300] ss:$16 sps:$4 sm:$0xff]   ;;  %v7630_v17 = vld [vmem:[#allocation11 + $0x308] ss:$16 sps:$4 sm:$0xff]  }
 0x384   :  { %5447 = vmatprep.subr.bf16.mxu1 %v7578_v19  ;;  %v7635_v19 = vld [vmem:[#allocation11 + $0x324] ss:$16 sps:$4 sm:$0xff]  }
 0x386   :  { %5366 = vmatpush1.bf16.msra.mxu0 %v7573_v56  ;;  %v7638_v56 = vld [vmem:[#allocation11 + $0x32c] ss:$16 sps:$4 sm:$0xff]  }
 0x387   :  { %5448 = vmatpush1.bf16.msra.mxu1 %v7576_v20  ;;  %5376 = vmatprep.subr.bf16.mxu0 %v7581_v53  ;;  %v7633_v20 = vld [vmem:[#allocation11 + $0x320] ss:$16 sps:$4 sm:$0xff]   ;;  %v7636_v53 = vld [vmem:[#allocation11 + $0x328] ss:$16 sps:$4 sm:$0xff]  }
 0x388   :  { %5458 = vmatprep.subr.bf16.mxu1 %v7584_v21  ;;  %v7641_v21 = vld [vmem:[#allocation11 + $0x344] ss:$16 sps:$4 sm:$0xff]  }
 0x41c   :  { %v4202_v25 = vpop.f32.mrb[16].mxu0 }
 0x41d   :  { %v6627_v49 = vadd.f32 %v4202_v25, %v1304_v52  ;;  %v8264_v26 = vpop.f32.mrb[16].mxu1  ;;  %v4204_v28 = vpop.f32.mrb[17].mxu0  ;;  %v7644_v52 = vld [vmem:[#allocation11 + $0x34c] ss:$16 sps:$4 sm:$0xff]   ;;  %v7647_v25 = vld [vmem:[#allocation11 + $0x364] ss:$16 sps:$4 sm:$0xff]  }
 0x41e   :  { %v6628_v29 = vadd.f32 %v4204_v28, %v1308_v23  ;;  %v4532_v31 = vpop.f32.mrb[17].mxu1  ;;  %v4206_v32 = vpop.f32.mrb[18].mxu0  ;;  %v7639_v23 = vld [vmem:[#allocation11 + $0x340] ss:$16 sps:$4 sm:$0xff]  }
 0x41f   :  { %v4537_v33 = vmax.f32 %v6627_v49, 0.0  ;;  %v6630_v37 = vadd.f32 %v4532_v31, %v1316_v24  ;;  %v4534_v38 = vpop.f32.mrb[18].mxu1  ;;  %v4207_v42 = vpop.f32.mrb[19].mxu0  ;;  %v7642_v24 = vld [vmem:[#allocation11 + $0x348] ss:$16 sps:$4 sm:$0xff]  }
 0x420   :  { %v4538_v43 = vmax.f32 %v6628_v29, 0.0  ;;  %v4535_v44 = vpop.f32.mrb[19].mxu1  ;;  %v7650_v49 = vld [vmem:[#allocation11 + $0x36c] ss:$16 sps:$4 sm:$0xff]   ;;  %v7645_v28 = vld [vmem:[#allocation11 + $0x360] ss:$16 sps:$4 sm:$0xff]  }
 0x421   :  { %v4540_v45 = vmax.f32 %v6630_v37, 0.0  ;;  %v4541_v55 = vpack.c.bf16 %v4537_v33, %v4537_v33  ;;  %v7648_v29 = vld [vmem:[#allocation11 + $0x368] ss:$16 sps:$4 sm:$0xff]   ;;  %v7653_v31 = vld [vmem:[#allocation11 + $0x384] ss:$16 sps:$4 sm:$0xff]  }
 0x422   :  { %v4542_v47 = vpack.c.bf16 %v4538_v43, %v4538_v43  ;;  %v7656_v32 = vld [vmem:[#allocation11 + $0x38c] ss:$16 sps:$4 sm:$0xff]   ;;  %v7651_v33 = vld [vmem:[#allocation11 + $0x380] ss:$16 sps:$4 sm:$0xff]   ;;  %v7654_v37 = vld [vmem:[#allocation11 + $0x388] ss:$16 sps:$4 sm:$0xff]  }
 0x423   :  { %v4544_v54 = vpack.c.bf16 %v4540_v45, %v4540_v45  ;;  %v7659_v38 = vld [vmem:[#allocation11 + $0x3a4] ss:$16 sps:$4 sm:$0xff]   ;;  %v7662_v42 = vld [vmem:[#allocation11 + $0x3ac] ss:$16 sps:$4 sm:$0xff]   ;;  %v7657_v43 = vld [vmem:[#allocation11 + $0x3a0] ss:$16 sps:$4 sm:$0xff]   ;;  %v1312_v45 = vrot.slane %v8256_v22, %v8195_v41 }
 0x424   :  { %5367 = vmatprep.mubr.bf16.mxu0 %v4542_v47  ;;  %5449 = vmatprep.mubr.bf16.mxu1 %v4542_v47  ;;  %v7660_v44 = vld [vmem:[#allocation11 + $0x3a8] ss:$16 sps:$4 sm:$0xff]   ;;  %v7665_v47 = vld [vmem:[#allocation11 + $0x3c4] ss:$16 sps:$4 sm:$0xff]  }
 0x425   :  { %5368 = vmatmul.mubr.bf16.vlgmr.msra.gmra.mrb[20].mxu0 %v4541_v55  ;;  %5450 = vmatmul.mubr.bf16.vlgmr.msra.gmra.mrb[20].mxu1 %v4541_v55  ;;  %v7666_v55 = vld [vmem:[#allocation11 + $0x3c8] ss:$16 sps:$4 sm:$0xff]  }
 0x426   :  { %5377 = vmatpush1.bf16.msra.mxu0 %v7579_v48  ;;  %5459 = vmatpush1.bf16.msra.mxu1 %v7582_v46  ;;  %v7668_v48 = vld [vmem:[#allocation11 + $0x3cc] ss:$16 sps:$4 sm:$0xff]   ;;  %v7663_v46 = vld [vmem:[#allocation11 + $0x3c0] ss:$16 sps:$4 sm:$0xff]   ;;  %v7675_v22 = vld [vmem:[#allocation14 + $0x40] sm:$0xff]  }
 0x427   :  { %5408 = vmatprep.mubr.bf16.mxu0 %v4544_v54  ;;  %5490 = vmatprep.mubr.bf16.mxu1 %v4544_v54  ;;  %v7674_v54 = vld [vmem:[#allocation11 + $0x3ec] ss:$16 sps:$4 sm:$0xff]  }
 0x428   :  { %5378 = vmatprep.subr.bf16.mxu0 %v7587_v50  ;;  %5460 = vmatprep.subr.bf16.mxu1 %v7590_v51  ;;  %v6629_v50 = vadd.f32 %v8264_v26, %v1312_v45  ;;  %v7671_v51 = vld [vmem:[#allocation11 + $0x3e4] ss:$16 sps:$4 sm:$0xff]   ;;  %v7679_v26 = vld [vmem:[#allocation14 + $0x48] sm:$0xff]  }
 0x42a   :  { %5379 = vmatpush1.bf16.msra.mxu0 %v7585_v30  ;;  %5461 = vmatpush1.bf16.msra.mxu1 %v7588_v58  ;;  %v7669_v30 = vld [vmem:[#allocation11 + $0x3e0] ss:$16 sps:$4 sm:$0xff]   ;;  %v7672_v58 = vld [vmem:[#allocation11 + $0x3e8] ss:$16 sps:$4 sm:$0xff]  }
 0x42b   :  { %5380 = vmatprep.subr.bf16.mxu0 %v7593_v34  ;;  %5462 = vmatprep.subr.bf16.mxu1 %v7596_v59  ;;  %v4539_v34 = vmax.f32 %v6629_v50, 0.0  ;;  %v7676_v59 = vld [vmem:[#allocation14 + $0xc0] sm:$0xff]  }
 0x42e   :  { %5381 = vmatpush1.bf16.msra.mxu0 %v7591_v62  ;;  %5463 = vmatpush1.bf16.msra.mxu1 %v7594_v1  ;;  %v7677_v62 = vld [vmem:[#allocation14] sm:$0xff]  }
 0x42f   :  { %5382 = vmatprep.subr.bf16.mxu0 %v7599_v40  ;;  %5464 = vmatprep.subr.bf16.mxu1 %v7602_v10  ;;  %v7678_v1 = vld [vmem:[#allocation14 + $0x80] sm:$0xff]   ;;  %v4543_v40 = vpack.c.bf16 %v4539_v34, %v4539_v34  ;;  %v7680_v10 = vld [vmem:[#allocation14 + $0xc8] sm:$0xff]  }
 0x432   :  { %5383 = vmatpush1.bf16.msra.mxu0 %v7597_v2  ;;  %5465 = vmatpush1.bf16.msra.mxu1 %v7600_v57  ;;  %v7681_v2 = vld [vmem:[#allocation14 + $0x8] sm:$0xff]  }
 0x433   :  { %5384 = vmatprep.subr.bf16.mxu0 %v7605_v3  ;;  %5466 = vmatprep.subr.bf16.mxu1 %v7608_v4  ;;  %v7682_v57 = vld [vmem:[#allocation14 + $0x88] sm:$0xff]   ;;  %v7683_v3 = vld [vmem:[#allocation14 + $0x50] sm:$0xff]  }
 0x434   :  { %v7684_v4 = vld [vmem:[#allocation14 + $0xd0] sm:$0xff]  }
 0x436   :  { %5385 = vmatpush1.bf16.msra.mxu0 %v7603_v27  ;;  %5467 = vmatpush1.bf16.msra.mxu1 %v7606_v60  ;;  %v7685_v27 = vld [vmem:[#allocation14 + $0x10] sm:$0xff]  }
 0x437   :  { %5386 = vmatprep.subr.bf16.mxu0 %v7611_v5  ;;  %5468 = vmatprep.subr.bf16.mxu1 %v7614_v8  ;;  %v7686_v60 = vld [vmem:[#allocation14 + $0x90] sm:$0xff]   ;;  %v7687_v5 = vld [vmem:[#allocation14 + $0x58] sm:$0xff]  }
 0x438   :  { %v7688_v8 = vld [vmem:[#allocation14 + $0xd8] sm:$0xff]  }
 0x43a   :  { %5387 = vmatpush1.bf16.msra.mxu0 %v7609_v61  ;;  %5469 = vmatpush1.bf16.msra.mxu1 %v7612_v18  ;;  %v7689_v61 = vld [vmem:[#allocation14 + $0x18] sm:$0xff]  }
 0x43b   :  { %5388 = vmatprep.subr.bf16.mxu0 %v7617_v11  ;;  %5470 = vmatprep.subr.bf16.mxu1 %v7620_v13  ;;  %v7690_v18 = vld [vmem:[#allocation14 + $0x98] sm:$0xff]   ;;  %v7691_v11 = vld [vmem:[#allocation14 + $0x60] sm:$0xff]  }
 0x43c   :  { %v7692_v13 = vld [vmem:[#allocation14 + $0xe0] sm:$0xff]  }
 0x43e   :  { %5389 = vmatpush1.bf16.msra.mxu0 %v7615_v12  ;;  %5471 = vmatpush1.bf16.msra.mxu1 %v7618_v6  ;;  %v7693_v12 = vld [vmem:[#allocation14 + $0x20] sm:$0xff]  }
 0x43f   :  { %5390 = vmatprep.subr.bf16.mxu0 %v7623_v14  ;;  %5472 = vmatprep.subr.bf16.mxu1 %v7626_v39  ;;  %v7694_v6 = vld [vmem:[#allocation14 + $0xa0] sm:$0xff]   ;;  %v7695_v14 = vld [vmem:[#allocation14 + $0x68] sm:$0xff]  }
 0x440   :  { %v7696_v39 = vld [vmem:[#allocation14 + $0xe8] sm:$0xff]  }
 0x442   :  { %5391 = vmatpush1.bf16.msra.mxu0 %v7621_v36  ;;  %5473 = vmatpush1.bf16.msra.mxu1 %v7624_v15  ;;  %v7697_v36 = vld [vmem:[#allocation14 + $0x28] sm:$0xff]  }
 0x443   :  { %5392 = vmatprep.subr.bf16.mxu0 %v7629_v16  ;;  %5474 = vmatprep.subr.bf16.mxu1 %v7632_v35  ;;  %v7698_v15 = vld [vmem:[#allocation14 + $0xa8] sm:$0xff]   ;;  %v7699_v16 = vld [vmem:[#allocation14 + $0x70] sm:$0xff]  }
 0x444   :  { %v7700_v35 = vld [vmem:[#allocation14 + $0xf0] sm:$0xff]  }
 0x446   :  { %5393 = vmatpush1.bf16.msra.mxu0 %v7627_v63  ;;  %5475 = vmatpush1.bf16.msra.mxu1 %v7630_v17  ;;  %v7701_v63 = vld [vmem:[#allocation14 + $0x30] sm:$0xff]  }
 0x447   :  { %5394 = vmatprep.subr.bf16.mxu0 %v7635_v19  ;;  %5476 = vmatprep.subr.bf16.mxu1 %v7638_v56  ;;  %v7702_v17 = vld [vmem:[#allocation14 + $0xb0] sm:$0xff]   ;;  %v7703_v19 = vld [vmem:[#allocation14 + $0x78] sm:$0xff]  }
 0x448   :  { %v7704_v56 = vld [vmem:[#allocation14 + $0xf8] sm:$0xff]  }
 0x44a   :  { %5395 = vmatpush1.bf16.msra.mxu0 %v7633_v20  ;;  %5477 = vmatpush1.bf16.msra.mxu1 %v7636_v53  ;;  %v7705_v20 = vld [vmem:[#allocation14 + $0x38] sm:$0xff]  }
 0x44b   :  { %5396 = vmatprep.subr.bf16.mxu0 %v7641_v21  ;;  %5478 = vmatprep.subr.bf16.mxu1 %v7644_v52  ;;  %v7706_v53 = vld [vmem:[#allocation14 + $0xb8] sm:$0xff]  }
 0x44c   :  { %v4673_v21 = vld [vmem:[#allocation13] sm:$0xf] }
 0x44d   :  { %v4678_v52 = vrot.slane %v4673_v21, %v8154_v7 }
 0x44e   :  { %5397 = vmatpush1.bf16.msra.mxu0 %v7639_v23  ;;  %5479 = vmatpush1.bf16.msra.mxu1 %v7642_v24  ;;  %v4686_v23 = vrot.slane %v4673_v21, %v8195_v41  ;;  %v4682_v24 = vrot.slane %v4673_v21, %v8159_v9 }
 0x44f   :  { %5398 = vmatprep.subr.bf16.mxu0 %v7647_v25  ;;  %5480 = vmatprep.subr.bf16.mxu1 %v7650_v49  ;;  %v4690_v25 = vrot.slane %v4673_v21, %v8162_v0 }
 0x452   :  { %5399 = vmatpush1.bf16.msra.mxu0 %v7645_v28  ;;  %5481 = vmatpush1.bf16.msra.mxu1 %v7648_v29 }
 0x453   :  { %5400 = vmatprep.subr.bf16.mxu0 %v7653_v31  ;;  %5482 = vmatprep.subr.bf16.mxu1 %v7656_v32 }
 0x456   :  { %5401 = vmatpush1.bf16.msra.mxu0 %v7651_v33  ;;  %5483 = vmatpush1.bf16.msra.mxu1 %v7654_v37 }
 0x457   :  { %5402 = vmatprep.subr.bf16.mxu0 %v7659_v38  ;;  %5484 = vmatprep.subr.bf16.mxu1 %v7662_v42 }
 0x45a   :  { %5403 = vmatpush1.bf16.msra.mxu0 %v7657_v43  ;;  %5485 = vmatpush1.bf16.msra.mxu1 %v7660_v44 }
 0x45b   :  { %5404 = vmatprep.subr.bf16.mxu0 %v7665_v47  ;;  %5486 = vmatprep.subr.bf16.mxu1 %v7668_v48 }
 0x45e   :  { %5405 = vmatpush1.bf16.msra.mxu0 %v7663_v46  ;;  %5487 = vmatpush1.bf16.msra.mxu1 %v7666_v55 }
 0x45f   :  { %5406 = vmatprep.subr.bf16.mxu0 %v7671_v51  ;;  %5488 = vmatprep.subr.bf16.mxu1 %v7674_v54  ;;  %v6550_v54 = vld [vmem:[#allocation16] ss:$0 sm:$0xff] }
 0x462   :  { %5407 = vmatpush1.bf16.msra.mxu0 %v7669_v30  ;;  %5489 = vmatpush1.bf16.msra.mxu1 %v7672_v58 }
 0x463   :  { %6583 = vmatprep.subr.bf16.mxu0 %v7675_v22  ;;  %6605 = vmatprep.subr.bf16.mxu1 %v7676_v59 }
 0x465   :  { %5409 = vmatmul.mubr.bf16.vlgmr.msra.gmra.mrb[20].mxu0 %v4543_v40  ;;  %5491 = vmatmul.mubr.bf16.vlgmr.msra.gmra.mrb[20].mxu1 %v4543_v40 }
 0x466   :  { %6584 = vmatpush3.bf16.msra.mxu0 %v7677_v62  ;;  %6606 = vmatpush3.bf16.msra.mxu1 %v7678_v1 }
 0x467   :  { %6585 = vmatprep.subr.bf16.mxu0 %v7679_v26  ;;  %6607 = vmatprep.subr.bf16.mxu1 %v7680_v10 }
 0x46a   :  { %6586 = vmatpush3.bf16.msra.mxu0 %v7681_v2  ;;  %6608 = vmatpush3.bf16.msra.mxu1 %v7682_v57 }
 0x46b   :  { %6587 = vmatprep.subr.bf16.mxu0 %v7683_v3  ;;  %6609 = vmatprep.subr.bf16.mxu1 %v7684_v4 }
 0x46e   :  { %6588 = vmatpush3.bf16.msra.mxu0 %v7685_v27  ;;  %6610 = vmatpush3.bf16.msra.mxu1 %v7686_v60 }
 0x46f   :  { %6589 = vmatprep.subr.bf16.mxu0 %v7687_v5  ;;  %6611 = vmatprep.subr.bf16.mxu1 %v7688_v8 }
 0x472   :  { %6590 = vmatpush3.bf16.msra.mxu0 %v7689_v61  ;;  %6612 = vmatpush3.bf16.msra.mxu1 %v7690_v18 }
 0x473   :  { %6591 = vmatprep.subr.bf16.mxu0 %v7691_v11  ;;  %6613 = vmatprep.subr.bf16.mxu1 %v7692_v13 }
 0x476   :  { %6592 = vmatpush3.bf16.msra.mxu0 %v7693_v12  ;;  %6614 = vmatpush3.bf16.msra.mxu1 %v7694_v6 }
 0x477   :  { %6593 = vmatprep.subr.bf16.mxu0 %v7695_v14  ;;  %6615 = vmatprep.subr.bf16.mxu1 %v7696_v39 }
 0x47a   :  { %6594 = vmatpush3.bf16.msra.mxu0 %v7697_v36  ;;  %6616 = vmatpush3.bf16.msra.mxu1 %v7698_v15 }
 0x47b   :  { %6595 = vmatprep.subr.bf16.mxu0 %v7699_v16  ;;  %6617 = vmatprep.subr.bf16.mxu1 %v7700_v35 }
 0x47e   :  { %6596 = vmatpush3.bf16.msra.mxu0 %v7701_v63  ;;  %6618 = vmatpush3.bf16.msra.mxu1 %v7702_v17 }
 0x47f   :  { %6597 = vmatprep.subr.bf16.mxu0 %v7703_v19  ;;  %6619 = vmatprep.subr.bf16.mxu1 %v7704_v56 }
 0x482   :  { %6598 = vmatpush3.bf16.msra.mxu0 %v7705_v20  ;;  %6620 = vmatpush3.bf16.msra.mxu1 %v7706_v53 }
 0x538   :  { %v5410_v49 = vpop.f32.mrb[20].mxu0  ;;  %v5492_v28 = vpop.f32.mrb[20].mxu1 }
 0x539   :  { %v6631_v29 = vadd.f32 %v5410_v49, %v4678_v52  ;;  %v6633_v31 = vadd.f32 %v5492_v28, %v4686_v23  ;;  %v5412_v32 = vpop.f32.mrb[21].mxu0  ;;  %v5494_v33 = vpop.f32.mrb[21].mxu1 }
 0x53a   :  { %v6632_v37 = vadd.f32 %v5412_v32, %v4682_v24  ;;  %v6634_v38 = vadd.f32 %v5494_v33, %v4690_v25  ;;  %v5414_v42 = vpop.f32.mrb[22].mxu0  ;;  %v5496_v43 = vpop.f32.mrb[22].mxu1 }
 0x53b   :  { %v5499_v44 = vmax.f32 %v6631_v29, 0.0  ;;  %v5501_v45 = vmax.f32 %v6633_v31, 0.0  ;;  %v5415_v47 = vpop.f32.mrb[23].mxu0  ;;  %v5497_v7 = vpop.f32.mrb[23].mxu1 }
 0x53c   :  { %v5500_v48 = vmax.f32 %v6632_v37, 0.0  ;;  %v5502_v41 = vmax.f32 %v6634_v38, 0.0 }
 0x53d   :  { %v5503_v55 = vpack.c.bf16 %v5499_v44, %v5499_v44  ;;  %v5505_v0 = vpack.c.bf16 %v5501_v45, %v5501_v45 }
 0x53e   :  { %v5504_v46 = vpack.c.bf16 %v5500_v48, %v5500_v48  ;;  %v5506_v9 = vpack.c.bf16 %v5502_v41, %v5502_v41 }
 0x540   :  { %5802 = vmatprep.mubr.bf16.mxu0 %v5504_v46  ;;  %5842 = vmatprep.mubr.bf16.mxu1 %v5506_v9 }
 0x541   :  { %5803 = vmatmul.mubr.bf16.vlgmr.msra.gmra.mrb[24].mxu0 %v5503_v55  ;;  %5843 = vmatmul.mubr.bf16.vlgmr.msra.gmra.mrb[24].mxu1 %v5505_v0 }
 0x614   :  { %v6599_v50 = vpop.f32.mrb[24].mxu0  ;;  %v6621_v51 = vpop.f32.mrb[24].mxu1 }
 0x615   :  { %v6600_v30 = vpop.f32.mrb[25].mxu0  ;;  %v6622_v58 = vpop.f32.mrb[25].mxu1 }
 0x616   :  { %v6601_v34 = vadd.f32 %v6600_v30, %v6599_v50  ;;  %v6623_v22 = vadd.f32 %v6622_v58, %v6621_v51  ;;  %v6602_v59 = vpop.f32.mrb[26].mxu0  ;;  %v6624_v62 = vpop.f32.mrb[26].mxu1 }
 0x617   :  { %v6603_v1 = vpop.f32.mrb[27].mxu0  ;;  %v6625_v40 = vpop.f32.mrb[27].mxu1 }
 0x618   :  { %v5805_v26 = vadd.f32 %v6601_v34, %v6550_v54 }
 0x61a   :  { %v5845_v10 = vadd.f32 %v6623_v22, %v5805_v26 }
 0x61c   :  { %5850 = vst [vmem:[#allocation17] sm:$0xff] %v5845_v10 }
 0x61d   :  { %7918 = shalt.err (!%p7915_p6)
}
 0x61e   :  { %s7919_s22 = scalar_lea.hbm %s8294_s9, 128 }
 0x61f   :  { %p7920_p7 = scmp.ne.s32.totalorder %s8294_s9, %s7919_s22  ;;  %p7923_p8 = scmp.lt.u32.totalorder %s7919_s22, %s8294_s9 }
 0x621   :  { %p7925_p9 = pnand %p7923_p8, %p7920_p7 }
 0x623   :  { %7928 = shalt.err (!%p7925_p9)
}
 0x624   :  { %5860 = dma.vmem_to_hbm [thread:$0]  %s5858_s27, 128, %s8294_s9, [#allocation4]  }
 0x625   :  { %7939 = dma.done.wait [#allocation4], 128  }
 0x626   :  { %7940 = vsyncadd [#allocation4], 4294967168 }
 0x627   :  { %5864 = vsyncpa [#allocation3], 1 }
 0x628   :  { %5865 = vsyncpa [#allocation6], 1 }
 0x629   :  { %5866 = vsyncpa [#allocation9], 1 }
 0x62a   :  { %5867 = vsyncpa [#allocation12], 1 }
 0x62b   :  { %5868 = vsyncpa [#allocation15], 1 }
 0x62c   :  { %5869 = vsyncpa [#allocation4], 1 }

</bundles_post_ra>
